<compile_context>
chip_gen: v5e
topology: v5e:2x2
jax: 0.10.0
libtpu: 0.0.40
codegen_flags: <defaults>
</compile_context>

<pallas_src>
import functools

import numpy as np
import jax
import jax.numpy as jnp
from jax import lax
from jax.experimental import pallas as pl
from jax.experimental.pallas import tpu as pltpu


# ------------------------------- fused kernel --------------------------------
def _fused_model_kernel(x_ref, csel_ref, w1_ref, b1_ref, w2_ref, b2_ref,
                        w3_ref, b3_ref, out_ref, s_ref, *, n_batch, cin, cmid):
    f32 = jnp.float32
    _, H, Wtot = x_ref.shape          # (cin, 16, N*16), batch packed along lanes
    H1 = H - 2                        # conv1 output height (14)
    Ws = Wtot - 2                     # conv1 slab width along lanes (N*16 - 2)
    W2 = 8                            # conv2 output width
    HM = 4                            # number of conv2 even rows used by conv3
    half = n_batch * W2               # lanes per column-parity half
    PR = H1 + 2                       # conv2-padded row count per channel (16)
    H3, W3 = 6, 12                    # conv3 output plane

    # ---- conv1 (3x3, stride 1, valid) + ReLU on the VPU, batch lane-packed ---
    # Only one input channel's 9 shifted windows are live at a time; 9-term sum
    # per output channel is tree-accumulated via 3 row partials.
    y1acc = [None] * cmid
    for ci in range(cin):
        plane = x_ref[ci]                                   # (H, N*W)
        sh = [plane[i:i + H1, j:j + Ws] for i in range(3) for j in range(3)]
        for co in range(cmid):
            base = (co * cin + ci) * 9
            t0 = (w1_ref[base + 0] * sh[0] + w1_ref[base + 1] * sh[1]
                  + w1_ref[base + 2] * sh[2])
            t1 = (w1_ref[base + 3] * sh[3] + w1_ref[base + 4] * sh[4]
                  + w1_ref[base + 5] * sh[5])
            t2 = (w1_ref[base + 6] * sh[6] + w1_ref[base + 7] * sh[7]
                  + w1_ref[base + 8] * sh[8])
            p = (t0 + t1) + t2
            y1acc[co] = p if ci == 0 else y1acc[co] + p
    # bias folded into the ReLU (no zeros+bias broadcast init)
    y1 = [jnp.maximum(y1acc[co] + b1_ref[co], 0.0) for co in range(cmid)]

    # ---- column (lane) de-interleave for conv2: ONE independent matmul per
    # channel against a constant 0/1 selection matrix (conv2 zero-padding folded
    # in, exact under HIGHEST precision).  Rows are stored into a scratch
    # indexed by the conv2-padded row number so the row de-interleave below is
    # a cheap strided sublane read.
    s_ref[...] = jnp.zeros(s_ref.shape, f32)                # padding rows = 0
    csel = csel_ref[...]                                    # (Ws, 2*half)
    for ci in range(cmid):
        q = jnp.dot(y1[ci], csel, preferred_element_type=f32,
                    precision=lax.Precision.HIGHEST)        # (H1, 2*half)
        s_ref[ci * PR + 1: ci * PR + 1 + H1, :] = q         # padded row p -> ci*PR+p

    # ---- conv2 (2x2, stride (2,2), pad 1): conv3 only consumes its EVEN output
    # rows, so only padded rows {0,4,8,12} (tap i=0) and {1,5,9,13} (tap i=1)
    # are read, via stride-4 sublane loads.  Lane halves: [0:half) = even padded
    # cols (tap j=0), [half:) = odd padded cols (tap j=1).
    A, B = [], []
    for ci in range(cmid):
        r0 = ci * PR
        A.append(s_ref[pl.ds(r0, HM, stride=4), :])         # (HM, 2*half)
        B.append(s_ref[pl.ds(r0 + 1, HM, stride=4), :])     # (HM, 2*half)

    y2e = []                                                # even rows of conv2
    for c2 in range(cmid):
        acc = None
        for c1 in range(cmid):
            k = (c2 * cmid + c1) * 4
            t = ((w2_ref[k + 0] * A[c1][:, 0:half]
                  + w2_ref[k + 1] * A[c1][:, half:2 * half])
                 + (w2_ref[k + 2] * B[c1][:, 0:half]
                    + w2_ref[k + 3] * B[c1][:, half:2 * half]))
            acc = t if c1 == 0 else acc + t
        y2e.append(acc + b2_ref[c2])                        # (HM, half)

    # ---- conv3 (1x1, stride (2,1), pad 2): pure VPU, no placement matmuls.
    # Valid region of each (6,12) output plane is [1:5, 2:10]; the rest is bias.
    for co in range(cmid):
        s = (w3_ref[co * cmid + 0] * y2e[0]
             + w3_ref[co * cmid + 1] * y2e[1]
             + w3_ref[co * cmid + 2] * y2e[2]) + b3_ref[co]  # (HM, half)
        bias_plane = jnp.full((H3, W3), b3_ref[co], dtype=f32)
        for n in range(n_batch):
            idx = n * cmid + co
            out_ref[idx, :, :] = bias_plane
            out_ref[idx, 1:1 + HM, 2:2 + W2] = s[:, n * W2:(n + 1) * W2]


# -------------------------------- wrapper -------------------------------------
@jax.jit
def model_forward(x, params):
    """x: (N, 3, 16, 16) NCHW float32; params: (w1, b1, w2, b2, w3, b3)."""
    w1, b1, w2, b2, w3, b3 = params
    N, C, H, W = x.shape
    cmid = w1.shape[0]
    # Hard-coded to this exact conv stack / spatial size (see kernel derivation).
    assert (C, H, W) == (3, 16, 16), (C, H, W)
    assert w1.shape == (cmid, C, 3, 3) and w2.shape == (cmid, cmid, 2, 2)
    assert w3.shape == (cmid, cmid, 1, 1)
    assert N * W <= 128, "batch is lane-packed into a single vreg row"

    H1, W1 = H - 2, W - 2            # conv1 output 14x14
    W2 = 8                           # conv2 output width
    H3, W3 = 6, 12                   # conv3 output plane
    Ws = N * W - 2                   # conv1 slab lane width
    half = N * W2

    # Constant 0/1 column-selection matrix: slab lane (n*W + c) feeds the
    # de-interleaved layout [even_b0..even_b{N-1} | odd_b0..odd_b{N-1}], with
    # conv2's zero padding folded in (unselected -> 0).
    csel = np.zeros((Ws, 2 * half), np.float32)
    for n in range(N):
        for w in range(W2):
            c_even = 2 * w - 1                       # y1 col feeding padded col 2w
            if 0 <= c_even < W1:
                csel[n * W + c_even, n * W2 + w] = 1.0
            c_odd = 2 * w                            # y1 col feeding padded col 2w+1
            if c_odd < W1:
                csel[n * W + c_odd, half + n * W2 + w] = 1.0

    # lane-pack the batch: (N, C, H, W) -> (C, H, N*W)
    x_packed = jnp.transpose(x, (1, 2, 0, 3)).reshape(C, H, N * W)

    vmem = pl.BlockSpec(memory_space=pltpu.MemorySpace.VMEM)
    smem = pl.BlockSpec(memory_space=pltpu.MemorySpace.SMEM)
    out = pl.pallas_call(
        functools.partial(_fused_model_kernel, n_batch=N, cin=C, cmid=cmid),
        out_shape=jax.ShapeDtypeStruct((N * cmid, H3, W3), jnp.float32),
        in_specs=[vmem, vmem, smem, smem, smem, smem, smem, smem],
        out_specs=vmem,
        scratch_shapes=[pltpu.VMEM((cmid * (H1 + 2), 2 * half), jnp.float32)],
    )(x_packed, jnp.asarray(csel),
      w1.reshape(-1), b1, w2.reshape(-1), b2, w3.reshape(-1), b3)
    # torch.flatten(x, 1): row-major (co, ho, wo) flatten per batch element.
    return out.reshape(N, -1)


# ------------------------------- reference ------------------------------------
def _conv_ref(x, w, b, stride, padding):
    dn = lax.conv_dimension_numbers(x.shape, w.shape, ("NCHW", "OIHW", "NCHW"))
    y = lax.conv_general_dilated(
        x, w, window_strides=stride,
        padding=[(padding[0], padding[0]), (padding[1], padding[1])],
        dimension_numbers=dn)
    return y + b.reshape(1, -1, 1, 1)


def model_ref(x, params):
    w1, b1, w2, b2, w3, b3 = params
    y = jnp.maximum(_conv_ref(x, w1, b1, (1, 1), (0, 0)), 0.0)
    y = _conv_ref(y, w2, b2, (2, 2), (1, 1))
    y = _conv_ref(y, w3, b3, (2, 1), (2, 2))
    return y.reshape(y.shape[0], -1)


# --------------------------------- main ----------------------------------------
if __name__ == "__main__":
    key = jax.random.PRNGKey(0)
    k_x, k1, k2, k3, kb1, kb2, kb3 = jax.random.split(key, 7)

    # Input: the original script's (2,3,2,2) is too small for a 3x3 valid conv;
    # use a spatially-consistent small shape (2, 3, 16, 16).
    x = jax.random.normal(k_x, (2, 3, 16, 16), dtype=jnp.float32)

    def init_conv(kw_key, kb_key, cout, cin, kh, kwid):
        fan_in = cin * kh * kwid
        scale = 1.0 / jnp.sqrt(jnp.float32(fan_in))
        w = jax.random.uniform(kw_key, (cout, cin, kh, kwid),
                               minval=-scale, maxval=scale, dtype=jnp.float32)
        bb = jax.random.uniform(kb_key, (cout,),
                                minval=-scale, maxval=scale, dtype=jnp.float32)
        return w, bb

    w1, b1 = init_conv(k1, kb1, 3, 3, 3, 3)   # Conv2d(3, 3, 3)
    w2, b2 = init_conv(k2, kb2, 3, 3, 2, 2)   # Conv2d(3, 3, 2, stride=2, pad=1)
    w3, b3 = init_conv(k3, kb3, 3, 3, 1, 1)   # Conv2d(3, 3, 1, stride=(2,1), pad=2)
    params = (w1, b1, w2, b2, w3, b3)

    out = jax.block_until_ready(model_forward(x, params))
    ref = jax.block_until_ready(model_ref(x, params))

    assert out.shape == (2, 3 * 6 * 12), out.shape
    assert jnp.allclose(out, ref, atol=1e-4, rtol=1e-4), \
        float(jnp.max(jnp.abs(out - ref)))
    print("KERNEL_OK")
</pallas_src>

<mosaic_0001>
module attributes {stable_mosaic.version = 11 : i64} {
  func.func @_fused_model_kernel(%arg0: memref<3x16x32xf32, #tpu.memory_space<vmem>>, %arg1: memref<30x32xf32, #tpu.memory_space<vmem>>, %arg2: memref<81xf32, #tpu.memory_space<smem>>, %arg3: memref<3xf32, #tpu.memory_space<smem>>, %arg4: memref<36xf32, #tpu.memory_space<smem>>, %arg5: memref<3xf32, #tpu.memory_space<smem>>, %arg6: memref<9xf32, #tpu.memory_space<smem>>, %arg7: memref<3xf32, #tpu.memory_space<smem>>, %arg8: memref<6x6x12xf32, #tpu.memory_space<vmem>>, %arg9: memref<48x32xf32, #tpu.memory_space<vmem>>) attributes {dimension_semantics = [], scalar_prefetch = 0 : i64, scratch_operands = 1 : i64, tpu.core_type = #tpu.core_type<tc>} {
    %c0 = arith.constant 0 : index
    %c0_0 = arith.constant 0 : index
    %c0_1 = arith.constant 0 : index
    %0 = vector.load %arg0[%c0, %c0_0, %c0_1] : memref<3x16x32xf32, #tpu.memory_space<vmem>>, vector<1x16x32xf32>
    %1 = vector.shape_cast %0 : vector<1x16x32xf32> to vector<16x32xf32>
    %2 = vector.extract_strided_slice %1 {offsets = [0, 0], sizes = [14, 30], strides = [1, 1]} : vector<16x32xf32> to vector<14x30xf32>
    %3 = vector.extract_strided_slice %1 {offsets = [0, 1], sizes = [14, 30], strides = [1, 1]} : vector<16x32xf32> to vector<14x30xf32>
    %4 = vector.extract_strided_slice %1 {offsets = [0, 2], sizes = [14, 30], strides = [1, 1]} : vector<16x32xf32> to vector<14x30xf32>
    %5 = vector.extract_strided_slice %1 {offsets = [1, 0], sizes = [14, 30], strides = [1, 1]} : vector<16x32xf32> to vector<14x30xf32>
    %6 = vector.extract_strided_slice %1 {offsets = [1, 1], sizes = [14, 30], strides = [1, 1]} : vector<16x32xf32> to vector<14x30xf32>
    %7 = vector.extract_strided_slice %1 {offsets = [1, 2], sizes = [14, 30], strides = [1, 1]} : vector<16x32xf32> to vector<14x30xf32>
    %8 = vector.extract_strided_slice %1 {offsets = [2, 0], sizes = [14, 30], strides = [1, 1]} : vector<16x32xf32> to vector<14x30xf32>
    %9 = vector.extract_strided_slice %1 {offsets = [2, 1], sizes = [14, 30], strides = [1, 1]} : vector<16x32xf32> to vector<14x30xf32>
    %10 = vector.extract_strided_slice %1 {offsets = [2, 2], sizes = [14, 30], strides = [1, 1]} : vector<16x32xf32> to vector<14x30xf32>
    %c0_2 = arith.constant 0 : index
    %11 = memref.load %arg2[%c0_2] : memref<81xf32, #tpu.memory_space<smem>>
    %12 = vector.broadcast %11 : f32 to vector<14x30xf32>
    %13 = arith.mulf %12, %2 : vector<14x30xf32>
    %c1 = arith.constant 1 : index
    %14 = memref.load %arg2[%c1] : memref<81xf32, #tpu.memory_space<smem>>
    %15 = vector.broadcast %14 : f32 to vector<14x30xf32>
    %16 = arith.mulf %15, %3 : vector<14x30xf32>
    %17 = arith.addf %13, %16 : vector<14x30xf32>
    %c2 = arith.constant 2 : index
    %18 = memref.load %arg2[%c2] : memref<81xf32, #tpu.memory_space<smem>>
    %19 = vector.broadcast %18 : f32 to vector<14x30xf32>
    %20 = arith.mulf %19, %4 : vector<14x30xf32>
    %21 = arith.addf %17, %20 : vector<14x30xf32>
    %c3 = arith.constant 3 : index
    %22 = memref.load %arg2[%c3] : memref<81xf32, #tpu.memory_space<smem>>
    %23 = vector.broadcast %22 : f32 to vector<14x30xf32>
    %24 = arith.mulf %23, %5 : vector<14x30xf32>
    %c4 = arith.constant 4 : index
    %25 = memref.load %arg2[%c4] : memref<81xf32, #tpu.memory_space<smem>>
    %26 = vector.broadcast %25 : f32 to vector<14x30xf32>
    %27 = arith.mulf %26, %6 : vector<14x30xf32>
    %28 = arith.addf %24, %27 : vector<14x30xf32>
    %c5 = arith.constant 5 : index
    %29 = memref.load %arg2[%c5] : memref<81xf32, #tpu.memory_space<smem>>
    %30 = vector.broadcast %29 : f32 to vector<14x30xf32>
    %31 = arith.mulf %30, %7 : vector<14x30xf32>
    %32 = arith.addf %28, %31 : vector<14x30xf32>
    %c6 = arith.constant 6 : index
    %33 = memref.load %arg2[%c6] : memref<81xf32, #tpu.memory_space<smem>>
    %34 = vector.broadcast %33 : f32 to vector<14x30xf32>
    %35 = arith.mulf %34, %8 : vector<14x30xf32>
    %c7 = arith.constant 7 : index
    %36 = memref.load %arg2[%c7] : memref<81xf32, #tpu.memory_space<smem>>
    %37 = vector.broadcast %36 : f32 to vector<14x30xf32>
    %38 = arith.mulf %37, %9 : vector<14x30xf32>
    %39 = arith.addf %35, %38 : vector<14x30xf32>
    %c8 = arith.constant 8 : index
    %40 = memref.load %arg2[%c8] : memref<81xf32, #tpu.memory_space<smem>>
    %41 = vector.broadcast %40 : f32 to vector<14x30xf32>
    %42 = arith.mulf %41, %10 : vector<14x30xf32>
    %43 = arith.addf %39, %42 : vector<14x30xf32>
    %44 = arith.addf %21, %32 : vector<14x30xf32>
    %45 = arith.addf %44, %43 : vector<14x30xf32>
    %c27 = arith.constant 27 : index
    %46 = memref.load %arg2[%c27] : memref<81xf32, #tpu.memory_space<smem>>
    %47 = vector.broadcast %46 : f32 to vector<14x30xf32>
    %48 = arith.mulf %47, %2 : vector<14x30xf32>
    %c28 = arith.constant 28 : index
    %49 = memref.load %arg2[%c28] : memref<81xf32, #tpu.memory_space<smem>>
    %50 = vector.broadcast %49 : f32 to vector<14x30xf32>
    %51 = arith.mulf %50, %3 : vector<14x30xf32>
    %52 = arith.addf %48, %51 : vector<14x30xf32>
    %c29 = arith.constant 29 : index
    %53 = memref.load %arg2[%c29] : memref<81xf32, #tpu.memory_space<smem>>
    %54 = vector.broadcast %53 : f32 to vector<14x30xf32>
    %55 = arith.mulf %54, %4 : vector<14x30xf32>
    %56 = arith.addf %52, %55 : vector<14x30xf32>
    %c30 = arith.constant 30 : index
    %57 = memref.load %arg2[%c30] : memref<81xf32, #tpu.memory_space<smem>>
    %58 = vector.broadcast %57 : f32 to vector<14x30xf32>
    %59 = arith.mulf %58, %5 : vector<14x30xf32>
    %c31 = arith.constant 31 : index
    %60 = memref.load %arg2[%c31] : memref<81xf32, #tpu.memory_space<smem>>
    %61 = vector.broadcast %60 : f32 to vector<14x30xf32>
    %62 = arith.mulf %61, %6 : vector<14x30xf32>
    %63 = arith.addf %59, %62 : vector<14x30xf32>
    %c32 = arith.constant 32 : index
    %64 = memref.load %arg2[%c32] : memref<81xf32, #tpu.memory_space<smem>>
    %65 = vector.broadcast %64 : f32 to vector<14x30xf32>
    %66 = arith.mulf %65, %7 : vector<14x30xf32>
    %67 = arith.addf %63, %66 : vector<14x30xf32>
    %c33 = arith.constant 33 : index
    %68 = memref.load %arg2[%c33] : memref<81xf32, #tpu.memory_space<smem>>
    %69 = vector.broadcast %68 : f32 to vector<14x30xf32>
    %70 = arith.mulf %69, %8 : vector<14x30xf32>
    %c34 = arith.constant 34 : index
    %71 = memref.load %arg2[%c34] : memref<81xf32, #tpu.memory_space<smem>>
    %72 = vector.broadcast %71 : f32 to vector<14x30xf32>
    %73 = arith.mulf %72, %9 : vector<14x30xf32>
    %74 = arith.addf %70, %73 : vector<14x30xf32>
    %c35 = arith.constant 35 : index
    %75 = memref.load %arg2[%c35] : memref<81xf32, #tpu.memory_space<smem>>
    %76 = vector.broadcast %75 : f32 to vector<14x30xf32>
    %77 = arith.mulf %76, %10 : vector<14x30xf32>
    %78 = arith.addf %74, %77 : vector<14x30xf32>
    %79 = arith.addf %56, %67 : vector<14x30xf32>
    %80 = arith.addf %79, %78 : vector<14x30xf32>
    %c54 = arith.constant 54 : index
    %81 = memref.load %arg2[%c54] : memref<81xf32, #tpu.memory_space<smem>>
    %82 = vector.broadcast %81 : f32 to vector<14x30xf32>
    %83 = arith.mulf %82, %2 : vector<14x30xf32>
    %c55 = arith.constant 55 : index
    %84 = memref.load %arg2[%c55] : memref<81xf32, #tpu.memory_space<smem>>
    %85 = vector.broadcast %84 : f32 to vector<14x30xf32>
    %86 = arith.mulf %85, %3 : vector<14x30xf32>
    %87 = arith.addf %83, %86 : vector<14x30xf32>
    %c56 = arith.constant 56 : index
    %88 = memref.load %arg2[%c56] : memref<81xf32, #tpu.memory_space<smem>>
    %89 = vector.broadcast %88 : f32 to vector<14x30xf32>
    %90 = arith.mulf %89, %4 : vector<14x30xf32>
    %91 = arith.addf %87, %90 : vector<14x30xf32>
    %c57 = arith.constant 57 : index
    %92 = memref.load %arg2[%c57] : memref<81xf32, #tpu.memory_space<smem>>
    %93 = vector.broadcast %92 : f32 to vector<14x30xf32>
    %94 = arith.mulf %93, %5 : vector<14x30xf32>
    %c58 = arith.constant 58 : index
    %95 = memref.load %arg2[%c58] : memref<81xf32, #tpu.memory_space<smem>>
    %96 = vector.broadcast %95 : f32 to vector<14x30xf32>
    %97 = arith.mulf %96, %6 : vector<14x30xf32>
    %98 = arith.addf %94, %97 : vector<14x30xf32>
    %c59 = arith.constant 59 : index
    %99 = memref.load %arg2[%c59] : memref<81xf32, #tpu.memory_space<smem>>
    %100 = vector.broadcast %99 : f32 to vector<14x30xf32>
    %101 = arith.mulf %100, %7 : vector<14x30xf32>
    %102 = arith.addf %98, %101 : vector<14x30xf32>
    %c60 = arith.constant 60 : index
    %103 = memref.load %arg2[%c60] : memref<81xf32, #tpu.memory_space<smem>>
    %104 = vector.broadcast %103 : f32 to vector<14x30xf32>
    %105 = arith.mulf %104, %8 : vector<14x30xf32>
    %c61 = arith.constant 61 : index
    %106 = memref.load %arg2[%c61] : memref<81xf32, #tpu.memory_space<smem>>
    %107 = vector.broadcast %106 : f32 to vector<14x30xf32>
    %108 = arith.mulf %107, %9 : vector<14x30xf32>
    %109 = arith.addf %105, %108 : vector<14x30xf32>
    %c62 = arith.constant 62 : index
    %110 = memref.load %arg2[%c62] : memref<81xf32, #tpu.memory_space<smem>>
    %111 = vector.broadcast %110 : f32 to vector<14x30xf32>
    %112 = arith.mulf %111, %10 : vector<14x30xf32>
    %113 = arith.addf %109, %112 : vector<14x30xf32>
    %114 = arith.addf %91, %102 : vector<14x30xf32>
    %115 = arith.addf %114, %113 : vector<14x30xf32>
    %c1_3 = arith.constant 1 : index
    %c0_4 = arith.constant 0 : index
    %c0_5 = arith.constant 0 : index
    %116 = vector.load %arg0[%c1_3, %c0_4, %c0_5] : memref<3x16x32xf32, #tpu.memory_space<vmem>>, vector<1x16x32xf32>
    %117 = vector.shape_cast %116 : vector<1x16x32xf32> to vector<16x32xf32>
    %118 = vector.extract_strided_slice %117 {offsets = [0, 0], sizes = [14, 30], strides = [1, 1]} : vector<16x32xf32> to vector<14x30xf32>
    %119 = vector.extract_strided_slice %117 {offsets = [0, 1], sizes = [14, 30], strides = [1, 1]} : vector<16x32xf32> to vector<14x30xf32>
    %120 = vector.extract_strided_slice %117 {offsets = [0, 2], sizes = [14, 30], strides = [1, 1]} : vector<16x32xf32> to vector<14x30xf32>
    %121 = vector.extract_strided_slice %117 {offsets = [1, 0], sizes = [14, 30], strides = [1, 1]} : vector<16x32xf32> to vector<14x30xf32>
    %122 = vector.extract_strided_slice %117 {offsets = [1, 1], sizes = [14, 30], strides = [1, 1]} : vector<16x32xf32> to vector<14x30xf32>
    %123 = vector.extract_strided_slice %117 {offsets = [1, 2], sizes = [14, 30], strides = [1, 1]} : vector<16x32xf32> to vector<14x30xf32>
    %124 = vector.extract_strided_slice %117 {offsets = [2, 0], sizes = [14, 30], strides = [1, 1]} : vector<16x32xf32> to vector<14x30xf32>
    %125 = vector.extract_strided_slice %117 {offsets = [2, 1], sizes = [14, 30], strides = [1, 1]} : vector<16x32xf32> to vector<14x30xf32>
    %126 = vector.extract_strided_slice %117 {offsets = [2, 2], sizes = [14, 30], strides = [1, 1]} : vector<16x32xf32> to vector<14x30xf32>
    %c9 = arith.constant 9 : index
    %127 = memref.load %arg2[%c9] : memref<81xf32, #tpu.memory_space<smem>>
    %128 = vector.broadcast %127 : f32 to vector<14x30xf32>
    %129 = arith.mulf %128, %118 : vector<14x30xf32>
    %c10 = arith.constant 10 : index
    %130 = memref.load %arg2[%c10] : memref<81xf32, #tpu.memory_space<smem>>
    %131 = vector.broadcast %130 : f32 to vector<14x30xf32>
    %132 = arith.mulf %131, %119 : vector<14x30xf32>
    %133 = arith.addf %129, %132 : vector<14x30xf32>
    %c11 = arith.constant 11 : index
    %134 = memref.load %arg2[%c11] : memref<81xf32, #tpu.memory_space<smem>>
    %135 = vector.broadcast %134 : f32 to vector<14x30xf32>
    %136 = arith.mulf %135, %120 : vector<14x30xf32>
    %137 = arith.addf %133, %136 : vector<14x30xf32>
    %c12 = arith.constant 12 : index
    %138 = memref.load %arg2[%c12] : memref<81xf32, #tpu.memory_space<smem>>
    %139 = vector.broadcast %138 : f32 to vector<14x30xf32>
    %140 = arith.mulf %139, %121 : vector<14x30xf32>
    %c13 = arith.constant 13 : index
    %141 = memref.load %arg2[%c13] : memref<81xf32, #tpu.memory_space<smem>>
    %142 = vector.broadcast %141 : f32 to vector<14x30xf32>
    %143 = arith.mulf %142, %122 : vector<14x30xf32>
    %144 = arith.addf %140, %143 : vector<14x30xf32>
    %c14 = arith.constant 14 : index
    %145 = memref.load %arg2[%c14] : memref<81xf32, #tpu.memory_space<smem>>
    %146 = vector.broadcast %145 : f32 to vector<14x30xf32>
    %147 = arith.mulf %146, %123 : vector<14x30xf32>
    %148 = arith.addf %144, %147 : vector<14x30xf32>
    %c15 = arith.constant 15 : index
    %149 = memref.load %arg2[%c15] : memref<81xf32, #tpu.memory_space<smem>>
    %150 = vector.broadcast %149 : f32 to vector<14x30xf32>
    %151 = arith.mulf %150, %124 : vector<14x30xf32>
    %c16 = arith.constant 16 : index
    %152 = memref.load %arg2[%c16] : memref<81xf32, #tpu.memory_space<smem>>
    %153 = vector.broadcast %152 : f32 to vector<14x30xf32>
    %154 = arith.mulf %153, %125 : vector<14x30xf32>
    %155 = arith.addf %151, %154 : vector<14x30xf32>
    %c17 = arith.constant 17 : index
    %156 = memref.load %arg2[%c17] : memref<81xf32, #tpu.memory_space<smem>>
    %157 = vector.broadcast %156 : f32 to vector<14x30xf32>
    %158 = arith.mulf %157, %126 : vector<14x30xf32>
    %159 = arith.addf %155, %158 : vector<14x30xf32>
    %160 = arith.addf %137, %148 : vector<14x30xf32>
    %161 = arith.addf %160, %159 : vector<14x30xf32>
    %162 = arith.addf %45, %161 : vector<14x30xf32>
    %c36 = arith.constant 36 : index
    %163 = memref.load %arg2[%c36] : memref<81xf32, #tpu.memory_space<smem>>
    %164 = vector.broadcast %163 : f32 to vector<14x30xf32>
    %165 = arith.mulf %164, %118 : vector<14x30xf32>
    %c37 = arith.constant 37 : index
    %166 = memref.load %arg2[%c37] : memref<81xf32, #tpu.memory_space<smem>>
    %167 = vector.broadcast %166 : f32 to vector<14x30xf32>
    %168 = arith.mulf %167, %119 : vector<14x30xf32>
    %169 = arith.addf %165, %168 : vector<14x30xf32>
    %c38 = arith.constant 38 : index
    %170 = memref.load %arg2[%c38] : memref<81xf32, #tpu.memory_space<smem>>
    %171 = vector.broadcast %170 : f32 to vector<14x30xf32>
    %172 = arith.mulf %171, %120 : vector<14x30xf32>
    %173 = arith.addf %169, %172 : vector<14x30xf32>
    %c39 = arith.constant 39 : index
    %174 = memref.load %arg2[%c39] : memref<81xf32, #tpu.memory_space<smem>>
    %175 = vector.broadcast %174 : f32 to vector<14x30xf32>
    %176 = arith.mulf %175, %121 : vector<14x30xf32>
    %c40 = arith.constant 40 : index
    %177 = memref.load %arg2[%c40] : memref<81xf32, #tpu.memory_space<smem>>
    %178 = vector.broadcast %177 : f32 to vector<14x30xf32>
    %179 = arith.mulf %178, %122 : vector<14x30xf32>
    %180 = arith.addf %176, %179 : vector<14x30xf32>
    %c41 = arith.constant 41 : index
    %181 = memref.load %arg2[%c41] : memref<81xf32, #tpu.memory_space<smem>>
    %182 = vector.broadcast %181 : f32 to vector<14x30xf32>
    %183 = arith.mulf %182, %123 : vector<14x30xf32>
    %184 = arith.addf %180, %183 : vector<14x30xf32>
    %c42 = arith.constant 42 : index
    %185 = memref.load %arg2[%c42] : memref<81xf32, #tpu.memory_space<smem>>
    %186 = vector.broadcast %185 : f32 to vector<14x30xf32>
    %187 = arith.mulf %186, %124 : vector<14x30xf32>
    %c43 = arith.constant 43 : index
    %188 = memref.load %arg2[%c43] : memref<81xf32, #tpu.memory_space<smem>>
    %189 = vector.broadcast %188 : f32 to vector<14x30xf32>
    %190 = arith.mulf %189, %125 : vector<14x30xf32>
    %191 = arith.addf %187, %190 : vector<14x30xf32>
    %c44 = arith.constant 44 : index
    %192 = memref.load %arg2[%c44] : memref<81xf32, #tpu.memory_space<smem>>
    %193 = vector.broadcast %192 : f32 to vector<14x30xf32>
    %194 = arith.mulf %193, %126 : vector<14x30xf32>
    %195 = arith.addf %191, %194 : vector<14x30xf32>
    %196 = arith.addf %173, %184 : vector<14x30xf32>
    %197 = arith.addf %196, %195 : vector<14x30xf32>
    %198 = arith.addf %80, %197 : vector<14x30xf32>
    %c63 = arith.constant 63 : index
    %199 = memref.load %arg2[%c63] : memref<81xf32, #tpu.memory_space<smem>>
    %200 = vector.broadcast %199 : f32 to vector<14x30xf32>
    %201 = arith.mulf %200, %118 : vector<14x30xf32>
    %c64 = arith.constant 64 : index
    %202 = memref.load %arg2[%c64] : memref<81xf32, #tpu.memory_space<smem>>
    %203 = vector.broadcast %202 : f32 to vector<14x30xf32>
    %204 = arith.mulf %203, %119 : vector<14x30xf32>
    %205 = arith.addf %201, %204 : vector<14x30xf32>
    %c65 = arith.constant 65 : index
    %206 = memref.load %arg2[%c65] : memref<81xf32, #tpu.memory_space<smem>>
    %207 = vector.broadcast %206 : f32 to vector<14x30xf32>
    %208 = arith.mulf %207, %120 : vector<14x30xf32>
    %209 = arith.addf %205, %208 : vector<14x30xf32>
    %c66 = arith.constant 66 : index
    %210 = memref.load %arg2[%c66] : memref<81xf32, #tpu.memory_space<smem>>
    %211 = vector.broadcast %210 : f32 to vector<14x30xf32>
    %212 = arith.mulf %211, %121 : vector<14x30xf32>
    %c67 = arith.constant 67 : index
    %213 = memref.load %arg2[%c67] : memref<81xf32, #tpu.memory_space<smem>>
    %214 = vector.broadcast %213 : f32 to vector<14x30xf32>
    %215 = arith.mulf %214, %122 : vector<14x30xf32>
    %216 = arith.addf %212, %215 : vector<14x30xf32>
    %c68 = arith.constant 68 : index
    %217 = memref.load %arg2[%c68] : memref<81xf32, #tpu.memory_space<smem>>
    %218 = vector.broadcast %217 : f32 to vector<14x30xf32>
    %219 = arith.mulf %218, %123 : vector<14x30xf32>
    %220 = arith.addf %216, %219 : vector<14x30xf32>
    %c69 = arith.constant 69 : index
    %221 = memref.load %arg2[%c69] : memref<81xf32, #tpu.memory_space<smem>>
    %222 = vector.broadcast %221 : f32 to vector<14x30xf32>
    %223 = arith.mulf %222, %124 : vector<14x30xf32>
    %c70 = arith.constant 70 : index
    %224 = memref.load %arg2[%c70] : memref<81xf32, #tpu.memory_space<smem>>
    %225 = vector.broadcast %224 : f32 to vector<14x30xf32>
    %226 = arith.mulf %225, %125 : vector<14x30xf32>
    %227 = arith.addf %223, %226 : vector<14x30xf32>
    %c71 = arith.constant 71 : index
    %228 = memref.load %arg2[%c71] : memref<81xf32, #tpu.memory_space<smem>>
    %229 = vector.broadcast %228 : f32 to vector<14x30xf32>
    %230 = arith.mulf %229, %126 : vector<14x30xf32>
    %231 = arith.addf %227, %230 : vector<14x30xf32>
    %232 = arith.addf %209, %220 : vector<14x30xf32>
    %233 = arith.addf %232, %231 : vector<14x30xf32>
    %234 = arith.addf %115, %233 : vector<14x30xf32>
    %c2_6 = arith.constant 2 : index
    %c0_7 = arith.constant 0 : index
    %c0_8 = arith.constant 0 : index
    %235 = vector.load %arg0[%c2_6, %c0_7, %c0_8] : memref<3x16x32xf32, #tpu.memory_space<vmem>>, vector<1x16x32xf32>
    %236 = vector.shape_cast %235 : vector<1x16x32xf32> to vector<16x32xf32>
    %237 = vector.extract_strided_slice %236 {offsets = [0, 0], sizes = [14, 30], strides = [1, 1]} : vector<16x32xf32> to vector<14x30xf32>
    %238 = vector.extract_strided_slice %236 {offsets = [0, 1], sizes = [14, 30], strides = [1, 1]} : vector<16x32xf32> to vector<14x30xf32>
    %239 = vector.extract_strided_slice %236 {offsets = [0, 2], sizes = [14, 30], strides = [1, 1]} : vector<16x32xf32> to vector<14x30xf32>
    %240 = vector.extract_strided_slice %236 {offsets = [1, 0], sizes = [14, 30], strides = [1, 1]} : vector<16x32xf32> to vector<14x30xf32>
    %241 = vector.extract_strided_slice %236 {offsets = [1, 1], sizes = [14, 30], strides = [1, 1]} : vector<16x32xf32> to vector<14x30xf32>
    %242 = vector.extract_strided_slice %236 {offsets = [1, 2], sizes = [14, 30], strides = [1, 1]} : vector<16x32xf32> to vector<14x30xf32>
    %243 = vector.extract_strided_slice %236 {offsets = [2, 0], sizes = [14, 30], strides = [1, 1]} : vector<16x32xf32> to vector<14x30xf32>
    %244 = vector.extract_strided_slice %236 {offsets = [2, 1], sizes = [14, 30], strides = [1, 1]} : vector<16x32xf32> to vector<14x30xf32>
    %245 = vector.extract_strided_slice %236 {offsets = [2, 2], sizes = [14, 30], strides = [1, 1]} : vector<16x32xf32> to vector<14x30xf32>
    %c18 = arith.constant 18 : index
    %246 = memref.load %arg2[%c18] : memref<81xf32, #tpu.memory_space<smem>>
    %247 = vector.broadcast %246 : f32 to vector<14x30xf32>
    %248 = arith.mulf %247, %237 : vector<14x30xf32>
    %c19 = arith.constant 19 : index
    %249 = memref.load %arg2[%c19] : memref<81xf32, #tpu.memory_space<smem>>
    %250 = vector.broadcast %249 : f32 to vector<14x30xf32>
    %251 = arith.mulf %250, %238 : vector<14x30xf32>
    %252 = arith.addf %248, %251 : vector<14x30xf32>
    %c20 = arith.constant 20 : index
    %253 = memref.load %arg2[%c20] : memref<81xf32, #tpu.memory_space<smem>>
    %254 = vector.broadcast %253 : f32 to vector<14x30xf32>
    %255 = arith.mulf %254, %239 : vector<14x30xf32>
    %256 = arith.addf %252, %255 : vector<14x30xf32>
    %c21 = arith.constant 21 : index
    %257 = memref.load %arg2[%c21] : memref<81xf32, #tpu.memory_space<smem>>
    %258 = vector.broadcast %257 : f32 to vector<14x30xf32>
    %259 = arith.mulf %258, %240 : vector<14x30xf32>
    %c22 = arith.constant 22 : index
    %260 = memref.load %arg2[%c22] : memref<81xf32, #tpu.memory_space<smem>>
    %261 = vector.broadcast %260 : f32 to vector<14x30xf32>
    %262 = arith.mulf %261, %241 : vector<14x30xf32>
    %263 = arith.addf %259, %262 : vector<14x30xf32>
    %c23 = arith.constant 23 : index
    %264 = memref.load %arg2[%c23] : memref<81xf32, #tpu.memory_space<smem>>
    %265 = vector.broadcast %264 : f32 to vector<14x30xf32>
    %266 = arith.mulf %265, %242 : vector<14x30xf32>
    %267 = arith.addf %263, %266 : vector<14x30xf32>
    %c24 = arith.constant 24 : index
    %268 = memref.load %arg2[%c24] : memref<81xf32, #tpu.memory_space<smem>>
    %269 = vector.broadcast %268 : f32 to vector<14x30xf32>
    %270 = arith.mulf %269, %243 : vector<14x30xf32>
    %c25 = arith.constant 25 : index
    %271 = memref.load %arg2[%c25] : memref<81xf32, #tpu.memory_space<smem>>
    %272 = vector.broadcast %271 : f32 to vector<14x30xf32>
    %273 = arith.mulf %272, %244 : vector<14x30xf32>
    %274 = arith.addf %270, %273 : vector<14x30xf32>
    %c26 = arith.constant 26 : index
    %275 = memref.load %arg2[%c26] : memref<81xf32, #tpu.memory_space<smem>>
    %276 = vector.broadcast %275 : f32 to vector<14x30xf32>
    %277 = arith.mulf %276, %245 : vector<14x30xf32>
    %278 = arith.addf %274, %277 : vector<14x30xf32>
    %279 = arith.addf %256, %267 : vector<14x30xf32>
    %280 = arith.addf %279, %278 : vector<14x30xf32>
    %281 = arith.addf %162, %280 : vector<14x30xf32>
    %c45 = arith.constant 45 : index
    %282 = memref.load %arg2[%c45] : memref<81xf32, #tpu.memory_space<smem>>
    %283 = vector.broadcast %282 : f32 to vector<14x30xf32>
    %284 = arith.mulf %283, %237 : vector<14x30xf32>
    %c46 = arith.constant 46 : index
    %285 = memref.load %arg2[%c46] : memref<81xf32, #tpu.memory_space<smem>>
    %286 = vector.broadcast %285 : f32 to vector<14x30xf32>
    %287 = arith.mulf %286, %238 : vector<14x30xf32>
    %288 = arith.addf %284, %287 : vector<14x30xf32>
    %c47 = arith.constant 47 : index
    %289 = memref.load %arg2[%c47] : memref<81xf32, #tpu.memory_space<smem>>
    %290 = vector.broadcast %289 : f32 to vector<14x30xf32>
    %291 = arith.mulf %290, %239 : vector<14x30xf32>
    %292 = arith.addf %288, %291 : vector<14x30xf32>
    %c48 = arith.constant 48 : index
    %293 = memref.load %arg2[%c48] : memref<81xf32, #tpu.memory_space<smem>>
    %294 = vector.broadcast %293 : f32 to vector<14x30xf32>
    %295 = arith.mulf %294, %240 : vector<14x30xf32>
    %c49 = arith.constant 49 : index
    %296 = memref.load %arg2[%c49] : memref<81xf32, #tpu.memory_space<smem>>
    %297 = vector.broadcast %296 : f32 to vector<14x30xf32>
    %298 = arith.mulf %297, %241 : vector<14x30xf32>
    %299 = arith.addf %295, %298 : vector<14x30xf32>
    %c50 = arith.constant 50 : index
    %300 = memref.load %arg2[%c50] : memref<81xf32, #tpu.memory_space<smem>>
    %301 = vector.broadcast %300 : f32 to vector<14x30xf32>
    %302 = arith.mulf %301, %242 : vector<14x30xf32>
    %303 = arith.addf %299, %302 : vector<14x30xf32>
    %c51 = arith.constant 51 : index
    %304 = memref.load %arg2[%c51] : memref<81xf32, #tpu.memory_space<smem>>
    %305 = vector.broadcast %304 : f32 to vector<14x30xf32>
    %306 = arith.mulf %305, %243 : vector<14x30xf32>
    %c52 = arith.constant 52 : index
    %307 = memref.load %arg2[%c52] : memref<81xf32, #tpu.memory_space<smem>>
    %308 = vector.broadcast %307 : f32 to vector<14x30xf32>
    %309 = arith.mulf %308, %244 : vector<14x30xf32>
    %310 = arith.addf %306, %309 : vector<14x30xf32>
    %c53 = arith.constant 53 : index
    %311 = memref.load %arg2[%c53] : memref<81xf32, #tpu.memory_space<smem>>
    %312 = vector.broadcast %311 : f32 to vector<14x30xf32>
    %313 = arith.mulf %312, %245 : vector<14x30xf32>
    %314 = arith.addf %310, %313 : vector<14x30xf32>
    %315 = arith.addf %292, %303 : vector<14x30xf32>
    %316 = arith.addf %315, %314 : vector<14x30xf32>
    %317 = arith.addf %198, %316 : vector<14x30xf32>
    %c72 = arith.constant 72 : index
    %318 = memref.load %arg2[%c72] : memref<81xf32, #tpu.memory_space<smem>>
    %319 = vector.broadcast %318 : f32 to vector<14x30xf32>
    %320 = arith.mulf %319, %237 : vector<14x30xf32>
    %c73 = arith.constant 73 : index
    %321 = memref.load %arg2[%c73] : memref<81xf32, #tpu.memory_space<smem>>
    %322 = vector.broadcast %321 : f32 to vector<14x30xf32>
    %323 = arith.mulf %322, %238 : vector<14x30xf32>
    %324 = arith.addf %320, %323 : vector<14x30xf32>
    %c74 = arith.constant 74 : index
    %325 = memref.load %arg2[%c74] : memref<81xf32, #tpu.memory_space<smem>>
    %326 = vector.broadcast %325 : f32 to vector<14x30xf32>
    %327 = arith.mulf %326, %239 : vector<14x30xf32>
    %328 = arith.addf %324, %327 : vector<14x30xf32>
    %c75 = arith.constant 75 : index
    %329 = memref.load %arg2[%c75] : memref<81xf32, #tpu.memory_space<smem>>
    %330 = vector.broadcast %329 : f32 to vector<14x30xf32>
    %331 = arith.mulf %330, %240 : vector<14x30xf32>
    %c76 = arith.constant 76 : index
    %332 = memref.load %arg2[%c76] : memref<81xf32, #tpu.memory_space<smem>>
    %333 = vector.broadcast %332 : f32 to vector<14x30xf32>
    %334 = arith.mulf %333, %241 : vector<14x30xf32>
    %335 = arith.addf %331, %334 : vector<14x30xf32>
    %c77 = arith.constant 77 : index
    %336 = memref.load %arg2[%c77] : memref<81xf32, #tpu.memory_space<smem>>
    %337 = vector.broadcast %336 : f32 to vector<14x30xf32>
    %338 = arith.mulf %337, %242 : vector<14x30xf32>
    %339 = arith.addf %335, %338 : vector<14x30xf32>
    %c78 = arith.constant 78 : index
    %340 = memref.load %arg2[%c78] : memref<81xf32, #tpu.memory_space<smem>>
    %341 = vector.broadcast %340 : f32 to vector<14x30xf32>
    %342 = arith.mulf %341, %243 : vector<14x30xf32>
    %c79 = arith.constant 79 : index
    %343 = memref.load %arg2[%c79] : memref<81xf32, #tpu.memory_space<smem>>
    %344 = vector.broadcast %343 : f32 to vector<14x30xf32>
    %345 = arith.mulf %344, %244 : vector<14x30xf32>
    %346 = arith.addf %342, %345 : vector<14x30xf32>
    %c80 = arith.constant 80 : index
    %347 = memref.load %arg2[%c80] : memref<81xf32, #tpu.memory_space<smem>>
    %348 = vector.broadcast %347 : f32 to vector<14x30xf32>
    %349 = arith.mulf %348, %245 : vector<14x30xf32>
    %350 = arith.addf %346, %349 : vector<14x30xf32>
    %351 = arith.addf %328, %339 : vector<14x30xf32>
    %352 = arith.addf %351, %350 : vector<14x30xf32>
    %353 = arith.addf %234, %352 : vector<14x30xf32>
    %c0_9 = arith.constant 0 : index
    %354 = memref.load %arg3[%c0_9] : memref<3xf32, #tpu.memory_space<smem>>
    %355 = vector.broadcast %354 : f32 to vector<14x30xf32>
    %356 = arith.addf %281, %355 : vector<14x30xf32>
    %cst = arith.constant 0.000000e+00 : f32
    %357 = vector.broadcast %cst : f32 to vector<14x30xf32>
    %358 = arith.maximumf %356, %357 : vector<14x30xf32>
    %c1_10 = arith.constant 1 : index
    %359 = memref.load %arg3[%c1_10] : memref<3xf32, #tpu.memory_space<smem>>
    %360 = vector.broadcast %359 : f32 to vector<14x30xf32>
    %361 = arith.addf %317, %360 : vector<14x30xf32>
    %cst_11 = arith.constant 0.000000e+00 : f32
    %362 = vector.broadcast %cst_11 : f32 to vector<14x30xf32>
    %363 = arith.maximumf %361, %362 : vector<14x30xf32>
    %c2_12 = arith.constant 2 : index
    %364 = memref.load %arg3[%c2_12] : memref<3xf32, #tpu.memory_space<smem>>
    %365 = vector.broadcast %364 : f32 to vector<14x30xf32>
    %366 = arith.addf %353, %365 : vector<14x30xf32>
    %cst_13 = arith.constant 0.000000e+00 : f32
    %367 = vector.broadcast %cst_13 : f32 to vector<14x30xf32>
    %368 = arith.maximumf %366, %367 : vector<14x30xf32>
    %cst_14 = arith.constant 0.000000e+00 : f32
    %369 = vector.broadcast %cst_14 : f32 to vector<48x32xf32>
    %c0_15 = arith.constant 0 : index
    %c0_16 = arith.constant 0 : index
    %370 = vector.load %arg9[%c0_15, %c0_16] : memref<48x32xf32, #tpu.memory_space<vmem>>, vector<48x32xf32>
    tpu.vector_store %arg9[%c0_15, %c0_16], %369 {strides = array<i32>} : memref<48x32xf32, #tpu.memory_space<vmem>>, vector<48x32xf32>,
    %c0_17 = arith.constant 0 : index
    %c0_18 = arith.constant 0 : index
    %371 = vector.load %arg1[%c0_17, %c0_18] : memref<30x32xf32, #tpu.memory_space<vmem>>, vector<30x32xf32>
    %cst_19 = arith.constant dense<0.000000e+00> : vector<14x32xf32>
    %372 = tpu.matmul %358, %371, %cst_19 {dimension_numbers = #tpu.dot_dimension_numbers<[1], [0], [0], [1], [0, 0, 1, 1], [], []>, precision = #tpu.contract_precision<fp32>} : vector<14x30xf32>, vector<30x32xf32>, vector<14x32xf32> -> vector<14x32xf32>
    %c1_20 = arith.constant 1 : index
    %c0_21 = arith.constant 0 : index
    %373 = vector.load %arg9[%c1_20, %c0_21] : memref<48x32xf32, #tpu.memory_space<vmem>>, vector<14x32xf32>
    tpu.vector_store %arg9[%c1_20, %c0_21], %372 {strides = array<i32>} : memref<48x32xf32, #tpu.memory_space<vmem>>, vector<14x32xf32>,
    %cst_22 = arith.constant dense<0.000000e+00> : vector<14x32xf32>
    %374 = tpu.matmul %363, %371, %cst_22 {dimension_numbers = #tpu.dot_dimension_numbers<[1], [0], [0], [1], [0, 0, 1, 1], [], []>, precision = #tpu.contract_precision<fp32>} : vector<14x30xf32>, vector<30x32xf32>, vector<14x32xf32> -> vector<14x32xf32>
    %c17_23 = arith.constant 17 : index
    %c0_24 = arith.constant 0 : index
    %375 = vector.load %arg9[%c17_23, %c0_24] : memref<48x32xf32, #tpu.memory_space<vmem>>, vector<14x32xf32>
    tpu.vector_store %arg9[%c17_23, %c0_24], %374 {strides = array<i32>} : memref<48x32xf32, #tpu.memory_space<vmem>>, vector<14x32xf32>,
    %cst_25 = arith.constant dense<0.000000e+00> : vector<14x32xf32>
    %376 = tpu.matmul %368, %371, %cst_25 {dimension_numbers = #tpu.dot_dimension_numbers<[1], [0], [0], [1], [0, 0, 1, 1], [], []>, precision = #tpu.contract_precision<fp32>} : vector<14x30xf32>, vector<30x32xf32>, vector<14x32xf32> -> vector<14x32xf32>
    %c33_26 = arith.constant 33 : index
    %c0_27 = arith.constant 0 : index
    %377 = vector.load %arg9[%c33_26, %c0_27] : memref<48x32xf32, #tpu.memory_space<vmem>>, vector<14x32xf32>
    tpu.vector_store %arg9[%c33_26, %c0_27], %376 {strides = array<i32>} : memref<48x32xf32, #tpu.memory_space<vmem>>, vector<14x32xf32>,
    %c0_28 = arith.constant 0 : index
    %c0_29 = arith.constant 0 : index
    %378 = tpu.strided_load %arg9[%c0_28, %c0_29] {strides = array<i32: 4, 1>} : memref<48x32xf32, #tpu.memory_space<vmem>>, vector<4x32xf32>
    %c1_30 = arith.constant 1 : index
    %c0_31 = arith.constant 0 : index
    %379 = tpu.strided_load %arg9[%c1_30, %c0_31] {strides = array<i32: 4, 1>} : memref<48x32xf32, #tpu.memory_space<vmem>>, vector<4x32xf32>
    %c16_32 = arith.constant 16 : index
    %c0_33 = arith.constant 0 : index
    %380 = tpu.strided_load %arg9[%c16_32, %c0_33] {strides = array<i32: 4, 1>} : memref<48x32xf32, #tpu.memory_space<vmem>>, vector<4x32xf32>
    %c17_34 = arith.constant 17 : index
    %c0_35 = arith.constant 0 : index
    %381 = tpu.strided_load %arg9[%c17_34, %c0_35] {strides = array<i32: 4, 1>} : memref<48x32xf32, #tpu.memory_space<vmem>>, vector<4x32xf32>
    %c32_36 = arith.constant 32 : index
    %c0_37 = arith.constant 0 : index
    %382 = tpu.strided_load %arg9[%c32_36, %c0_37] {strides = array<i32: 4, 1>} : memref<48x32xf32, #tpu.memory_space<vmem>>, vector<4x32xf32>
    %c33_38 = arith.constant 33 : index
    %c0_39 = arith.constant 0 : index
    %383 = tpu.strided_load %arg9[%c33_38, %c0_39] {strides = array<i32: 4, 1>} : memref<48x32xf32, #tpu.memory_space<vmem>>, vector<4x32xf32>
    %c0_40 = arith.constant 0 : index
    %384 = memref.load %arg4[%c0_40] : memref<36xf32, #tpu.memory_space<smem>>
    %385 = vector.extract_strided_slice %378 {offsets = [0, 0], sizes = [4, 16], strides = [1, 1]} : vector<4x32xf32> to vector<4x16xf32>
    %386 = vector.broadcast %384 : f32 to vector<4x16xf32>
    %387 = arith.mulf %386, %385 : vector<4x16xf32>
    %c1_41 = arith.constant 1 : index
    %388 = memref.load %arg4[%c1_41] : memref<36xf32, #tpu.memory_space<smem>>
    %389 = vector.extract_strided_slice %378 {offsets = [0, 16], sizes = [4, 16], strides = [1, 1]} : vector<4x32xf32> to vector<4x16xf32>
    %390 = vector.broadcast %388 : f32 to vector<4x16xf32>
    %391 = arith.mulf %390, %389 : vector<4x16xf32>
    %392 = arith.addf %387, %391 : vector<4x16xf32>
    %c2_42 = arith.constant 2 : index
    %393 = memref.load %arg4[%c2_42] : memref<36xf32, #tpu.memory_space<smem>>
    %394 = vector.extract_strided_slice %379 {offsets = [0, 0], sizes = [4, 16], strides = [1, 1]} : vector<4x32xf32> to vector<4x16xf32>
    %395 = vector.broadcast %393 : f32 to vector<4x16xf32>
    %396 = arith.mulf %395, %394 : vector<4x16xf32>
    %c3_43 = arith.constant 3 : index
    %397 = memref.load %arg4[%c3_43] : memref<36xf32, #tpu.memory_space<smem>>
    %398 = vector.extract_strided_slice %379 {offsets = [0, 16], sizes = [4, 16], strides = [1, 1]} : vector<4x32xf32> to vector<4x16xf32>
    %399 = vector.broadcast %397 : f32 to vector<4x16xf32>
    %400 = arith.mulf %399, %398 : vector<4x16xf32>
    %401 = arith.addf %396, %400 : vector<4x16xf32>
    %402 = arith.addf %392, %401 : vector<4x16xf32>
    %c4_44 = arith.constant 4 : index
    %403 = memref.load %arg4[%c4_44] : memref<36xf32, #tpu.memory_space<smem>>
    %404 = vector.extract_strided_slice %380 {offsets = [0, 0], sizes = [4, 16], strides = [1, 1]} : vector<4x32xf32> to vector<4x16xf32>
    %405 = vector.broadcast %403 : f32 to vector<4x16xf32>
    %406 = arith.mulf %405, %404 : vector<4x16xf32>
    %c5_45 = arith.constant 5 : index
    %407 = memref.load %arg4[%c5_45] : memref<36xf32, #tpu.memory_space<smem>>
    %408 = vector.extract_strided_slice %380 {offsets = [0, 16], sizes = [4, 16], strides = [1, 1]} : vector<4x32xf32> to vector<4x16xf32>
    %409 = vector.broadcast %407 : f32 to vector<4x16xf32>
    %410 = arith.mulf %409, %408 : vector<4x16xf32>
    %411 = arith.addf %406, %410 : vector<4x16xf32>
    %c6_46 = arith.constant 6 : index
    %412 = memref.load %arg4[%c6_46] : memref<36xf32, #tpu.memory_space<smem>>
    %413 = vector.extract_strided_slice %381 {offsets = [0, 0], sizes = [4, 16], strides = [1, 1]} : vector<4x32xf32> to vector<4x16xf32>
    %414 = vector.broadcast %412 : f32 to vector<4x16xf32>
    %415 = arith.mulf %414, %413 : vector<4x16xf32>
    %c7_47 = arith.constant 7 : index
    %416 = memref.load %arg4[%c7_47] : memref<36xf32, #tpu.memory_space<smem>>
    %417 = vector.extract_strided_slice %381 {offsets = [0, 16], sizes = [4, 16], strides = [1, 1]} : vector<4x32xf32> to vector<4x16xf32>
    %418 = vector.broadcast %416 : f32 to vector<4x16xf32>
    %419 = arith.mulf %418, %417 : vector<4x16xf32>
    %420 = arith.addf %415, %419 : vector<4x16xf32>
    %421 = arith.addf %411, %420 : vector<4x16xf32>
    %422 = arith.addf %402, %421 : vector<4x16xf32>
    %c8_48 = arith.constant 8 : index
    %423 = memref.load %arg4[%c8_48] : memref<36xf32, #tpu.memory_space<smem>>
    %424 = vector.extract_strided_slice %382 {offsets = [0, 0], sizes = [4, 16], strides = [1, 1]} : vector<4x32xf32> to vector<4x16xf32>
    %425 = vector.broadcast %423 : f32 to vector<4x16xf32>
    %426 = arith.mulf %425, %424 : vector<4x16xf32>
    %c9_49 = arith.constant 9 : index
    %427 = memref.load %arg4[%c9_49] : memref<36xf32, #tpu.memory_space<smem>>
    %428 = vector.extract_strided_slice %382 {offsets = [0, 16], sizes = [4, 16], strides = [1, 1]} : vector<4x32xf32> to vector<4x16xf32>
    %429 = vector.broadcast %427 : f32 to vector<4x16xf32>
    %430 = arith.mulf %429, %428 : vector<4x16xf32>
    %431 = arith.addf %426, %430 : vector<4x16xf32>
    %c10_50 = arith.constant 10 : index
    %432 = memref.load %arg4[%c10_50] : memref<36xf32, #tpu.memory_space<smem>>
    %433 = vector.extract_strided_slice %383 {offsets = [0, 0], sizes = [4, 16], strides = [1, 1]} : vector<4x32xf32> to vector<4x16xf32>
    %434 = vector.broadcast %432 : f32 to vector<4x16xf32>
    %435 = arith.mulf %434, %433 : vector<4x16xf32>
    %c11_51 = arith.constant 11 : index
    %436 = memref.load %arg4[%c11_51] : memref<36xf32, #tpu.memory_space<smem>>
    %437 = vector.extract_strided_slice %383 {offsets = [0, 16], sizes = [4, 16], strides = [1, 1]} : vector<4x32xf32> to vector<4x16xf32>
    %438 = vector.broadcast %436 : f32 to vector<4x16xf32>
    %439 = arith.mulf %438, %437 : vector<4x16xf32>
    %440 = arith.addf %435, %439 : vector<4x16xf32>
    %441 = arith.addf %431, %440 : vector<4x16xf32>
    %442 = arith.addf %422, %441 : vector<4x16xf32>
    %c0_52 = arith.constant 0 : index
    %443 = memref.load %arg5[%c0_52] : memref<3xf32, #tpu.memory_space<smem>>
    %444 = vector.broadcast %443 : f32 to vector<4x16xf32>
    %445 = arith.addf %442, %444 : vector<4x16xf32>
    %c12_53 = arith.constant 12 : index
    %446 = memref.load %arg4[%c12_53] : memref<36xf32, #tpu.memory_space<smem>>
    %447 = vector.extract_strided_slice %378 {offsets = [0, 0], sizes = [4, 16], strides = [1, 1]} : vector<4x32xf32> to vector<4x16xf32>
    %448 = vector.broadcast %446 : f32 to vector<4x16xf32>
    %449 = arith.mulf %448, %447 : vector<4x16xf32>
    %c13_54 = arith.constant 13 : index
    %450 = memref.load %arg4[%c13_54] : memref<36xf32, #tpu.memory_space<smem>>
    %451 = vector.extract_strided_slice %378 {offsets = [0, 16], sizes = [4, 16], strides = [1, 1]} : vector<4x32xf32> to vector<4x16xf32>
    %452 = vector.broadcast %450 : f32 to vector<4x16xf32>
    %453 = arith.mulf %452, %451 : vector<4x16xf32>
    %454 = arith.addf %449, %453 : vector<4x16xf32>
    %c14_55 = arith.constant 14 : index
    %455 = memref.load %arg4[%c14_55] : memref<36xf32, #tpu.memory_space<smem>>
    %456 = vector.extract_strided_slice %379 {offsets = [0, 0], sizes = [4, 16], strides = [1, 1]} : vector<4x32xf32> to vector<4x16xf32>
    %457 = vector.broadcast %455 : f32 to vector<4x16xf32>
    %458 = arith.mulf %457, %456 : vector<4x16xf32>
    %c15_56 = arith.constant 15 : index
    %459 = memref.load %arg4[%c15_56] : memref<36xf32, #tpu.memory_space<smem>>
    %460 = vector.extract_strided_slice %379 {offsets = [0, 16], sizes = [4, 16], strides = [1, 1]} : vector<4x32xf32> to vector<4x16xf32>
    %461 = vector.broadcast %459 : f32 to vector<4x16xf32>
    %462 = arith.mulf %461, %460 : vector<4x16xf32>
    %463 = arith.addf %458, %462 : vector<4x16xf32>
    %464 = arith.addf %454, %463 : vector<4x16xf32>
    %c16_57 = arith.constant 16 : index
    %465 = memref.load %arg4[%c16_57] : memref<36xf32, #tpu.memory_space<smem>>
    %466 = vector.extract_strided_slice %380 {offsets = [0, 0], sizes = [4, 16], strides = [1, 1]} : vector<4x32xf32> to vector<4x16xf32>
    %467 = vector.broadcast %465 : f32 to vector<4x16xf32>
    %468 = arith.mulf %467, %466 : vector<4x16xf32>
    %c17_58 = arith.constant 17 : index
    %469 = memref.load %arg4[%c17_58] : memref<36xf32, #tpu.memory_space<smem>>
    %470 = vector.extract_strided_slice %380 {offsets = [0, 16], sizes = [4, 16], strides = [1, 1]} : vector<4x32xf32> to vector<4x16xf32>
    %471 = vector.broadcast %469 : f32 to vector<4x16xf32>
    %472 = arith.mulf %471, %470 : vector<4x16xf32>
    %473 = arith.addf %468, %472 : vector<4x16xf32>
    %c18_59 = arith.constant 18 : index
    %474 = memref.load %arg4[%c18_59] : memref<36xf32, #tpu.memory_space<smem>>
    %475 = vector.extract_strided_slice %381 {offsets = [0, 0], sizes = [4, 16], strides = [1, 1]} : vector<4x32xf32> to vector<4x16xf32>
    %476 = vector.broadcast %474 : f32 to vector<4x16xf32>
    %477 = arith.mulf %476, %475 : vector<4x16xf32>
    %c19_60 = arith.constant 19 : index
    %478 = memref.load %arg4[%c19_60] : memref<36xf32, #tpu.memory_space<smem>>
    %479 = vector.extract_strided_slice %381 {offsets = [0, 16], sizes = [4, 16], strides = [1, 1]} : vector<4x32xf32> to vector<4x16xf32>
    %480 = vector.broadcast %478 : f32 to vector<4x16xf32>
    %481 = arith.mulf %480, %479 : vector<4x16xf32>
    %482 = arith.addf %477, %481 : vector<4x16xf32>
    %483 = arith.addf %473, %482 : vector<4x16xf32>
    %484 = arith.addf %464, %483 : vector<4x16xf32>
    %c20_61 = arith.constant 20 : index
    %485 = memref.load %arg4[%c20_61] : memref<36xf32, #tpu.memory_space<smem>>
    %486 = vector.extract_strided_slice %382 {offsets = [0, 0], sizes = [4, 16], strides = [1, 1]} : vector<4x32xf32> to vector<4x16xf32>
    %487 = vector.broadcast %485 : f32 to vector<4x16xf32>
    %488 = arith.mulf %487, %486 : vector<4x16xf32>
    %c21_62 = arith.constant 21 : index
    %489 = memref.load %arg4[%c21_62] : memref<36xf32, #tpu.memory_space<smem>>
    %490 = vector.extract_strided_slice %382 {offsets = [0, 16], sizes = [4, 16], strides = [1, 1]} : vector<4x32xf32> to vector<4x16xf32>
    %491 = vector.broadcast %489 : f32 to vector<4x16xf32>
    %492 = arith.mulf %491, %490 : vector<4x16xf32>
    %493 = arith.addf %488, %492 : vector<4x16xf32>
    %c22_63 = arith.constant 22 : index
    %494 = memref.load %arg4[%c22_63] : memref<36xf32, #tpu.memory_space<smem>>
    %495 = vector.extract_strided_slice %383 {offsets = [0, 0], sizes = [4, 16], strides = [1, 1]} : vector<4x32xf32> to vector<4x16xf32>
    %496 = vector.broadcast %494 : f32 to vector<4x16xf32>
    %497 = arith.mulf %496, %495 : vector<4x16xf32>
    %c23_64 = arith.constant 23 : index
    %498 = memref.load %arg4[%c23_64] : memref<36xf32, #tpu.memory_space<smem>>
    %499 = vector.extract_strided_slice %383 {offsets = [0, 16], sizes = [4, 16], strides = [1, 1]} : vector<4x32xf32> to vector<4x16xf32>
    %500 = vector.broadcast %498 : f32 to vector<4x16xf32>
    %501 = arith.mulf %500, %499 : vector<4x16xf32>
    %502 = arith.addf %497, %501 : vector<4x16xf32>
    %503 = arith.addf %493, %502 : vector<4x16xf32>
    %504 = arith.addf %484, %503 : vector<4x16xf32>
    %c1_65 = arith.constant 1 : index
    %505 = memref.load %arg5[%c1_65] : memref<3xf32, #tpu.memory_space<smem>>
    %506 = vector.broadcast %505 : f32 to vector<4x16xf32>
    %507 = arith.addf %504, %506 : vector<4x16xf32>
    %c24_66 = arith.constant 24 : index
    %508 = memref.load %arg4[%c24_66] : memref<36xf32, #tpu.memory_space<smem>>
    %509 = vector.extract_strided_slice %378 {offsets = [0, 0], sizes = [4, 16], strides = [1, 1]} : vector<4x32xf32> to vector<4x16xf32>
    %510 = vector.broadcast %508 : f32 to vector<4x16xf32>
    %511 = arith.mulf %510, %509 : vector<4x16xf32>
    %c25_67 = arith.constant 25 : index
    %512 = memref.load %arg4[%c25_67] : memref<36xf32, #tpu.memory_space<smem>>
    %513 = vector.extract_strided_slice %378 {offsets = [0, 16], sizes = [4, 16], strides = [1, 1]} : vector<4x32xf32> to vector<4x16xf32>
    %514 = vector.broadcast %512 : f32 to vector<4x16xf32>
    %515 = arith.mulf %514, %513 : vector<4x16xf32>
    %516 = arith.addf %511, %515 : vector<4x16xf32>
    %c26_68 = arith.constant 26 : index
    %517 = memref.load %arg4[%c26_68] : memref<36xf32, #tpu.memory_space<smem>>
    %518 = vector.extract_strided_slice %379 {offsets = [0, 0], sizes = [4, 16], strides = [1, 1]} : vector<4x32xf32> to vector<4x16xf32>
    %519 = vector.broadcast %517 : f32 to vector<4x16xf32>
    %520 = arith.mulf %519, %518 : vector<4x16xf32>
    %c27_69 = arith.constant 27 : index
    %521 = memref.load %arg4[%c27_69] : memref<36xf32, #tpu.memory_space<smem>>
    %522 = vector.extract_strided_slice %379 {offsets = [0, 16], sizes = [4, 16], strides = [1, 1]} : vector<4x32xf32> to vector<4x16xf32>
    %523 = vector.broadcast %521 : f32 to vector<4x16xf32>
    %524 = arith.mulf %523, %522 : vector<4x16xf32>
    %525 = arith.addf %520, %524 : vector<4x16xf32>
    %526 = arith.addf %516, %525 : vector<4x16xf32>
    %c28_70 = arith.constant 28 : index
    %527 = memref.load %arg4[%c28_70] : memref<36xf32, #tpu.memory_space<smem>>
    %528 = vector.extract_strided_slice %380 {offsets = [0, 0], sizes = [4, 16], strides = [1, 1]} : vector<4x32xf32> to vector<4x16xf32>
    %529 = vector.broadcast %527 : f32 to vector<4x16xf32>
    %530 = arith.mulf %529, %528 : vector<4x16xf32>
    %c29_71 = arith.constant 29 : index
    %531 = memref.load %arg4[%c29_71] : memref<36xf32, #tpu.memory_space<smem>>
    %532 = vector.extract_strided_slice %380 {offsets = [0, 16], sizes = [4, 16], strides = [1, 1]} : vector<4x32xf32> to vector<4x16xf32>
    %533 = vector.broadcast %531 : f32 to vector<4x16xf32>
    %534 = arith.mulf %533, %532 : vector<4x16xf32>
    %535 = arith.addf %530, %534 : vector<4x16xf32>
    %c30_72 = arith.constant 30 : index
    %536 = memref.load %arg4[%c30_72] : memref<36xf32, #tpu.memory_space<smem>>
    %537 = vector.extract_strided_slice %381 {offsets = [0, 0], sizes = [4, 16], strides = [1, 1]} : vector<4x32xf32> to vector<4x16xf32>
    %538 = vector.broadcast %536 : f32 to vector<4x16xf32>
    %539 = arith.mulf %538, %537 : vector<4x16xf32>
    %c31_73 = arith.constant 31 : index
    %540 = memref.load %arg4[%c31_73] : memref<36xf32, #tpu.memory_space<smem>>
    %541 = vector.extract_strided_slice %381 {offsets = [0, 16], sizes = [4, 16], strides = [1, 1]} : vector<4x32xf32> to vector<4x16xf32>
    %542 = vector.broadcast %540 : f32 to vector<4x16xf32>
    %543 = arith.mulf %542, %541 : vector<4x16xf32>
    %544 = arith.addf %539, %543 : vector<4x16xf32>
    %545 = arith.addf %535, %544 : vector<4x16xf32>
    %546 = arith.addf %526, %545 : vector<4x16xf32>
    %c32_74 = arith.constant 32 : index
    %547 = memref.load %arg4[%c32_74] : memref<36xf32, #tpu.memory_space<smem>>
    %548 = vector.extract_strided_slice %382 {offsets = [0, 0], sizes = [4, 16], strides = [1, 1]} : vector<4x32xf32> to vector<4x16xf32>
    %549 = vector.broadcast %547 : f32 to vector<4x16xf32>
    %550 = arith.mulf %549, %548 : vector<4x16xf32>
    %c33_75 = arith.constant 33 : index
    %551 = memref.load %arg4[%c33_75] : memref<36xf32, #tpu.memory_space<smem>>
    %552 = vector.extract_strided_slice %382 {offsets = [0, 16], sizes = [4, 16], strides = [1, 1]} : vector<4x32xf32> to vector<4x16xf32>
    %553 = vector.broadcast %551 : f32 to vector<4x16xf32>
    %554 = arith.mulf %553, %552 : vector<4x16xf32>
    %555 = arith.addf %550, %554 : vector<4x16xf32>
    %c34_76 = arith.constant 34 : index
    %556 = memref.load %arg4[%c34_76] : memref<36xf32, #tpu.memory_space<smem>>
    %557 = vector.extract_strided_slice %383 {offsets = [0, 0], sizes = [4, 16], strides = [1, 1]} : vector<4x32xf32> to vector<4x16xf32>
    %558 = vector.broadcast %556 : f32 to vector<4x16xf32>
    %559 = arith.mulf %558, %557 : vector<4x16xf32>
    %c35_77 = arith.constant 35 : index
    %560 = memref.load %arg4[%c35_77] : memref<36xf32, #tpu.memory_space<smem>>
    %561 = vector.extract_strided_slice %383 {offsets = [0, 16], sizes = [4, 16], strides = [1, 1]} : vector<4x32xf32> to vector<4x16xf32>
    %562 = vector.broadcast %560 : f32 to vector<4x16xf32>
    %563 = arith.mulf %562, %561 : vector<4x16xf32>
    %564 = arith.addf %559, %563 : vector<4x16xf32>
    %565 = arith.addf %555, %564 : vector<4x16xf32>
    %566 = arith.addf %546, %565 : vector<4x16xf32>
    %c2_78 = arith.constant 2 : index
    %567 = memref.load %arg5[%c2_78] : memref<3xf32, #tpu.memory_space<smem>>
    %568 = vector.broadcast %567 : f32 to vector<4x16xf32>
    %569 = arith.addf %566, %568 : vector<4x16xf32>
    %c0_79 = arith.constant 0 : index
    %570 = memref.load %arg6[%c0_79] : memref<9xf32, #tpu.memory_space<smem>>
    %571 = vector.broadcast %570 : f32 to vector<4x16xf32>
    %572 = arith.mulf %571, %445 : vector<4x16xf32>
    %c1_80 = arith.constant 1 : index
    %573 = memref.load %arg6[%c1_80] : memref<9xf32, #tpu.memory_space<smem>>
    %574 = vector.broadcast %573 : f32 to vector<4x16xf32>
    %575 = arith.mulf %574, %507 : vector<4x16xf32>
    %576 = arith.addf %572, %575 : vector<4x16xf32>
    %c2_81 = arith.constant 2 : index
    %577 = memref.load %arg6[%c2_81] : memref<9xf32, #tpu.memory_space<smem>>
    %578 = vector.broadcast %577 : f32 to vector<4x16xf32>
    %579 = arith.mulf %578, %569 : vector<4x16xf32>
    %580 = arith.addf %576, %579 : vector<4x16xf32>
    %c0_82 = arith.constant 0 : index
    %581 = memref.load %arg7[%c0_82] : memref<3xf32, #tpu.memory_space<smem>>
    %582 = vector.broadcast %581 : f32 to vector<4x16xf32>
    %583 = arith.addf %580, %582 : vector<4x16xf32>
    %c0_83 = arith.constant 0 : index
    %584 = memref.load %arg7[%c0_83] : memref<3xf32, #tpu.memory_space<smem>>
    %585 = vector.broadcast %584 : f32 to vector<6x12xf32>
    %c0_84 = arith.constant 0 : index
    %c0_85 = arith.constant 0 : index
    %c0_86 = arith.constant 0 : index
    %586 = vector.load %arg8[%c0_84, %c0_85, %c0_86] : memref<6x6x12xf32, #tpu.memory_space<vmem>>, vector<1x6x12xf32>
    %587 = vector.shape_cast %586 : vector<1x6x12xf32> to vector<6x12xf32>
    %588 = vector.shape_cast %585 : vector<6x12xf32> to vector<1x6x12xf32>
    tpu.vector_store %arg8[%c0_84, %c0_85, %c0_86], %588 {strides = array<i32>} : memref<6x6x12xf32, #tpu.memory_space<vmem>>, vector<1x6x12xf32>,
    %589 = vector.extract_strided_slice %583 {offsets = [0, 0], sizes = [4, 8], strides = [1, 1]} : vector<4x16xf32> to vector<4x8xf32>
    %c0_87 = arith.constant 0 : index
    %c1_88 = arith.constant 1 : index
    %c2_89 = arith.constant 2 : index
    %590 = vector.load %arg8[%c0_87, %c1_88, %c2_89] : memref<6x6x12xf32, #tpu.memory_space<vmem>>, vector<1x4x8xf32>
    %591 = vector.shape_cast %590 : vector<1x4x8xf32> to vector<4x8xf32>
    %592 = vector.shape_cast %589 : vector<4x8xf32> to vector<1x4x8xf32>
    tpu.vector_store %arg8[%c0_87, %c1_88, %c2_89], %592 {strides = array<i32>} : memref<6x6x12xf32, #tpu.memory_space<vmem>>, vector<1x4x8xf32>,
    %c3_90 = arith.constant 3 : index
    %c0_91 = arith.constant 0 : index
    %c0_92 = arith.constant 0 : index
    %593 = vector.load %arg8[%c3_90, %c0_91, %c0_92] : memref<6x6x12xf32, #tpu.memory_space<vmem>>, vector<1x6x12xf32>
    %594 = vector.shape_cast %593 : vector<1x6x12xf32> to vector<6x12xf32>
    %595 = vector.shape_cast %585 : vector<6x12xf32> to vector<1x6x12xf32>
    tpu.vector_store %arg8[%c3_90, %c0_91, %c0_92], %595 {strides = array<i32>} : memref<6x6x12xf32, #tpu.memory_space<vmem>>, vector<1x6x12xf32>,
    %596 = vector.extract_strided_slice %583 {offsets = [0, 8], sizes = [4, 8], strides = [1, 1]} : vector<4x16xf32> to vector<4x8xf32>
    %c3_93 = arith.constant 3 : index
    %c1_94 = arith.constant 1 : index
    %c2_95 = arith.constant 2 : index
    %597 = vector.load %arg8[%c3_93, %c1_94, %c2_95] : memref<6x6x12xf32, #tpu.memory_space<vmem>>, vector<1x4x8xf32>
    %598 = vector.shape_cast %597 : vector<1x4x8xf32> to vector<4x8xf32>
    %599 = vector.shape_cast %596 : vector<4x8xf32> to vector<1x4x8xf32>
    tpu.vector_store %arg8[%c3_93, %c1_94, %c2_95], %599 {strides = array<i32>} : memref<6x6x12xf32, #tpu.memory_space<vmem>>, vector<1x4x8xf32>,
    %c3_96 = arith.constant 3 : index
    %600 = memref.load %arg6[%c3_96] : memref<9xf32, #tpu.memory_space<smem>>
    %601 = vector.broadcast %600 : f32 to vector<4x16xf32>
    %602 = arith.mulf %601, %445 : vector<4x16xf32>
    %c4_97 = arith.constant 4 : index
    %603 = memref.load %arg6[%c4_97] : memref<9xf32, #tpu.memory_space<smem>>
    %604 = vector.broadcast %603 : f32 to vector<4x16xf32>
    %605 = arith.mulf %604, %507 : vector<4x16xf32>
    %606 = arith.addf %602, %605 : vector<4x16xf32>
    %c5_98 = arith.constant 5 : index
    %607 = memref.load %arg6[%c5_98] : memref<9xf32, #tpu.memory_space<smem>>
    %608 = vector.broadcast %607 : f32 to vector<4x16xf32>
    %609 = arith.mulf %608, %569 : vector<4x16xf32>
    %610 = arith.addf %606, %609 : vector<4x16xf32>
    %c1_99 = arith.constant 1 : index
    %611 = memref.load %arg7[%c1_99] : memref<3xf32, #tpu.memory_space<smem>>
    %612 = vector.broadcast %611 : f32 to vector<4x16xf32>
    %613 = arith.addf %610, %612 : vector<4x16xf32>
    %c1_100 = arith.constant 1 : index
    %614 = memref.load %arg7[%c1_100] : memref<3xf32, #tpu.memory_space<smem>>
    %615 = vector.broadcast %614 : f32 to vector<6x12xf32>
    %c1_101 = arith.constant 1 : index
    %c0_102 = arith.constant 0 : index
    %c0_103 = arith.constant 0 : index
    %616 = vector.load %arg8[%c1_101, %c0_102, %c0_103] : memref<6x6x12xf32, #tpu.memory_space<vmem>>, vector<1x6x12xf32>
    %617 = vector.shape_cast %616 : vector<1x6x12xf32> to vector<6x12xf32>
    %618 = vector.shape_cast %615 : vector<6x12xf32> to vector<1x6x12xf32>
    tpu.vector_store %arg8[%c1_101, %c0_102, %c0_103], %618 {strides = array<i32>} : memref<6x6x12xf32, #tpu.memory_space<vmem>>, vector<1x6x12xf32>,
    %619 = vector.extract_strided_slice %613 {offsets = [0, 0], sizes = [4, 8], strides = [1, 1]} : vector<4x16xf32> to vector<4x8xf32>
    %c1_104 = arith.constant 1 : index
    %c1_105 = arith.constant 1 : index
    %c2_106 = arith.constant 2 : index
    %620 = vector.load %arg8[%c1_104, %c1_105, %c2_106] : memref<6x6x12xf32, #tpu.memory_space<vmem>>, vector<1x4x8xf32>
    %621 = vector.shape_cast %620 : vector<1x4x8xf32> to vector<4x8xf32>
    %622 = vector.shape_cast %619 : vector<4x8xf32> to vector<1x4x8xf32>
    tpu.vector_store %arg8[%c1_104, %c1_105, %c2_106], %622 {strides = array<i32>} : memref<6x6x12xf32, #tpu.memory_space<vmem>>, vector<1x4x8xf32>,
    %c4_107 = arith.constant 4 : index
    %c0_108 = arith.constant 0 : index
    %c0_109 = arith.constant 0 : index
    %623 = vector.load %arg8[%c4_107, %c0_108, %c0_109] : memref<6x6x12xf32, #tpu.memory_space<vmem>>, vector<1x6x12xf32>
    %624 = vector.shape_cast %623 : vector<1x6x12xf32> to vector<6x12xf32>
    %625 = vector.shape_cast %615 : vector<6x12xf32> to vector<1x6x12xf32>
    tpu.vector_store %arg8[%c4_107, %c0_108, %c0_109], %625 {strides = array<i32>} : memref<6x6x12xf32, #tpu.memory_space<vmem>>, vector<1x6x12xf32>,
    %626 = vector.extract_strided_slice %613 {offsets = [0, 8], sizes = [4, 8], strides = [1, 1]} : vector<4x16xf32> to vector<4x8xf32>
    %c4_110 = arith.constant 4 : index
    %c1_111 = arith.constant 1 : index
    %c2_112 = arith.constant 2 : index
    %627 = vector.load %arg8[%c4_110, %c1_111, %c2_112] : memref<6x6x12xf32, #tpu.memory_space<vmem>>, vector<1x4x8xf32>
    %628 = vector.shape_cast %627 : vector<1x4x8xf32> to vector<4x8xf32>
    %629 = vector.shape_cast %626 : vector<4x8xf32> to vector<1x4x8xf32>
    tpu.vector_store %arg8[%c4_110, %c1_111, %c2_112], %629 {strides = array<i32>} : memref<6x6x12xf32, #tpu.memory_space<vmem>>, vector<1x4x8xf32>,
    %c6_113 = arith.constant 6 : index
    %630 = memref.load %arg6[%c6_113] : memref<9xf32, #tpu.memory_space<smem>>
    %631 = vector.broadcast %630 : f32 to vector<4x16xf32>
    %632 = arith.mulf %631, %445 : vector<4x16xf32>
    %c7_114 = arith.constant 7 : index
    %633 = memref.load %arg6[%c7_114] : memref<9xf32, #tpu.memory_space<smem>>
    %634 = vector.broadcast %633 : f32 to vector<4x16xf32>
    %635 = arith.mulf %634, %507 : vector<4x16xf32>
    %636 = arith.addf %632, %635 : vector<4x16xf32>
    %c8_115 = arith.constant 8 : index
    %637 = memref.load %arg6[%c8_115] : memref<9xf32, #tpu.memory_space<smem>>
    %638 = vector.broadcast %637 : f32 to vector<4x16xf32>
    %639 = arith.mulf %638, %569 : vector<4x16xf32>
    %640 = arith.addf %636, %639 : vector<4x16xf32>
    %c2_116 = arith.constant 2 : index
    %641 = memref.load %arg7[%c2_116] : memref<3xf32, #tpu.memory_space<smem>>
    %642 = vector.broadcast %641 : f32 to vector<4x16xf32>
    %643 = arith.addf %640, %642 : vector<4x16xf32>
    %c2_117 = arith.constant 2 : index
    %644 = memref.load %arg7[%c2_117] : memref<3xf32, #tpu.memory_space<smem>>
    %645 = vector.broadcast %644 : f32 to vector<6x12xf32>
    %c2_118 = arith.constant 2 : index
    %c0_119 = arith.constant 0 : index
    %c0_120 = arith.constant 0 : index
    %646 = vector.load %arg8[%c2_118, %c0_119, %c0_120] : memref<6x6x12xf32, #tpu.memory_space<vmem>>, vector<1x6x12xf32>
    %647 = vector.shape_cast %646 : vector<1x6x12xf32> to vector<6x12xf32>
    %648 = vector.shape_cast %645 : vector<6x12xf32> to vector<1x6x12xf32>
    tpu.vector_store %arg8[%c2_118, %c0_119, %c0_120], %648 {strides = array<i32>} : memref<6x6x12xf32, #tpu.memory_space<vmem>>, vector<1x6x12xf32>,
    %649 = vector.extract_strided_slice %643 {offsets = [0, 0], sizes = [4, 8], strides = [1, 1]} : vector<4x16xf32> to vector<4x8xf32>
    %c2_121 = arith.constant 2 : index
    %c1_122 = arith.constant 1 : index
    %c2_123 = arith.constant 2 : index
    %650 = vector.load %arg8[%c2_121, %c1_122, %c2_123] : memref<6x6x12xf32, #tpu.memory_space<vmem>>, vector<1x4x8xf32>
    %651 = vector.shape_cast %650 : vector<1x4x8xf32> to vector<4x8xf32>
    %652 = vector.shape_cast %649 : vector<4x8xf32> to vector<1x4x8xf32>
    tpu.vector_store %arg8[%c2_121, %c1_122, %c2_123], %652 {strides = array<i32>} : memref<6x6x12xf32, #tpu.memory_space<vmem>>, vector<1x4x8xf32>,
    %c5_124 = arith.constant 5 : index
    %c0_125 = arith.constant 0 : index
    %c0_126 = arith.constant 0 : index
    %653 = vector.load %arg8[%c5_124, %c0_125, %c0_126] : memref<6x6x12xf32, #tpu.memory_space<vmem>>, vector<1x6x12xf32>
    %654 = vector.shape_cast %653 : vector<1x6x12xf32> to vector<6x12xf32>
    %655 = vector.shape_cast %645 : vector<6x12xf32> to vector<1x6x12xf32>
    tpu.vector_store %arg8[%c5_124, %c0_125, %c0_126], %655 {strides = array<i32>} : memref<6x6x12xf32, #tpu.memory_space<vmem>>, vector<1x6x12xf32>,
    %656 = vector.extract_strided_slice %643 {offsets = [0, 8], sizes = [4, 8], strides = [1, 1]} : vector<4x16xf32> to vector<4x8xf32>
    %c5_127 = arith.constant 5 : index
    %c1_128 = arith.constant 1 : index
    %c2_129 = arith.constant 2 : index
    %657 = vector.load %arg8[%c5_127, %c1_128, %c2_129] : memref<6x6x12xf32, #tpu.memory_space<vmem>>, vector<1x4x8xf32>
    %658 = vector.shape_cast %657 : vector<1x4x8xf32> to vector<4x8xf32>
    %659 = vector.shape_cast %656 : vector<4x8xf32> to vector<1x4x8xf32>
    tpu.vector_store %arg8[%c5_127, %c1_128, %c2_129], %659 {strides = array<i32>} : memref<6x6x12xf32, #tpu.memory_space<vmem>>, vector<1x4x8xf32>,
    return
  }
}

</mosaic_0001>

<bundles_post_ra>
// kernel: model_forward.1
= control target key start
LH: loop header
LB: loop body
LE: loop exit
PB: predicated region body
PF: predicated region fallthrough
CT: control target
= control target key end

     0   :  { %13 = vsyncpa [#allocation4], 0  ;;  %s3797_s0 = inlined_call_operand.vmem [shape: f32[3,16,32], index: 0, kind: input, shape index: {}]   ;;  %s3798_s1 = inlined_call_operand.vmem [shape: f32[30,32], index: 1, kind: input, shape index: {}]   ;;  %s3799_s2 = inlined_call_operand.vmem [shape: f32[81], index: 2, kind: input, shape index: {}]   ;;  %s3800_s3 = inlined_call_operand.vmem [shape: f32[3], index: 3, kind: input, shape index: {}]   ;;  %s3801_s4 = inlined_call_operand.vmem [shape: f32[36], index: 4, kind: input, shape index: {}]   ;;  %s3802_s5 = inlined_call_operand.vmem [shape: f32[3], index: 5, kind: input, shape index: {}]   ;;  %s3803_s6 = inlined_call_operand.vmem [shape: f32[9], index: 6, kind: input, shape index: {}]   ;;  %s3804_s7 = inlined_call_operand.vmem [shape: f32[3], index: 7, kind: input, shape index: {}]   ;;  %s3805_s8 = inlined_call_operand.vmem [shape: f32[6,6,12], index: 8, kind: output, shape index: {}]  }
   0x1   :  { %14 = vsyncpa [#allocation6], 0 }
   0x2   :  { %15 = vsyncpa [#allocation9], 0  ;;  %s35_s29 = sshll.u32 %s3800_s3, 4  ;;  %s36_s29 = int_to_ptr.vmem [resolvable:$true] %s35_s29 }
   0x3   :  { %16 = vsyncpa [#allocation12], 0  ;;  %s53_s10 = sshll.u32 %s3802_s5, 4  ;;  %s2426_s11 = smov [#allocation5]   ;;  %s54_s10 = int_to_ptr.vmem [resolvable:$true] %s53_s10 }
   0x4   :  { %38 = dma.vmem_to_smem %s36_s29, 16, %s2426_s11, [#allocation6]  }
   0x5   :  { %s2427_s12 = smov [#allocation8]   ;;  %s26_s15 = sshll.u32 %s3799_s2, 4  ;;  %s27_s15 = int_to_ptr.vmem [resolvable:$true] %s26_s15 }
   0x6   :  { %56 = dma.vmem_to_smem %s54_s10, 16, %s2427_s12, [#allocation9]  }
   0x7   :  { %s44_s3 = sshll.u32 %s3801_s4, 4  ;;  %s2428_s18 = smov [#allocation3]   ;;  %s45_s3 = int_to_ptr.vmem [resolvable:$true] %s44_s3 }
   0x8   :  { %29 = dma.vmem_to_smem %s27_s15, 16, %s2428_s18, [#allocation4]  }
   0x9   :  { %s2429_s19 = smov [#allocation7]   ;;  %s62_s21 = sshll.u32 %s3803_s6, 4  ;;  %s63_s21 = int_to_ptr.vmem [resolvable:$true] %s62_s21 }
   0xa   :  { %47 = dma.vmem_to_smem %s45_s3, 16, %s2429_s19, [#allocation6]  }
   0xb   :  { %s71_s24 = sshll.u32 %s3804_s7, 4  ;;  %s2430_s2 = smov [#allocation10]   ;;  %s72_s24 = int_to_ptr.vmem [resolvable:$true] %s71_s24 }
   0xc   :  { %65 = dma.vmem_to_smem %s63_s21, 16, %s2430_s2, [#allocation9]  }
   0xd   :  { %s2431_s25 = smov [#allocation11]  }
   0xe   :  { %74 = dma.vmem_to_smem %s72_s24, 16, %s2431_s25, [#allocation12]  }
   0xf   :  { %2418 = dma.done.wait [#allocation4], 16  }
  0x10   :  { %2419 = vsyncadd [#allocation4], 4294967280 }
  0x11   :  { %2420 = dma.done.wait [#allocation6], 32  }
  0x12   :  { %2421 = vsyncadd [#allocation6], 4294967264 }
  0x13   :  { %2422 = dma.done.wait [#allocation9], 32  }
  0x14   :  { %2423 = vsyncadd [#allocation9], 4294967264 }
  0x15   :  { %2424 = dma.done.wait [#allocation12], 16  }
  0x16   :  { %2425 = vsyncadd [#allocation12], 4294967280 }
  0x17   :  { %99 = sfence }
  0x18   :  { %s2178_s4 = sld [smem:[#allocation3 + $0x2]]  ;;  %v2504_v0 = vld [vmem:[%s3797_s0] sm:$0xff]  ;;  %s2432_s7 = smov 126   ;;  %v2513_v7 = vld [vmem:[%s3797_s0 + $0x8] sm:$0xff]  ;;  %v2527_v11 = vld [vmem:[%s3797_s0 + $0x18] sm:$0xff]  ;;  %vm200_vm0 = vcmask 1046528  }
  0x19   :  { %s2177_s6 = sld [smem:[#allocation3 + $0x1]]  ;;  %s2433_s9 = smov 127   ;;  %v2562_v23 = vld [vmem:[%s3797_s0 + $0x28] sm:$0xff]  ;;  %v2608_v42 = vld [vmem:[%s3797_s0 + $0x10] sm:$0xff]  ;;  %v2621_v47 = vld [vmem:[%s3797_s0 + $0x20] sm:$0xff]  ;;  %vm210_vm1 = vcmask 1045504  }
  0x1a   :  { %s2180_s26 = sld [smem:[#allocation3 + $0x4]]  ;;  %vm1177_vm2 = vcmask 244736   ;;  %vm1166_vm3 = vcmask 261120   ;;  %vm1404_vm4 = vcmask 259072   ;;  %vm2101_vm5 = vcmask 95232  }
  0x1b   :  { %s2516_s10 = sld [smem:[#allocation3 + $0xd]]  ;;  %vm2107_vm6 = vcmask 76816  }
  0x1c   :  { %s2181_s11 = sld [smem:[#allocation3 + $0x5]] }
  0x1d   :  { %s2530_s14 = sld [smem:[#allocation3 + $0xa]] }
  0x1e   :  { %v121_v1 = vstv %s2178_s4  ;;  %s2533_s15 = sld [smem:[#allocation3 + $0x7]] }
  0x1f   :  { %v122_v2 = vmul.f32 %v121_v1, %v2504_v0  ;;  %v107_v3 = vstv %s2177_s6  ;;  %v123_v8 = vmul.f32 %v121_v1, %v2513_v7  ;;  %s2535_s16 = sld [smem:[#allocation3 + $0xe]] }
  0x20   :  { %v108_v4 = vmul.f32 %v107_v3, %v2504_v0  ;;  %v139_v5 = vstv %s2180_s26  ;;  %v109_v9 = vmul.f32 %v107_v3, %v2513_v7  ;;  %s2543_s17 = sld [smem:[#allocation3 + $0x16]] }
  0x21   :  { %126 = vrot.lane.b32.xlu1 %v122_v2, %s2432_s7  ;;  %v140_v6 = vmul.f32 %v139_v5, %v2504_v0  ;;  %v141_v10 = vmul.f32 %v139_v5, %v2513_v7  ;;  %v486_v12 = vstv %s2516_s10  ;;  %s2547_s3 = sld [smem:[#allocation3 + $0x10]] }
  0x22   :  { %112 = vrot.lane.b32.xlu0 %v108_v4, %s2433_s9  ;;  %v153_v13 = vstv %s2181_s11  ;;  %v488_v14 = vmul.f32 %v2527_v11, %v486_v12  ;;  %s2550_s18 = sld [smem:[#allocation3 + $0x8]]  ;;  %v487_v44 = vmul.f32 %v2608_v42, %v486_v12 }
  0x23   :  { %144 = vrot.lane.b32.xlu2 %v140_v6, %s2433_s9  ;;  %v154_v15 = vmul.f32 %v153_v13, %v2504_v0  ;;  %v155_v16 = vmul.f32 %v153_v13, %v2513_v7  ;;  %v454_v17 = vstv %s2530_s14  ;;  %s2565_s20 = sld [smem:[#allocation3 + $0x11]] }
  0x24   :  { %v171_v18 = vstv %s2533_s15  ;;  %v456_v20 = vmul.f32 %v2527_v11, %v454_v17  ;;  %s2569_s21 = sld [smem:[#allocation3 + $0xb]]  ;;  %v455_v52 = vmul.f32 %v2608_v42, %v454_v17 }
  0x25   :  { %v500_v19 = vstv %s2535_s16  ;;  %v173_v21 = vmul.f32 %v171_v18, %v2513_v7  ;;  %s2572_s22 = sld [smem:[#allocation3 + $0x13]]  ;;  %v172_v46 = vmul.f32 %v171_v18, %v2504_v0 }
  0x26   :  { %v502_v22 = vmul.f32 %v2527_v11, %v500_v19  ;;  %v837_v24 = vstv %s2543_s17  ;;  %s2580_s23 = sld [smem:[#allocation3 + $0x19]]  ;;  %v501_v49 = vmul.f32 %v2608_v42, %v500_v19 }
  0x27   :  { %v518_v25 = vstv %s2547_s3  ;;  %v839_v27 = vmul.f32 %v2562_v23, %v837_v24  ;;  %s2584_s24 = sld [smem:[#allocation3 + $0x17]]  ;;  %v838_v50 = vmul.f32 %v2621_v47, %v837_v24 }
  0x28   :  { %v185_v26 = vstv %s2550_s18  ;;  %v520_v28 = vmul.f32 %v2527_v11, %v518_v25  ;;  %s2587_s2 = sld [smem:[#allocation3 + $0x14]]  ;;  %v519_v48 = vmul.f32 %v2608_v42, %v518_v25 }
  0x29   :  { %128 = vrot.lane.b32.xlu1 %v123_v8, %s2432_s7  ;;  %v187_v29 = vmul.f32 %v185_v26, %v2513_v7  ;;  %v532_v30 = vstv %s2565_s20  ;;  %s2597_s25 = sld [smem:[#allocation3 + $0x1a]]  ;;  %v186_v51 = vmul.f32 %v185_v26, %v2504_v0 }
  0x2a   :  { %114 = vrot.lane.b32.xlu0 %v109_v9, %s2433_s9  ;;  %v468_v31 = vstv %s2569_s21  ;;  %v534_v33 = vmul.f32 %v2527_v11, %v532_v30  ;;  %v533_v53 = vmul.f32 %v2608_v42, %v532_v30  ;;  %s2189_s28 = sld [smem:[#allocation3 + $0x1f]] }
  0x2b   :  { %146 = vrot.lane.b32.xlu2 %v141_v10, %s2433_s9  ;;  %v805_v32 = vstv %s2572_s22  ;;  %v470_v34 = vmul.f32 %v2527_v11, %v468_v31  ;;  %v469_v56 = vmul.f32 %v2608_v42, %v468_v31  ;;  %s2218_s29 = sld [smem:[#allocation3 + $0x28]] }
  0x2c   :  { %v807_v35 = vmul.f32 %v2562_v23, %v805_v32  ;;  %v869_v36 = vstv %s2580_s23  ;;  %v806_v58 = vmul.f32 %v2621_v47, %v805_v32  ;;  %s2190_s30 = sld [smem:[#allocation3 + $0x20]] }
  0x2d   :  { %v851_v37 = vstv %s2584_s24  ;;  %v871_v39 = vmul.f32 %v2562_v23, %v869_v36  ;;  %v870_v54 = vmul.f32 %v2621_v47, %v869_v36  ;;  %s2192_s10 = sld [smem:[#allocation3 + $0x22]] }
  0x2e   :  { %v819_v38 = vstv %s2587_s2  ;;  %v853_v40 = vmul.f32 %v2562_v23, %v851_v37  ;;  %v852_v55 = vmul.f32 %v2621_v47, %v851_v37  ;;  %s2219_s11 = sld [smem:[#allocation3 + $0x29]] }
  0x2f   :  { %v821_v41 = vmul.f32 %v2562_v23, %v819_v38  ;;  %v883_v43 = vstv %s2597_s25  ;;  %v820_v59 = vmul.f32 %v2621_v47, %v819_v38  ;;  %s2659_s12 = sld [smem:[#allocation3]] }
  0x30   :  { %v885_v45 = vmul.f32 %v2562_v23, %v883_v43  ;;  %v884_v57 = vmul.f32 %v2621_v47, %v883_v43  ;;  %v255_v60 = vstv %s2189_s28  ;;  %s2221_s13 = sld [smem:[#allocation3 + $0x2b]] }
  0x31   :  { %493 = vrot.lane.b32.xlu1 %v488_v14, %s2433_s9  ;;  %v602_v61 = vstv %s2218_s29  ;;  %v257_v63 = vmul.f32 %v255_v60, %v2513_v7  ;;  %v256_v1 = vmul.f32 %v255_v60, %v2504_v0  ;;  %s2179_s14 = sld [smem:[#allocation3 + $0x3]] }
  0x32   :  { %158 = vrot.lane.b32.xlu0 %v154_v15, %s2432_s7  ;;  %v603_v2 = vmul.f32 %v2608_v42, %v602_v61  ;;  %v269_v3 = vstv %s2190_s30  ;;  %v604_v6 = vmul.f32 %v2527_v11, %v602_v61  ;;  %s2247_s15 = sld [smem:[#allocation3 + $0x31]] }
  0x33   :  { %160 = vrot.lane.b32.xlu2 %v155_v16, %s2432_s7  ;;  %v270_v5 = vmul.f32 %v269_v3, %v2504_v0  ;;  %v271_v8 = vmul.f32 %v269_v3, %v2513_v7  ;;  %v287_v9 = vstv %s2192_s10  ;;  %s2675_s16 = sld [smem:[#allocation3 + $0x1c]] }
  0x34   :  { %v616_v10 = vstv %s2219_s11  ;;  %v289_v13 = vmul.f32 %v287_v9, %v2513_v7  ;;  %v288_v14 = vmul.f32 %v287_v9, %v2504_v0  ;;  %s2684_s17 = sld [smem:[#allocation3 + $0x23]] }
  0x35   :  { %v103_v15 = vstv %s2659_s12  ;;  %v617_v16 = vmul.f32 %v2608_v42, %v616_v10  ;;  %v618_v25 = vmul.f32 %v2527_v11, %v616_v10  ;;  %s2690_s3 = sld [smem:[#allocation3 + $0x25]] }
  0x36   :  { %v104_v17 = vmul.f32 %v103_v15, %v2504_v0  ;;  %v634_v18 = vstv %s2221_s13  ;;  %s2706_s18 = sld [smem:[#allocation3 + $0x2c]] }
  0x37   :  { %v635_v24 = vmul.f32 %v2608_v42, %v634_v18  ;;  %s2715_s19 = sld [smem:[#allocation3 + $0x32]] }
  0x38   :  { %s2736_s21 = sld [smem:[#allocation3 + $0x34]] }
  0x39   :  { %461 = vrot.lane.b32.xlu1 %v456_v20, %s2433_s9  ;;  %s2760_s24 = sld [smem:[#allocation3 + $0xc]] }
  0x3a   :  { %178 = vrot.lane.b32.xlu0 %v173_v21, %s2433_s9  ;;  %s2766_s4 = sld [smem:[#allocation3 + $0x9]] }
  0x3b   :  { %507 = vrot.lane.b32.xlu2 %v502_v22, %s2432_s7  ;;  %s2779_s6 = sld [smem:[#allocation3 + $0x6]] }
  0x3c   :  { %s2785_s28 = sld [smem:[#allocation3 + $0xf]] }
  0x3d   :  { %s2798_s29 = sld [smem:[#allocation3 + $0x26]] }
  0x3e   :  { %s2814_s30 = sld [smem:[#allocation3 + $0x2e]] }
  0x3f   :  { %s2831_s10 = sld [smem:[#allocation3 + $0x15]] }
  0x40   :  { %s2851_s11 = sld [smem:[#allocation3 + $0x12]] }
  0x41   :  { %844 = vrot.lane.b32.xlu1 %v839_v27, %s2433_s9  ;;  %v636_v27 = vmul.f32 %v2527_v11, %v634_v18  ;;  %s2859_s13 = sld [smem:[#allocation3 + $0x35]] }
  0x42   :  { %525 = vrot.lane.b32.xlu0 %v520_v28, %s2433_s9  ;;  %v135_v28 = vstv %s2179_s14  ;;  %s2867_s14 = sld [smem:[#allocation3 + $0x18]] }
  0x43   :  { %192 = vrot.lane.b32.xlu2 %v187_v29, %s2432_s7  ;;  %v953_v29 = vstv %s2247_s15  ;;  %v137_v30 = vmul.f32 %v135_v28, %v2513_v7  ;;  %v136_v37 = vmul.f32 %v135_v28, %v2504_v0  ;;  %s2873_s15 = sld [smem:[#allocation3 + $0x2f]] }
  0x44   :  { %v954_v36 = vmul.f32 %v2621_v47, %v953_v29  ;;  %s2958_s12 = sld [smem:[#allocation5]] }
  0x45   :  { %s3070_s5 = sld [smem:[#allocation3 + $0x1e]] }
  0x46   :  { %s3083_s20 = sld [smem:[#allocation3 + $0x46]] }
  0x47   :  { %s3115_s22 = sld [smem:[#allocation3 + $0x37]] }
  0x48   :  { %s3131_s23 = sld [smem:[#allocation3 + $0x3e]] }
  0x49   :  { %539 = vrot.lane.b32.xlu1 %v534_v33, %s2432_s7  ;;  %v223_v33 = vstv %s2675_s16  ;;  %s2991_s16 = sld [smem:[#allocation3 + $0x3a]] }
  0x4a   :  { %475 = vrot.lane.b32.xlu0 %v470_v34, %s2432_s7  ;;  %s3302_s2 = sld [smem:[#allocation3 + $0x24]] }
  0x4b   :  { %812 = vrot.lane.b32.xlu2 %v807_v35, %s2433_s9  ;;  %v955_v35 = vmul.f32 %v2562_v23, %v953_v29  ;;  %s3325_s25 = sld [smem:[#allocation3 + $0x33]] }
  0x4c   :  { %s3506_s26 = sld [smem:[#allocation3 + $0x4b]] }
  0x4d   :  { %s3508_s27 = sld [smem:[#allocation3 + $0x3f]] }
  0x51   :  { %876 = vrot.lane.b32.xlu1 %v871_v39, %s2433_s9  ;;  %v224_v39 = vmul.f32 %v223_v33, %v2504_v0 }
  0x52   :  { %858 = vrot.lane.b32.xlu0 %v853_v40, %s2432_s7  ;;  %v301_v40 = vstv %s2684_s17  ;;  %s2994_s17 = sld [smem:[#allocation3 + $0x43]] }
  0x53   :  { %826 = vrot.lane.b32.xlu2 %v821_v41, %s2432_s7 }
  0x59   :  { %491 = vrot.lane.b32.xlu1 %v487_v44, %s2433_s9 }
  0x5a   :  { %890 = vrot.lane.b32.xlu0 %v885_v45, %s2432_s7  ;;  %v570_v45 = vstv %s2690_s3  ;;  %s3013_s3 = sld [smem:[#allocation3 + $0x3b]] }
  0x5b   :  { %176 = vrot.lane.b32.xlu2 %v172_v46, %s2433_s9 }
  0x61   :  { %523 = vrot.lane.b32.xlu1 %v519_v48, %s2433_s9 }
  0x62   :  { %505 = vrot.lane.b32.xlu0 %v501_v49, %s2432_s7 }
  0x63   :  { %842 = vrot.lane.b32.xlu2 %v838_v50, %s2433_s9  ;;  %v302_v50 = vmul.f32 %v301_v40, %v2504_v0 }
  0x69   :  { %190 = vrot.lane.b32.xlu1 %v186_v51, %s2432_s7  ;;  %v571_v51 = vmul.f32 %v2608_v42, %v570_v45 }
  0x6a   :  { %459 = vrot.lane.b32.xlu0 %v455_v52, %s2433_s9 }
  0x6b   :  { %537 = vrot.lane.b32.xlu2 %v533_v53, %s2432_s7 }
  0x71   :  { %874 = vrot.lane.b32.xlu1 %v870_v54, %s2433_s9  ;;  %v303_v54 = vmul.f32 %v301_v40, %v2513_v7 }
  0x72   :  { %856 = vrot.lane.b32.xlu0 %v852_v55, %s2432_s7 }
  0x73   :  { %473 = vrot.lane.b32.xlu2 %v469_v56, %s2432_s7  ;;  %v1176_v56 = vld [vmem:[%s3798_s1 + $0x18] sm:$0x3f] }
  0x79   :  { %888 = vrot.lane.b32.xlu1 %v884_v57, %s2432_s7 }
  0x7a   :  { %810 = vrot.lane.b32.xlu0 %v806_v58, %s2433_s9  ;;  %v648_v58 = vstv %s2706_s18  ;;  %s3052_s18 = sld [smem:[#allocation3 + $0x3d]] }
  0x7b   :  { %824 = vrot.lane.b32.xlu2 %v820_v59, %s2432_s7  ;;  %v1185_v59 = vsel %vm210_vm1, %v1176_v56, 0  ;;  %v650_v3 = vmul.f32 %v2527_v11, %v648_v58  ;;  %v167_v56 = vstv %s2779_s6  ;;  %s3181_s6 = sld [smem:[#allocation3 + $0x4d]] }
  0x7c   :  { %v2742_v61 = vand.u32 4294901760, %v1185_v59 }
  0x7d   :  { %v2649_v62 = vpop.permute.xlu2 %144 }
  0x7e   :  { %v150_v41 = vadd.f32 %v2649_v62, %v136_v37  ;;  %2320 = vmatpush.msra.mxu2 %v2742_v61  ;;  %1200 = vmatpush.msra.mxu0 %v2742_v61 }
  0x81   :  { %262 = vrot.lane.b32.xlu1 %v257_v63, %s2433_s9  ;;  %v967_v63 = vstv %s2715_s19  ;;  %s3055_s19 = sld [smem:[#allocation3 + $0x44]] }
  0x82   :  { %260 = vrot.lane.b32.xlu0 %v256_v1, %s2433_s9  ;;  %v1175_v1 = vld [vmem:[%s3798_s1 + $0x10] sm:$0xff]  ;;  %v968_v9 = vmul.f32 %v2621_v47, %v967_v63 }
  0x83   :  { %607 = vrot.lane.b32.xlu2 %v603_v2, %s2433_s9 }
  0x85   :  { %v147_v4 = vpop.permute.xlu2 %146 }
  0x86   :  { %v151_v38 = vadd.f32 %v147_v4, %v137_v30  ;;  %v2754_v4 = vsub.f32 %v1185_v59, %v2742_v61 }
  0x88   :  { %v2770_v10 = vand.u32 4294901760, %v2754_v4 }
  0x89   :  { %274 = vrot.lane.b32.xlu1 %v270_v5, %s2432_s7  ;;  %v2756_v5 = vand.u32 4294901760, %v1175_v1 }
  0x8a   :  { %609 = vrot.lane.b32.xlu0 %v604_v6, %s2433_s9  ;;  %v649_v6 = vmul.f32 %v2608_v42, %v648_v58  ;;  %v514_v58 = vstv %s2785_s28  ;;  %s3199_s28 = sld [smem:[#allocation3 + $0x4f]] }
  0x8b   :  { %276 = vrot.lane.b32.xlu2 %v271_v8, %s2432_s7  ;;  %v1174_v8 = vld [vmem:[%s3798_s1 + $0x8] sm:$0xff]  ;;  %2321 = vmatpush.msra.mxu2 %v2756_v5 }
  0x8c   :  { %1202 = vmatpush.msra.mxu0 %v2756_v5 }
  0x8d   :  { %v161_v12 = vpop.permute.xlu2 %160 }
  0x8e   :  { %v2709_v43 = vadd.f32 %v161_v12, %v151_v38  ;;  %v2773_v12 = vsub.f32 %v1175_v1, %v2756_v5 }
  0x90   :  { %v202_v52 = vrot.slane %v2709_v43, 1 }
  0x91   :  { %294 = vrot.lane.b32.xlu1 %v289_v13, %s2433_s9  ;;  %v2775_v13 = vand.u32 4294901760, %v1174_v8 }
  0x92   :  { %292 = vrot.lane.b32.xlu0 %v288_v14, %s2433_s9  ;;  %v1173_v14 = vld [vmem:[%s3798_s1] sm:$0xff]  ;;  %s2806_s1 = sld [smem:[#allocation3 + $0x1d]] }
  0x93   :  { %621 = vrot.lane.b32.xlu2 %v617_v16, %s2432_s7  ;;  %v127_v19 = vpop.permute.xlu1 %126  ;;  %v1239_v16 = vsub.f32 %v2754_v4, %v2770_v10  ;;  %v2793_v18 = vsub.f32 %v1174_v8, %v2775_v13  ;;  %2322 = vmatpush.msra.mxu2 %v2775_v13 }
  0x94   :  { %v113_v20 = vpop.permute.xlu0 %112  ;;  %1204 = vmatpush.msra.mxu0 %v2775_v13 }
  0x95   :  { %v118_v21 = vadd.f32 %v113_v20, %v104_v17  ;;  %v2677_v22 = vpop.permute.xlu2 %507  ;;  %v2790_v17 = vand.u32 4294901760, %v2773_v12  ;;  %v2800_v20 = vand.u32 4294901760, %v1173_v14 }
  0x97   :  { %v132_v26 = vadd.f32 %v127_v19, %v118_v21  ;;  %v985_v19 = vstv %s2736_s21  ;;  %v2820_v28 = vsub.f32 %v1173_v14, %v2800_v20  ;;  %2323 = vmatpush.msra.mxu2 %v2800_v20  ;;  %1206 = vmatpush.msra.mxu0 %v2800_v20  ;;  %s3112_s21 = sld [smem:[#allocation3 + $0x4c]] }
  0x98   :  { %v986_v30 = vmul.f32 %v2621_v47, %v985_v19  ;;  %v987_v40 = vmul.f32 %v2562_v23, %v985_v19  ;;  %v516_v19 = vmul.f32 %v2527_v11, %v514_v58 }
  0x99   :  { %639 = vrot.lane.b32.xlu1 %v635_v24, %s2433_s9  ;;  %v2808_v24 = vand.u32 4294901760, %v1239_v16  ;;  %v2837_v38 = vand.u32 4294901760, %v2820_v28  ;;  %1283 = vmatpush.msrb.mxu2 %v2754_v4  ;;  %v169_v16 = vmul.f32 %v167_v56, %v2513_v7 }
  0x9a   :  { %623 = vrot.lane.b32.xlu0 %v618_v25, %s2432_s7  ;;  %v1245_v25 = vsub.f32 %v2773_v12, %v2790_v17  ;;  %1352 = vmatpush.msrb.mxu0 %v2770_v10 }
  0x9b   :  { %641 = vrot.lane.b32.xlu2 %v636_v27, %s2433_s9  ;;  %v2688_v31 = vpop.permute.xlu1 %128  ;;  %v2817_v27 = vand.u32 4294901760, %v2793_v18  ;;  %2324 = vmatpush.msra.mxu3 %v2808_v24 }
  0x9c   :  { %v2692_v32 = vpop.permute.xlu0 %114  ;;  %1241 = vmatpush.msra.mxu1 %v2808_v24  ;;  %1286 = vmatpush.msrb.mxu2 %v2773_v12 }
  0x9d   :  { %v2695_v34 = vpop.permute.xlu2 %192  ;;  %v1251_v37 = vsub.f32 %v2793_v18, %v2817_v27  ;;  %1356 = vmatpush.msrb.mxu0 %v2790_v17 }
  0x9e   :  { %1289 = vmatpush.msrb.mxu2 %v2793_v18 }
  0x9f   :  { %1360 = vmatpush.msrb.mxu0 %v2817_v27 }
  0xa0   :  { %1292 = vmatpush.msrb.mxu2 %v2820_v28 }
  0xa1   :  { %960 = vrot.lane.b32.xlu1 %v955_v35, %s2433_s9  ;;  %v2828_v35 = vand.u32 4294901760, %v1245_v25  ;;  %v105_v25 = vmul.f32 %v103_v15, %v2513_v7  ;;  %1364 = vmatpush.msrb.mxu0 %v2837_v38 }
  0xa2   :  { %958 = vrot.lane.b32.xlu0 %v954_v36, %s2433_s9  ;;  %v969_v36 = vmul.f32 %v2562_v23, %v967_v63  ;;  %v921_v63 = vstv %s2814_s30  ;;  %s3231_s30 = sld [smem:[#allocation3 + $0x41]] }
  0xa3   :  { %228 = vrot.lane.b32.xlu2 %v224_v39, %s2433_s9  ;;  %v2712_v44 = vpop.permute.xlu1 %493  ;;  %v482_v39 = vstv %s2760_s24  ;;  %2325 = vmatpush.msra.mxu3 %v2828_v35  ;;  %s3135_s24 = sld [smem:[#allocation3 + $0x40]] }
  0xa4   :  { %v159_v46 = vpop.permute.xlu0 %158  ;;  %1247 = vmatpush.msra.mxu1 %v2828_v35 }
  0xa5   :  { %v164_v48 = vadd.f32 %v159_v46, %v150_v41  ;;  %v2717_v49 = vpop.permute.xlu2 %812  ;;  %v2845_v41 = vand.u32 4294901760, %v1251_v37  ;;  %v1257_v46 = vsub.f32 %v2820_v28, %v2837_v38 }
  0xa7   :  { %v201_v53 = vrot.slane %v164_v48, 1  ;;  %v484_v48 = vmul.f32 %v2527_v11, %v482_v39  ;;  %2326 = vmatpush.msra.mxu3 %v2845_v41  ;;  %1253 = vmatpush.msra.mxu1 %v2845_v41 }
  0xa9   :  { %v203_v55 = vsel %vm200_vm0, %v201_v53, %v202_v52  ;;  %306 = vrot.lane.b32.xlu1 %v302_v50, %s2432_s7  ;;  %v584_v50 = vstv %s2798_s29  ;;  %v3807_v53 = vstv %s2766_s4  ;;  %s3523_s29 = sld [smem:[#allocation3 + $0x4e]] }
  0xaa   :  { %v2732_v57 = vadd.f32 %v203_v55, %v132_v26  ;;  %575 = vrot.lane.b32.xlu0 %v571_v51, %s2433_s9  ;;  %v2862_v51 = vand.u32 4294901760, %v1257_v46  ;;  %v237_v55 = vstv %s2806_s1  ;;  %v452_v8 = vmul.f32 %v2527_v11, %v3807_v53  ;;  %s3559_s1 = sld [smem:[#allocation7 + $0xf]] }
  0xab   :  { %308 = vrot.lane.b32.xlu2 %v303_v54, %s2432_s7  ;;  %v2740_v60 = vpop.permute.xlu1 %461  ;;  %v238_v14 = vmul.f32 %v237_v55, %v2504_v0  ;;  %v935_v53 = vstv %s2873_s15  ;;  %s3257_s15 = sld [smem:[#allocation3 + $0x27]] }
  0xac   :  { %v2744_v62 = vpop.permute.xlu0 %178  ;;  %2327 = vmatpush.msra.mxu3 %v2862_v51  ;;  %1259 = vmatpush.msra.mxu1 %v2862_v51  ;;  %v466_v15 = vadd.f32 %v2740_v60, %v452_v8 }
  0xad   :  { %v2750_v2 = vpop.permute.xlu2 %826  ;;  %v183_v46 = vadd.f32 %v2744_v62, %v169_v16 }
  0xae   :  { %1317 = vmatpush.msrb.mxu3 %v2742_v61  ;;  %1387 = vmatpush.msrb.mxu1 %v2742_v61 }
  0xb0   :  { %1319 = vmatpush.msrb.mxu3 %v2756_v5  ;;  %1389 = vmatpush.msrb.mxu1 %v2756_v5 }
  0xb1   :  { %655 = vrot.lane.b32.xlu1 %v650_v3, %s2432_s7  ;;  %v585_v3 = vmul.f32 %v2608_v42, %v584_v50 }
  0xb2   :  { %653 = vrot.lane.b32.xlu0 %v649_v6, %s2432_s7  ;;  %v498_v6 = vadd.f32 %v2712_v44, %v484_v48  ;;  %v922_v44 = vmul.f32 %v2621_v47, %v921_v63  ;;  %1321 = vmatpush.msrb.mxu3 %v2775_v13 }
  0xb3   :  { %972 = vrot.lane.b32.xlu2 %v968_v9, %s2432_s7  ;;  %v2804_v21 = vpop.permute.xlu1 %844  ;;  %v3806_v9 = vstv %s2831_s10  ;;  %1391 = vmatpush.msrb.mxu1 %v2775_v13 }
  0xb4   :  { %v2812_v26 = vpop.permute.xlu0 %525  ;;  %v2916_v37 = vadd.f32 %v2677_v22, %v498_v6  ;;  %1323 = vmatpush.msrb.mxu3 %v2800_v20  ;;  %v119_v22 = vadd.f32 %v2692_v32, %v105_v25  ;;  %v2946_v25 = vadd.f32 %v2695_v34, %v183_v46 }
  0xb5   :  { %v2824_v29 = vpop.permute.xlu2 %176  ;;  %v530_v48 = vadd.f32 %v2812_v26, %v516_v19  ;;  %1393 = vmatpush.msrb.mxu1 %v2800_v20 }
  0xb6   :  { %v212_v34 = vrot.slane %v2946_v25, 2 }
  0xb9   :  { %990 = vrot.lane.b32.xlu1 %v986_v30, %s2433_s9  ;;  %v3808_v30 = vstv %s2851_s11 }
  0xba   :  { %974 = vrot.lane.b32.xlu0 %v969_v36, %s2432_s7  ;;  %v835_v36 = vmul.f32 %v2562_v23, %v3806_v9  ;;  %v803_v6 = vmul.f32 %v2562_v23, %v3808_v30 }
  0xbb   :  { %992 = vrot.lane.b32.xlu2 %v987_v40, %s2433_s9  ;;  %v540_v54 = vpop.permute.xlu1 %539  ;;  %v999_v40 = vstv %s2859_s13  ;;  %s3594_s13 = sld [smem:[#allocation7 + $0xd]] }
  0xbc   :  { %v476_v59 = vpop.permute.xlu0 %475  ;;  %v849_v60 = vadd.f32 %v2804_v21, %v835_v36  ;;  %v2935_v62 = vadd.f32 %v540_v54, %v530_v48  ;;  %v1001_v16 = vmul.f32 %v2562_v23, %v999_v40  ;;  %v1000_v19 = vmul.f32 %v2621_v47, %v999_v40 }
  0xbd   :  { %v2877_v1 = vpop.permute.xlu2 %842  ;;  %v480_v26 = vadd.f32 %v476_v59, %v466_v15  ;;  %v936_v21 = vmul.f32 %v2621_v47, %v935_v53  ;;  %v133_v54 = vadd.f32 %v2688_v31, %v119_v22  ;;  %v817_v59 = vadd.f32 %v2717_v49, %v803_v6 }
  0xbe   :  { %v557_v36 = vrot.slane %v2935_v62, 2 }
  0xbf   :  { %v207_v46 = vadd.f32 %v202_v52, %v133_v54  ;;  %v831_v22 = vadd.f32 %v2750_v2, %v817_v59 }
  0xc1   :  { %589 = vrot.lane.b32.xlu1 %v585_v3, %s2432_s7  ;;  %v865_v3 = vstv %s2867_s14  ;;  %v217_v43 = vadd.f32 %v212_v34, %v207_v46  ;;  %s2288_s14 = sld [smem:[#allocation7 + $0x19]] }
  0xc2   :  { %242 = vrot.lane.b32.xlu0 %v238_v14, %s2432_s7  ;;  %v867_v32 = vmul.f32 %v2562_v23, %v865_v3 }
  0xc3   :  { %926 = vrot.lane.b32.xlu2 %v922_v44, %s2433_s9  ;;  %v877_v9 = vpop.permute.xlu1 %876  ;;  %v548_v44 = vrot.slane %v2916_v37, 1 }
  0xc4   :  { %v859_v14 = vpop.permute.xlu0 %858  ;;  %v881_v40 = vadd.f32 %v877_v9, %v867_v32  ;;  %v572_v9 = vmul.f32 %v2527_v11, %v570_v45 }
  0xc5   :  { %v2937_v8 = vpop.permute.xlu2 %537  ;;  %v2948_v30 = vadd.f32 %v859_v14, %v849_v60  ;;  %v553_v15 = vadd.f32 %v548_v44, %v480_v26  ;;  %v225_v26 = vmul.f32 %v223_v33, %v2513_v7  ;;  %v3809_v33 = vstv %s2958_s12 }
  0xc7   :  { %v3810_v31 = vrot.slane %v2948_v30, 1  ;;  %v562_v6 = vadd.f32 %v557_v36, %v553_v15  ;;  %v923_v15 = vmul.f32 %v2562_v23, %v921_v63  ;;  %v483_v63 = vmul.f32 %v2608_v42, %v482_v39 }
  0xc8   :  { %v515_v39 = vmul.f32 %v2608_v42, %v514_v58  ;;  %v3813_v58 = vstv %s2831_s10  ;;  %s3237_s10 = sld [smem:[#allocation3 + $0x38]] }
  0xc9   :  { %1006 = vrot.lane.b32.xlu1 %v1001_v16, %s2432_s7  ;;  %v904_v52 = vadd.f32 %v3810_v31, %v831_v22  ;;  %v239_v16 = vmul.f32 %v237_v55, %v2513_v7  ;;  %v564_v32 = vadd.f32 %v562_v6, %v217_v43  ;;  %v383_v31 = vstv %s3013_s3  ;;  %s2269_s3 = sld [smem:[#allocation7 + $0x7]] }
  0xca   :  { %1004 = vrot.lane.b32.xlu0 %v1000_v19, %s2432_s7 }
  0xcb   :  { %940 = vrot.lane.b32.xlu2 %v936_v21, %s2432_s7  ;;  %v492_v49 = vpop.permute.xlu1 %491 }
  0xcc   :  { %v891_v48 = vpop.permute.xlu0 %890 }
  0xcd   :  { %v2968_v14 = vadd.f32 %v891_v48, %v881_v40  ;;  %v2970_v60 = vpop.permute.xlu2 %473  ;;  %v586_v40 = vmul.f32 %v2527_v11, %v584_v50  ;;  %v937_v48 = vmul.f32 %v2562_v23, %v935_v53 }
  0xcf   :  { %v908_v2 = vrot.slane %v2968_v14, 2 }
  0xd1   :  { %v913_v45 = vadd.f32 %v908_v2, %v904_v52  ;;  %577 = vrot.lane.b32.xlu1 %v572_v9, %s2433_s9  ;;  %v369_v9 = vstv %s2991_s16  ;;  %v168_v52 = vmul.f32 %v167_v56, %v2504_v0  ;;  %v497_v56 = vadd.f32 %v492_v49, %v483_v63  ;;  %s3271_s16 = sld [smem:[#allocation3 + $0x4a]] }
  0xd2   :  { %230 = vrot.lane.b32.xlu0 %v225_v26, %s2433_s9  ;;  %v718_v26 = vstv %s2994_s17  ;;  %s2281_s17 = sld [smem:[#allocation7 + $0x13]] }
  0xd3   :  { %v915_v19 = vadd.f32 %v913_v45, %v564_v32  ;;  %244 = vrot.lane.b32.xlu2 %v239_v16, %s2432_s7  ;;  %v524_v21 = vpop.permute.xlu1 %523  ;;  %v371_v32 = vmul.f32 %v369_v9, %v2513_v7  ;;  %v370_v45 = vmul.f32 %v369_v9, %v2504_v0 }
  0xd4   :  { %v506_v54 = vpop.permute.xlu0 %505  ;;  %v529_v9 = vadd.f32 %v524_v21, %v515_v39 }
  0xd5   :  { %v1151_v55 = vadd.f32 %v3809_v33, %v915_v19  ;;  %v2998_v59 = vpop.permute.xlu2 %824 }
  0xd7   :  { %v1153_v46 = vmax.f32 %v1151_v55, 0.0  ;;  %v3812_v55 = vstv %s2766_s4  ;;  %s3163_s4 = sld [smem:[#allocation3 + $0x47]] }
  0xd9   :  { %928 = vrot.lane.b32.xlu1 %v923_v15, %s2433_s9  ;;  %v1182_v22 = vsel %vm1177_vm2, %v1153_v46, 0  ;;  %v451_v15 = vmul.f32 %v2608_v42, %v3812_v55  ;;  %v511_v55 = vadd.f32 %v506_v54, %v497_v56 }
  0xda   :  { %591 = vrot.lane.b32.xlu0 %v586_v40, %s2432_s7  ;;  %v3010_v6 = vand.u32 4294901760, %v1182_v22  ;;  %v719_v40 = vmul.f32 %v2608_v42, %v718_v26 }
  0xdb   :  { %942 = vrot.lane.b32.xlu2 %v937_v48, %s2432_s7  ;;  %v191_v50 = vpop.permute.xlu1 %190  ;;  %v182_v48 = vadd.f32 %v2824_v29, %v168_v52  ;;  %v547_v39 = vrot.slane %v511_v55, 1 }
  0xdc   :  { %1265 = vmatmul.f32.vlgmr.msra.gmra.mxu3 %v3010_v6  ;;  %v460_v53 = vpop.permute.xlu0 %459  ;;  %v3022_v43 = vsub.f32 %v1182_v22, %v3010_v6  ;;  %v834_v22 = vmul.f32 %v2621_v47, %v3813_v58  ;;  %v732_v58 = vstv %s3055_s19  ;;  %s2191_s19 = sld [smem:[#allocation3 + $0x21]] }
  0xdd   :  { %v3027_v16 = vpop.permute.xlu2 %607  ;;  %1466 = vmatpush.msra.mxu3 %v2808_v24  ;;  %v465_v49 = vadd.f32 %v460_v53, %v451_v15  ;;  %v196_v63 = vadd.f32 %v191_v50, %v182_v48  ;;  %v543_v53 = vadd.f32 %v2937_v8, %v529_v9  ;;  %v720_v50 = vmul.f32 %v2527_v11, %v718_v26 }
  0xde   :  { %v1217_v19 = vand.u32 4294901760, %v3022_v43  ;;  %v848_v21 = vadd.f32 %v2877_v1, %v834_v22  ;;  %v385_v15 = vmul.f32 %v383_v31, %v2513_v7  ;;  %v3814_v8 = vstv %s2851_s11  ;;  %s3242_s11 = sld [smem:[#allocation3 + $0x49]] }
  0xdf   :  { %1472 = vmatpush.msra.mxu3 %v2828_v35  ;;  %v211_v1 = vrot.slane %v196_v63, 2  ;;  %v802_v56 = vmul.f32 %v2621_v47, %v3814_v8  ;;  %v401_v26 = vstv %s3052_s18  ;;  %v733_v25 = vmul.f32 %v2608_v42, %v732_v58  ;;  %s2220_s18 = sld [smem:[#allocation3 + $0x2a]] }
  0xe0   :  { %v1218_v46 = vsub.f32 %v3022_v43, %v1217_v19 }
  0xe1   :  { %376 = vrot.lane.b32.xlu1 %v371_v32, %s2433_s9  ;;  %1478 = vmatpush.msra.mxu3 %v2845_v41  ;;  %v384_v32 = vmul.f32 %v383_v31, %v2504_v0  ;;  %v213_v37 = vsel %vm210_vm1, %v211_v1, %v212_v34 }
  0xe2   :  { %374 = vrot.lane.b32.xlu0 %v370_v45, %s2433_s9  ;;  %v1219_v33 = vand.u32 4294901760, %v1218_v46  ;;  %v866_v45 = vmul.f32 %v2621_v47, %v865_v3  ;;  %v556_v3 = vrot.slane %v543_v53, 2  ;;  %v216_v34 = vadd.f32 %v213_v37, %v2732_v57 }
  0xe3   :  { %723 = vrot.lane.b32.xlu2 %v719_v40, %s2433_s9  ;;  %v875_v29 = vpop.permute.xlu1 %874  ;;  %1484 = vmatpush.msra.mxu3 %v2862_v51  ;;  %v1069_v37 = vstv %s3112_s21  ;;  %s3294_s21 = sld [smem:[#allocation3 + $0x1b]] }
  0xe4   :  { %1220 = vmatmul.f32.vlgmr.msra.gmra.mxu2 %v1219_v33  ;;  %v857_v52 = vpop.permute.xlu0 %856  ;;  %v479_v33 = vadd.f32 %v2970_v60, %v465_v49  ;;  %v549_v60 = vsel %vm200_vm0, %v547_v39, %v548_v44  ;;  %v880_v31 = vadd.f32 %v875_v29, %v866_v45  ;;  %v403_v29 = vmul.f32 %v401_v26, %v2513_v7 }
  0xe5   :  { %v3059_v54 = vpop.permute.xlu2 %276  ;;  %1425 = vmatpush.msra.mxu2 %v2742_v61  ;;  %v862_v40 = vadd.f32 %v857_v52, %v848_v21  ;;  %v558_v63 = vsel %vm210_vm1, %v556_v3, %v557_v36  ;;  %v402_v21 = vmul.f32 %v401_v26, %v2504_v0  ;;  %v251_v39 = vstv %s3070_s5  ;;  %s2264_s5 = sld [smem:[#allocation7 + $0x2]] }
  0xe6   :  { %v552_v46 = vadd.f32 %v549_v60, %v479_v33  ;;  %v253_v57 = vmul.f32 %v251_v39, %v2513_v7  ;;  %v750_v33 = vstv %s3083_s20  ;;  %v252_v7 = vmul.f32 %v251_v39, %v2504_v0  ;;  %s1865_s20 = sld [smem:[#allocation7]] }
  0xe7   :  { %1427 = vmatpush.msra.mxu2 %v2756_v5  ;;  %v898_v22 = vrot.slane %v862_v40, 1  ;;  %v751_v40 = vmul.f32 %v2608_v42, %v750_v33  ;;  %v3816_v3 = vstv %s2958_s12  ;;  %v415_v39 = vstv %s3131_s23  ;;  %s3262_s12 = sld [smem:[#allocation3 + $0x50]] }
  0xe8   :  { %s3297_s23 = sld [smem:[#allocation3 + $0x30]] }
  0xe9   :  { %388 = vrot.lane.b32.xlu1 %v384_v32, %s2432_s7  ;;  %1429 = vmatpush.msra.mxu2 %v2775_v13  ;;  %v561_v32 = vadd.f32 %v558_v63, %v552_v46 }
  0xea   :  { %725 = vrot.lane.b32.xlu0 %v720_v50, %s2433_s9  ;;  %v3815_v50 = vrot.slane %v2948_v30, 1 }
  0xeb   :  { %390 = vrot.lane.b32.xlu2 %v385_v15, %s2432_s7  ;;  %v889_v48 = vpop.permute.xlu1 %888  ;;  %1431 = vmatpush.msra.mxu2 %v2800_v20 }
  0xec   :  { %v894_v44 = vadd.f32 %v889_v48, %v880_v31  ;;  %v811_v9 = vpop.permute.xlu0 %810  ;;  %v900_v62 = vsel %vm200_vm0, %v898_v22, %v3815_v50  ;;  %v752_v31 = vmul.f32 %v2527_v11, %v750_v33  ;;  %v686_v50 = vstv %s3135_s24  ;;  %s2229_s24 = sld [smem:[#allocation3 + $0x45]] }
  0xed   :  { %v816_v55 = vadd.f32 %v811_v9, %v802_v56  ;;  %v3091_v49 = vpop.permute.xlu2 %621  ;;  %v734_v56 = vmul.f32 %v2527_v11, %v732_v58 }
  0xee   :  { %v907_v52 = vrot.slane %v894_v44, 2 }
  0xef   :  { %v830_v53 = vadd.f32 %v2998_v59, %v816_v55  ;;  %v563_v59 = vadd.f32 %v561_v32, %v216_v34  ;;  %v1071_v55 = vmul.f32 %v2562_v23, %v1069_v37 }
  0xf0   :  { %v909_v45 = vsel %vm210_vm1, %v907_v52, %v908_v2 }
  0xf1   :  { %v903_v36 = vadd.f32 %v900_v62, %v830_v53  ;;  %408 = vrot.lane.b32.xlu1 %v403_v29, %s2433_s9 }
  0xf2   :  { %406 = vrot.lane.b32.xlu0 %v402_v21, %s2433_s9  ;;  %v1070_v21 = vmul.f32 %v2621_v47, %v1069_v37 }
  0xf3   :  { %v912_v15 = vadd.f32 %v909_v45, %v903_v36  ;;  %737 = vrot.lane.b32.xlu2 %v733_v25, %s2432_s7  ;;  %v263_v14 = vpop.permute.xlu1 %262  ;;  %v3148_v25 = vld [vmem:[%s3797_s0] sm:$0xff] }
  0xf4   :  { %v261_v30 = vpop.permute.xlu0 %260  ;;  %v267_v8 = vadd.f32 %v263_v14, %v253_v57  ;;  %v416_v33 = vmul.f32 %v3148_v25, %v415_v39 }
  0xf5   :  { %v914_v2 = vadd.f32 %v912_v15, %v563_v59  ;;  %v3117_v1 = vpop.permute.xlu2 %641  ;;  %v266_v48 = vadd.f32 %v261_v30, %v252_v7  ;;  %v687_v59 = vmul.f32 %v2608_v42, %v686_v50  ;;  %v3186_v15 = vld [vmem:[%s3797_s0 + $0x8] sm:$0xff]  ;;  %v764_v30 = vstv %s3163_s4  ;;  %s2200_s4 = sld [smem:[#allocation3 + $0x3c]] }
  0xf6   :  { %v3127_v46 = vadd.f32 %v3059_v54, %v267_v8  ;;  %v337_v54 = vstv %s3115_s22  ;;  %v417_v14 = vmul.f32 %v3186_v15, %v415_v39  ;;  %v765_v8 = vmul.f32 %v2608_v42, %v764_v30  ;;  %s3408_s22 = sld [smem:[#allocation5 + $0x1]] }
  0xf7   :  { %v1150_v60 = vadd.f32 %v3816_v3, %v914_v2  ;;  %v338_v34 = vmul.f32 %v3148_v25, %v337_v54  ;;  %v1083_v7 = vstv %s3181_s6  ;;  %s3504_s6 = sld [smem:[#allocation3 + $0x36]] }
  0xf8   :  { %v3811_v29 = vrot.slane %v3127_v46, 1 }
  0xf9   :  { %755 = vrot.lane.b32.xlu1 %v751_v40, %s2433_s9  ;;  %v1152_v26 = vmax.f32 %v1150_v60, 0.0 }
  0xfa   :  { %739 = vrot.lane.b32.xlu0 %v734_v56, %s2432_s7  ;;  %v1084_v56 = vmul.f32 %v2621_v47, %v1083_v7 }
  0xfb   :  { %757 = vrot.lane.b32.xlu2 %v752_v31, %s2433_s9  ;;  %v275_v0 = vpop.permute.xlu1 %274  ;;  %v1179_v58 = vsel %vm1177_vm2, %v1152_v26, 0 }
  0xfc   :  { %v280_v11 = vadd.f32 %v275_v0, %v266_v48  ;;  %v3137_v22 = vpop.permute.xlu0 %609  ;;  %v1207_v44 = vand.u32 4294901760, %v1179_v58  ;;  %v351_v48 = vstv %s3237_s10  ;;  %v1037_v0 = vstv %s3242_s11  ;;  %s3571_s10 = sld [smem:[#allocation7 + $0x1]] }
  0xfd   :  { %v3140_v9 = vpop.permute.xlu2 %228  ;;  %s3588_s11 = sld [smem:[#allocation5 + $0x2]] }
  0xfe   :  { %v316_v63 = vrot.slane %v280_v11, 1  ;;  %1261 = vmatmul.f32.vlgmr.msra.gmra.mxu1 %v1207_v44  ;;  %v1208_v52 = vsub.f32 %v1179_v58, %v1207_v44  ;;  %v3278_v11 = vld [vmem:[%s3797_s0 + $0x10] sm:$0xff] }
  0xff   :  { %1542 = vmatpush.msra.mxu1 %v2742_v61 }
 0x100   :  { %1295 = vmatmul.f32.vlgmr.msrb.gmra.mxu2 %v1208_v52  ;;  %v1209_v23 = vand.u32 4294901760, %v1208_v52  ;;  %v3157_v32 = vsel %vm200_vm0, %v316_v63, %v3811_v29  ;;  %v3289_v63 = vld [vmem:[%s3797_s0 + $0x20] sm:$0xff] }
 0x101   :  { %1076 = vrot.lane.b32.xlu1 %v1071_v55, %s2433_s9  ;;  %1544 = vmatpush.msra.mxu1 %v2756_v5  ;;  %v352_v55 = vmul.f32 %v3148_v25, %v351_v48 }
 0x102   :  { %1074 = vrot.lane.b32.xlu0 %v1070_v21, %s2433_s9  ;;  %1327 = vmatmul.f32.vlgmr.msrb.gmra.mxu3 %v1209_v23  ;;  %v1210_v53 = vsub.f32 %v1208_v52, %v1209_v23  ;;  %v1038_v52 = vmul.f32 %v3289_v63, %v1037_v0  ;;  %v598_v21 = vstv %s3257_s15  ;;  %s2435_s15 = smov 112  }
 0x103   :  { %342 = vrot.lane.b32.xlu2 %v338_v34, %s2433_s9  ;;  %v3166_v45 = vpop.permute.xlu1 %294  ;;  %1546 = vmatpush.msra.mxu1 %v2775_v13  ;;  %v1115_v34 = vstv %s3262_s12  ;;  %s2290_s12 = sld [smem:[#allocation7 + $0x1b]] }
 0x104   :  { %v3170_v62 = vpop.permute.xlu0 %292  ;;  %v1211_v36 = vand.u32 4294901760, %v1210_v53  ;;  %1612 = vmatpush.msrb.mxu3 %v2742_v61  ;;  %1577 = vmatpush.msrb.mxu2 %v2770_v10  ;;  %v599_v53 = vmul.f32 %v3278_v11, %v598_v21 }
 0x105   :  { %v3174_v57 = vpop.permute.xlu2 %308  ;;  %1548 = vmatpush.msra.mxu1 %v2800_v20 }
 0x106   :  { %1212 = vmatmul.f32.vlgmr.msra.gmra.mxu0 %v1211_v36  ;;  %1395 = vmatmul.f32.vlgmr.msrb.gmra.mxu1 %v1207_v44  ;;  %v1051_v36 = vstv %s3271_s16  ;;  %s2267_s16 = sld [smem:[#allocation7 + $0x5]] }
 0x107   :  { %1508 = vmatpush.msra.mxu0 %v2754_v4  ;;  %1614 = vmatpush.msrb.mxu3 %v2756_v5 }
 0x108   :  { %1300 = vmatmul.f32.gmra.mxu2 %v3022_v43  ;;  %1690 = vmatpush.msrb.mxu1 %v2808_v24  ;;  %v3214_v43 = vld [vmem:[%s3797_s0 + $0x18] sm:$0xff] }
 0x109   :  { %420 = vrot.lane.b32.xlu1 %v416_v33, %s2432_s7  ;;  %1511 = vmatpush.msra.mxu0 %v2773_v12 }
 0x10a   :  { %691 = vrot.lane.b32.xlu0 %v687_v59, %s2433_s9  ;;  %1333 = vmatmul.f32.gmra.mxu3 %v1217_v19  ;;  %v766_v19 = vmul.f32 %v3214_v43, %v764_v30  ;;  %v1116_v30 = vmul.f32 %v3289_v63, %v1115_v34 }
 0x10b   :  { %422 = vrot.lane.b32.xlu2 %v417_v14, %s2432_s7  ;;  %v3202_v2 = vpop.permute.xlu1 %639  ;;  %1514 = vmatpush.msra.mxu0 %v2793_v18  ;;  %v630_v14 = vstv %s2220_s18  ;;  %s2292_s18 = sld [smem:[#allocation7 + $0x1d]] }
 0x10c   :  { %v3205_v24 = vpop.permute.xlu0 %623  ;;  %1616 = vmatpush.msrb.mxu3 %v2775_v13  ;;  %1581 = vmatpush.msrb.mxu2 %v2790_v17 }
 0x10d   :  { %v3209_v40 = vpop.permute.xlu2 %972  ;;  %1517 = vmatpush.msra.mxu0 %v2820_v28  ;;  %1696 = vmatpush.msrb.mxu1 %v2828_v35  ;;  %v1101_v35 = vstv %s3199_s28  ;;  %s3518_s28 = sld [smem:[#allocation3 + $0x48]] }
 0x10e   :  { %1366 = vmatmul.f32.vlgmr.msrb.gmra.mxu0 %v1207_v44  ;;  %1399 = vmatmul.f32.gmra.mxu1 %v3010_v6  ;;  %v1102_v60 = vmul.f32 %v2621_v47, %v1101_v35  ;;  %v700_v47 = vstv %s3231_s30  ;;  %s3564_s30 = sld [smem:[#allocation7 + $0x3]] }
 0x10f   :  { %1618 = vmatpush.msrb.mxu3 %v2800_v20  ;;  %1585 = vmatpush.msrb.mxu2 %v2817_v27  ;;  %v701_v44 = vmul.f32 %v3278_v11, %v700_v47 }
 0x110   :  { %1702 = vmatpush.msrb.mxu1 %v2845_v41  ;;  %1649 = vmatpush.msrb.mxu0 %v2742_v61 }
 0x111   :  { %771 = vrot.lane.b32.xlu1 %v766_v19, %s2432_s7  ;;  %1589 = vmatpush.msrb.mxu2 %v2837_v38  ;;  %v600_v19 = vmul.f32 %v3214_v43, %v598_v21 }
 0x112   :  { %769 = vrot.lane.b32.xlu0 %v765_v8, %s2432_s7  ;;  %1708 = vmatpush.msrb.mxu1 %v2862_v51  ;;  %v3252_v51 = vld [vmem:[%s3797_s0 + $0x28] sm:$0xff]  ;;  %v283_v8 = vstv %s2191_s19  ;;  %s3320_s0 = sld [smem:[#allocation3 + $0x2d]] }
 0x113   :  { %v3234_v42 = vpop.permute.xlu1 %960  ;;  %1088 = vrot.lane.b32.xlu2 %v1084_v56, %s2432_s7  ;;  %1651 = vmatpush.msrb.mxu0 %v2756_v5  ;;  %v1085_v31 = vmul.f32 %v3252_v51, %v1083_v7  ;;  %v1103_v26 = vmul.f32 %v3252_v51, %v1101_v35  ;;  %v1117_v59 = vmul.f32 %v3252_v51, %v1115_v34  ;;  %s2279_s19 = sld [smem:[#allocation7 + $0x11]] }
 0x114   :  { %v3240_v41 = vpop.permute.xlu0 %958  ;;  %v1052_v7 = vmul.f32 %v3289_v63, %v1051_v36  ;;  %v613_v56 = vadd.f32 %v3027_v16, %v599_v53  ;;  %v632_v35 = vmul.f32 %v3214_v43, %v630_v14  ;;  %v614_v16 = vadd.f32 %v3137_v22, %v600_v19 }
 0x115   :  { %v3244_v3 = vpop.permute.xlu2 %992  ;;  %1653 = vmatpush.msrb.mxu0 %v2775_v13  ;;  %v688_v19 = vmul.f32 %v3214_v43, %v686_v50  ;;  %v353_v50 = vmul.f32 %v3186_v15, %v351_v48 }
 0x116   :  { %1370 = vmatmul.f32.gmra.mxu0 %v3010_v6  ;;  %v627_v34 = vadd.f32 %v3091_v49, %v613_v56  ;;  %v3339_v22 = vadd.f32 %v3205_v24, %v614_v16 }
 0x117   :  { %1655 = vmatpush.msrb.mxu0 %v2800_v20 }
 0x119   :  { %1106 = vrot.lane.b32.xlu1 %v1102_v60, %s2433_s9  ;;  %v219_v60 = vstv %s3294_s21  ;;  %s2276_s21 = sld [smem:[#allocation7 + $0xe]] }
 0x11a   :  { %1090 = vrot.lane.b32.xlu0 %v1085_v31, %s2432_s7  ;;  %v631_v31 = vmul.f32 %v3278_v11, %v630_v14  ;;  %v220_v53 = vmul.f32 %v3148_v25, %v219_v60 }
 0x11b   :  { %v3264_v6 = vpop.permute.xlu1 %306  ;;  %1108 = vrot.lane.b32.xlu2 %v1103_v26, %s2433_s9  ;;  %v949_v26 = vstv %s3297_s23  ;;  %s2274_s23 = sld [smem:[#allocation7 + $0xc]] }
 0x11c   :  { %v3268_v37 = vpop.permute.xlu0 %575 }
 0x11d   :  { %v3273_v58 = vpop.permute.xlu2 %926 }
 0x121   :  { %705 = vrot.lane.b32.xlu1 %v701_v44, %s2432_s7  ;;  %v285_v44 = vmul.f32 %v3186_v15, %v283_v8 }
 0x122   :  { %356 = vrot.lane.b32.xlu0 %v352_v55, %s2432_s7  ;;  %v284_v55 = vmul.f32 %v3148_v25, %v283_v8  ;;  %v646_v8 = vadd.f32 %v3117_v1, %v632_v35  ;;  %v339_v1 = vmul.f32 %v3186_v15, %v337_v54 }
 0x123   :  { %v656_v23 = vpop.permute.xlu1 %655  ;;  %1042 = vrot.lane.b32.xlu2 %v1038_v52, %s2433_s9  ;;  %v566_v52 = vstv %s3302_s2  ;;  %v299_v49 = vadd.f32 %v3166_v45, %v285_v44  ;;  %v917_v44 = vstv %s3320_s0  ;;  %s2287_s2 = sld [smem:[#allocation7 + $0x18]] }
 0x124   :  { %v654_v39 = vpop.permute.xlu0 %653  ;;  %v567_v56 = vmul.f32 %v3278_v11, %v566_v52  ;;  %v3355_v24 = vadd.f32 %v656_v23, %v646_v8  ;;  %v981_v23 = vstv %s3325_s25  ;;  %s2289_s0 = sld [smem:[#allocation7 + $0x1a]] }
 0x125   :  { %v3307_v33 = vpop.permute.xlu2 %940  ;;  %v3366_v54 = vadd.f32 %v3174_v57, %v299_v49  ;;  %v982_v49 = vmul.f32 %v3289_v63, %v981_v23  ;;  %s2271_s25 = sld [smem:[#allocation7 + $0x9]] }
 0x129   :  { %1122 = vrot.lane.b32.xlu1 %v1117_v59, %s2432_s7  ;;  %v951_v59 = vmul.f32 %v3252_v51, %v949_v26 }
 0x12a   :  { %1120 = vrot.lane.b32.xlu0 %v1116_v30, %s2432_s7  ;;  %v645_v30 = vadd.f32 %v3202_v2, %v631_v31  ;;  %v950_v2 = vmul.f32 %v3289_v63, %v949_v26  ;;  %v663_v31 = vrot.slane %v627_v34, 1  ;;  %v673_v26 = vrot.slane %v3355_v24, 2 }
 0x12b   :  { %v991_v21 = vpop.permute.xlu1 %990  ;;  %1056 = vrot.lane.b32.xlu2 %v1052_v7, %s2432_s7  ;;  %v298_v7 = vadd.f32 %v3170_v62, %v284_v55  ;;  %v664_v62 = vrot.slane %v3339_v22, 1  ;;  %v234_v55 = vadd.f32 %v3140_v9, %v220_v53  ;;  %v983_v9 = vmul.f32 %v3252_v51, %v981_v23 }
 0x12c   :  { %v975_v14 = vpop.permute.xlu0 %974  ;;  %v659_v35 = vadd.f32 %v654_v39, %v645_v30  ;;  %v581_v39 = vadd.f32 %v3268_v37, %v567_v56  ;;  %v964_v48 = vadd.f32 %v3240_v41, %v950_v2  ;;  %v918_v37 = vmul.f32 %v3289_v63, %v917_v44 }
 0x12d   :  { %v3349_v29 = vpop.permute.xlu2 %244  ;;  %v312_v45 = vadd.f32 %v3264_v6, %v298_v7  ;;  %v965_v6 = vadd.f32 %v3234_v42, %v951_v59  ;;  %v665_v42 = vsel %vm200_vm0, %v663_v31, %v664_v62  ;;  %v1039_v59 = vmul.f32 %v3252_v51, %v1037_v0 }
 0x12e   :  { %v672_v16 = vrot.slane %v659_v35, 2  ;;  %v702_v56 = vmul.f32 %v3214_v43, %v700_v47  ;;  %v1053_v35 = vmul.f32 %v3252_v51, %v1051_v36  ;;  %v932_v0 = vadd.f32 %v3273_v58, %v918_v37 }
 0x12f   :  { %v325_v57 = vrot.slane %v312_v45, 2  ;;  %v3379_v30 = vadd.f32 %v975_v14, %v965_v6  ;;  %v996_v36 = vadd.f32 %v991_v21, %v982_v49  ;;  %v221_v37 = vmul.f32 %v3186_v15, %v219_v60 }
 0x130   :  { %v674_v14 = vsel %vm210_vm1, %v672_v16, %v673_v26 }
 0x131   :  { %693 = vrot.lane.b32.xlu1 %v688_v19, %s2433_s9  ;;  %v326_v19 = vrot.slane %v3366_v54, 2  ;;  %v1015_v47 = vrot.slane %v3379_v30, 1  ;;  %v1155_v30 = vstv %s3408_s22  ;;  %s2283_s22 = sld [smem:[#allocation7 + $0x15]] }
 0x132   :  { %344 = vrot.lane.b32.xlu0 %v339_v1, %s2433_s9  ;;  %v978_v1 = vadd.f32 %v3209_v40, %v964_v48 }
 0x133   :  { %v590_v34 = vpop.permute.xlu1 %589  ;;  %358 = vrot.lane.b32.xlu2 %v353_v50, %s2432_s7  ;;  %v327_v45 = vsel %vm210_vm1, %v325_v57, %v326_v19 }
 0x134   :  { %v595_v53 = vadd.f32 %v590_v34, %v581_v39  ;;  %v243_v8 = vpop.permute.xlu0 %242  ;;  %v946_v39 = vadd.f32 %v3307_v33, %v932_v0 }
 0x135   :  { %v248_v41 = vadd.f32 %v243_v8, %v234_v55  ;;  %v943_v31 = vpop.permute.xlu2 %942  ;;  %v997_v55 = vadd.f32 %v3244_v3, %v983_v9 }
 0x136   :  { %v668_v7 = vadd.f32 %v665_v42, %v595_v53 }
 0x137   :  { %v321_v2 = vadd.f32 %v3157_v32, %v248_v41  ;;  %v1014_v32 = vrot.slane %v978_v1, 1 }
 0x138   :  { %v677_v50 = vadd.f32 %v674_v14, %v668_v7  ;;  %v568_v7 = vmul.f32 %v3214_v43, %v566_v52  ;;  %v3817_v52 = vrot.slane %v3127_v46, 1 }
 0x139   :  { %v330_v40 = vadd.f32 %v327_v45, %v321_v2  ;;  %1044 = vrot.lane.b32.xlu1 %v1039_v59, %s2433_s9  ;;  %v1016_v16 = vsel %vm200_vm0, %v1014_v32, %v1015_v47  ;;  %s2226_s9 = sld [smem:[#allocation3 + $0x42]] }
 0x13a   :  { %707 = vrot.lane.b32.xlu0 %v702_v56, %s2432_s7  ;;  %v1019_v57 = vadd.f32 %v1016_v16, %v946_v39  ;;  %v919_v56 = vmul.f32 %v3252_v51, %v917_v44 }
 0x13b   :  { %v679_v23 = vadd.f32 %v677_v50, %v330_v40  ;;  %v1007_v58 = vpop.permute.xlu1 %1006  ;;  %1058 = vrot.lane.b32.xlu2 %v1053_v35, %s2432_s7  ;;  %s3423_s7 = sld [smem:[#allocation3 + $0x39]] }
 0x13c   :  { %v1011_v6 = vadd.f32 %v1007_v58, %v997_v55  ;;  %v1005_v48 = vpop.permute.xlu0 %1004 }
 0x13d   :  { %v1010_v3 = vadd.f32 %v1005_v48, %v996_v36  ;;  %v3417_v8 = vpop.permute.xlu2 %723 }
 0x13e   :  { %v1024_v34 = vrot.slane %v1011_v6, 2 }
 0x13f   :  { %v1023_v9 = vrot.slane %v1010_v3, 2 }
 0x141   :  { %v1025_v21 = vsel %vm210_vm1, %v1023_v9, %v1024_v34  ;;  %v365_v58 = vstv %s3423_s7  ;;  %s2273_s7 = sld [smem:[#allocation7 + $0xb]] }
 0x142   :  { %v1028_v53 = vadd.f32 %v1025_v21, %v1019_v57  ;;  %v367_v22 = vmul.f32 %v3186_v15, %v365_v58 }
 0x143   :  { %v578_v33 = vpop.permute.xlu1 %577 }
 0x144   :  { %v1030_v42 = vadd.f32 %v1028_v53, %v679_v23  ;;  %v231_v41 = vpop.permute.xlu0 %230  ;;  %v582_v2 = vadd.f32 %v578_v33, %v568_v7 }
 0x145   :  { %v235_v59 = vadd.f32 %v231_v41, %v221_v37  ;;  %v391_v50 = vpop.permute.xlu2 %390 }
 0x146   :  { %v1156_v49 = vadd.f32 %v1155_v30, %v1030_v42 }
 0x147   :  { %v249_v60 = vadd.f32 %v3349_v29, %v235_v59  ;;  %v2434_v59 = vmov 0.0  }
 0x148   :  { %v1158_v1 = vmax.f32 %v1156_v49, 0.0  ;;  %1167 = vst.msk [vmem:[#allocation2] sm:$0xff] %vm1166_vm3, %v2434_v59 }
 0x149   :  { %v322_v55 = vadd.f32 %v3817_v52, %v249_v60  ;;  %1168 = vst.msk [vmem:[#allocation2 + $0x8] sm:$0xff] %vm1166_vm3, %v2434_v59 }
 0x14a   :  { %v1407_v14 = vsel %vm1177_vm2, %v1158_v1, 0  ;;  %1169 = vst.msk [vmem:[#allocation2 + $0x10] sm:$0xff] %vm1166_vm3, %v2434_v59 }
 0x14b   :  { %v929_v35 = vpop.permute.xlu1 %928  ;;  %v3430_v0 = vand.u32 4294901760, %v1407_v14  ;;  %v331_v46 = vadd.f32 %v326_v19, %v322_v55  ;;  %v366_v19 = vmul.f32 %v3148_v25, %v365_v58  ;;  %1170 = vst.msk [vmem:[#allocation2 + $0x18] sm:$0xff] %vm1166_vm3, %v2434_v59  ;;  %v746_v58 = vstv %s2229_s24  ;;  %s2296_s24 = sld [smem:[#allocation7 + $0x21]] }
 0x14c   :  { %v933_v45 = vadd.f32 %v929_v35, %v919_v56  ;;  %v592_v40 = vpop.permute.xlu0 %591  ;;  %1171 = vst.msk [vmem:[#allocation2 + $0x20] sm:$0xff] %vm1166_vm3, %v2434_v59 }
 0x14d   :  { %v596_v32 = vadd.f32 %v592_v40, %v582_v2  ;;  %1486 = vmatmul.f32.vlgmr.msra.gmra.mxu3 %v3430_v0  ;;  %v1433_v44 = vsub.f32 %v1407_v14, %v3430_v0  ;;  %v3453_v54 = vpop.permute.xlu2 %737  ;;  %1172 = vst.msk [vmem:[#allocation2 + $0x28] sm:$0xff] %vm1166_vm3, %v2434_v59 }
 0x14e   :  { %v947_v36 = vadd.f32 %v943_v31, %v933_v45  ;;  %1766 = vmatpush.msra.mxu3 %v2742_v61 }
 0x14f   :  { %v669_v29 = vadd.f32 %v664_v62, %v596_v32  ;;  %1520 = vmatmul.f32.vlgmr.msra.gmra.mxu0 %v1433_v44  ;;  %v1434_v23 = vand.u32 4294901760, %v1433_v44 }
 0x150   :  { %v1020_v39 = vadd.f32 %v1015_v47, %v947_v36  ;;  %1768 = vmatpush.msra.mxu3 %v2756_v5  ;;  %1801 = vmatpush.msra.mxu0 %v2770_v10 }
 0x151   :  { %v678_v6 = vadd.f32 %v673_v26, %v669_v29  ;;  %1552 = vmatmul.f32.vlgmr.msra.gmra.mxu1 %v1434_v23  ;;  %v1435_v31 = vsub.f32 %v1433_v44, %v1434_v23 }
 0x152   :  { %v1029_v48 = vadd.f32 %v1024_v34, %v1020_v39  ;;  %1770 = vmatpush.msra.mxu3 %v2775_v13  ;;  %1836 = vmatpush.msra.mxu1 %v2742_v61 }
 0x153   :  { %v680_v62 = vadd.f32 %v678_v6, %v331_v46  ;;  %v377_v47 = vpop.permute.xlu1 %376  ;;  %v1436_v16 = vand.u32 4294901760, %v1435_v31  ;;  %1805 = vmatpush.msra.mxu0 %v2790_v17  ;;  %v397_v46 = vstv %s2200_s4  ;;  %v748_v31 = vmul.f32 %v3214_v43, %v746_v58  ;;  %s2294_s4 = sld [smem:[#allocation7 + $0x1f]] }
 0x154   :  { %v375_v10 = vpop.permute.xlu0 %374  ;;  %1772 = vmatpush.msra.mxu3 %v2800_v20  ;;  %1838 = vmatpush.msra.mxu1 %v2756_v5  ;;  %v381_v26 = vadd.f32 %v377_v47, %v367_v22  ;;  %v747_v22 = vmul.f32 %v3278_v11, %v746_v58 }
 0x155   :  { %v1031_v24 = vadd.f32 %v1029_v48, %v680_v62  ;;  %1437 = vmatmul.f32.vlgmr.msra.gmra.mxu2 %v1436_v16  ;;  %1809 = vmatpush.msra.mxu0 %v2817_v27  ;;  %v380_v27 = vadd.f32 %v375_v10, %v366_v19  ;;  %v3469_v57 = vpop.permute.xlu2 %757  ;;  %v333_v48 = vstv %s3504_s6  ;;  %v399_v16 = vmul.f32 %v3186_v15, %v397_v46  ;;  %s2298_s6 = sld [smem:[#allocation7 + $0x23]] }
 0x156   :  { %1732 = vmatpush.msra.mxu2 %v2754_v4  ;;  %1840 = vmatpush.msra.mxu1 %v2775_v13  ;;  %v3461_v17 = vadd.f32 %v391_v50, %v381_v26  ;;  %v714_v50 = vstv %s2226_s9  ;;  %v398_v10 = vmul.f32 %v3148_v25, %v397_v46  ;;  %s2285_s9 = sld [smem:[#allocation7 + $0x17]] }
 0x157   :  { %v1157_v61 = vadd.f32 %v1155_v30, %v1031_v24  ;;  %1813 = vmatpush.msra.mxu0 %v2837_v38  ;;  %v715_v32 = vmul.f32 %v3278_v11, %v714_v50  ;;  %v716_v39 = vmul.f32 %v3214_v43, %v714_v50  ;;  %v1065_v24 = vstv %s3506_s26  ;;  %s2266_s26 = sld [smem:[#allocation7 + $0x4]] }
 0x158   :  { %1735 = vmatpush.msra.mxu2 %v2773_v12  ;;  %1842 = vmatpush.msra.mxu1 %v2800_v20  ;;  %v431_v38 = vrot.slane %v3461_v17, 1 }
 0x159   :  { %v1159_v5 = vmax.f32 %v1157_v61, 0.0  ;;  %v729_v6 = vadd.f32 %v3417_v8, %v715_v32  ;;  %v1097_v32 = vstv %s3523_s29  ;;  %s2278_s29 = sld [smem:[#allocation7 + $0x10]] }
 0x15a   :  { %1738 = vmatpush.msra.mxu2 %v2793_v18 }
 0x15b   :  { %v389_v3 = vpop.permute.xlu1 %388  ;;  %v1410_v34 = vsel %vm1177_vm2, %v1159_v5, 0  ;;  %v682_v5 = vstv %s3508_s27  ;;  %s2268_s27 = sld [smem:[#allocation7 + $0x6]] }
 0x15c   :  { %v394_v9 = vadd.f32 %v389_v3, %v380_v27  ;;  %v3465_v4 = vpop.permute.xlu0 %725  ;;  %v1440_v13 = vand.u32 4294901760, %v1410_v34  ;;  %1741 = vmatpush.msra.mxu2 %v2820_v28 }
 0x15d   :  { %v3481_v33 = vpop.permute.xlu2 %342  ;;  %v730_v8 = vadd.f32 %v3465_v4, %v716_v39 }
 0x15e   :  { %v430_v12 = vrot.slane %v394_v9, 1  ;;  %1490 = vmatmul.f32.gmra.mxu3 %v1440_v13  ;;  %v1441_v20 = vsub.f32 %v1410_v34, %v1440_v13  ;;  %v743_v34 = vadd.f32 %v3453_v54, %v729_v6  ;;  %v762_v9 = vadd.f32 %v3469_v57, %v748_v31 }
 0x15f   :  { %v1266_v35 = vpop.f32.mrf.mxu3  ;;  %v1067_v54 = vmul.f32 %v3252_v51, %v1065_v24  ;;  %v683_v57 = vmul.f32 %v3278_v11, %v682_v5 }
 0x160   :  { %1525 = vmatmul.f32.gmra.mxu0 %v1441_v20  ;;  %v1442_v21 = vand.u32 4294901760, %v1441_v20  ;;  %v3474_v18 = vsel %vm200_vm0, %v430_v12, %v431_v38 }
 0x162   :  { %1558 = vmatmul.f32.gmra.mxu1 %v1442_v21  ;;  %v1443_v37 = vsub.f32 %v1441_v20, %v1442_v21 }
 0x163   :  { %v3476_v53 = vpop.permute.xlu1 %408 }
 0x164   :  { %v3478_v30 = vpop.permute.xlu0 %406  ;;  %v1444_v28 = vand.u32 4294901760, %v1443_v37 }
 0x165   :  { %v3494_v7 = vpop.permute.xlu2 %422  ;;  %v412_v59 = vadd.f32 %v3478_v30, %v398_v10 }
 0x166   :  { %1445 = vmatmul.f32.gmra.mxu2 %v1444_v28  ;;  %1620 = vmatmul.f32.vlgmr.msrb.gmra.mxu3 %v3430_v0  ;;  %v413_v28 = vadd.f32 %v3476_v53, %v399_v16 }
 0x167   :  { %v1221_v1 = vpop.f32.mrf.mxu2 }
 0x168   :  { %v1267_v61 = vadd.f32 %v1266_v35, %v1221_v1  ;;  %v1066_v1 = vmul.f32 %v3289_v63, %v1065_v24  ;;  %v3552_v11 = vadd.f32 %v3494_v7, %v413_v28  ;;  %v1098_v24 = vmul.f32 %v3289_v63, %v1097_v32 }
 0x16b   :  { %v3483_v42 = vpop.permute.xlu1 %755 }
 0x16c   :  { %v3485_v41 = vpop.permute.xlu0 %739  ;;  %v761_v20 = vadd.f32 %v3483_v42, %v747_v22 }
 0x16d   :  { %v3500_v14 = vpop.permute.xlu2 %1088  ;;  %v3536_v21 = vadd.f32 %v3485_v41, %v730_v8 }
 0x16e   :  { %1591 = vmatmul.f32.vlgmr.msrb.gmra.mxu2 %v3430_v0  ;;  %1624 = vmatmul.f32.gmra.mxu3 %v1440_v13 }
 0x16f   :  { %v780_v30 = vrot.slane %v3536_v21, 1 }
 0x173   :  { %v3491_v49 = vpop.permute.xlu1 %1076 }
 0x174   :  { %v3496_v56 = vpop.permute.xlu0 %1074 }
 0x175   :  { %v3511_v29 = vpop.permute.xlu2 %1108 }
 0x176   :  { %1595 = vmatmul.f32.gmra.mxu2 %v1440_v13  ;;  %v334_v13 = vmul.f32 %v3148_v25, %v333_v48 }
 0x178   :  { %v348_v53 = vadd.f32 %v3481_v33, %v334_v13 }
 0x17b   :  { %v421_v60 = vpop.permute.xlu1 %420  ;;  %v1262_v0 = vpop.f32.mrf.mxu1 }
 0x17c   :  { %v3502_v2 = vpop.permute.xlu0 %691  ;;  %v426_v50 = vadd.f32 %v421_v60, %v412_v59  ;;  %v1954_v59 = vstv %s3559_s1  ;;  %s3699_s1 = sld [smem:[#allocation7 + $0x1c]] }
 0x17d   :  { %v1043_v35 = vpop.permute.xlu2 %1042 }
 0x17e   :  { %v439_v39 = vrot.slane %v426_v50, 2 }
 0x183   :  { %v1213_v45 = vpop.f32.mrf.mxu0  ;;  %v1296_v40 = vpop.f32.mrf.mxu2 }
 0x184   :  { %v1263_v52 = vadd.f32 %v1262_v0, %v1213_v45  ;;  %v772_v55 = vpop.permute.xlu1 %771  ;;  %v770_v44 = vpop.permute.xlu0 %769  ;;  %v779_v0 = vrot.slane %v743_v34, 1  ;;  %v1033_v45 = vstv %s3518_s28  ;;  %s2280_s28 = sld [smem:[#allocation7 + $0x12]] }
 0x185   :  { %v1328_v36 = vpop.f32.mrf.mxu3  ;;  %v1396_v62 = vpop.f32.mrf.mxu1  ;;  %v3545_v42 = vadd.f32 %v772_v55, %v762_v9  ;;  %v775_v41 = vadd.f32 %v770_v44, %v761_v20  ;;  %v697_v55 = vadd.f32 %v3502_v2, %v683_v57  ;;  %v1034_v7 = vmul.f32 %v3289_v63, %v1033_v45 }
 0x186   :  { %v1297_v23 = vadd.f32 %v1296_v40, %v1263_v52  ;;  %v1081_v52 = vadd.f32 %v3491_v49, %v1067_v54  ;;  %v781_v31 = vsel %vm200_vm0, %v779_v0, %v780_v30  ;;  %v1057_v34 = vpop.permute.xlu2 %1056  ;;  %v1880_v54 = vstv %s3564_s30  ;;  %s3701_s30 = sld [smem:[#allocation7 + $0x1e]] }
 0x187   :  { %v789_v60 = vrot.slane %v3545_v42, 2  ;;  %v1048_v8 = vadd.f32 %v1043_v35, %v1034_v7 }
 0x188   :  { %v1329_v47 = vadd.f32 %v1328_v36, %v1297_v23  ;;  %v1080_v36 = vadd.f32 %v3496_v56, %v1066_v1  ;;  %v788_v23 = vrot.slane %v775_v41, 2 }
 0x18a   :  { %v1094_v10 = vadd.f32 %v3500_v14, %v1080_v36  ;;  %v1161_v36 = vstv %s3588_s11  ;;  %s2284_s11 = sld [smem:[#allocation7 + $0x16]] }
 0x18b   :  { %v1301_v26 = vpop.f32.mrf.mxu2  ;;  %v1367_v19 = vpop.f32.mrf.mxu0 }
 0x18c   :  { %v1368_v27 = vadd.f32 %v1367_v19, %v1329_v47  ;;  %v3527_v3 = vpop.permute.xlu1 %1106  ;;  %v1091_v12 = vpop.permute.xlu0 %1090  ;;  %v1302_v4 = vadd.f32 %v1301_v26, %v1267_v61  ;;  %v1099_v47 = vmul.f32 %v3252_v51, %v1097_v32  ;;  %v790_v26 = vsel %vm210_vm1, %v788_v23, %v789_v60 }
 0x18d   :  { %v1334_v25 = vpop.f32.mrf.mxu3  ;;  %v1400_v46 = vpop.f32.mrf.mxu1  ;;  %v3566_v2 = vadd.f32 %v1091_v12, %v1081_v52  ;;  %v1130_v13 = vrot.slane %v1094_v10, 1  ;;  %v1112_v12 = vadd.f32 %v3527_v3, %v1098_v24 }
 0x18e   :  { %v1397_v37 = vadd.f32 %v1396_v62, %v1368_v27  ;;  %v1335_v40 = vadd.f32 %v1334_v25, %v1302_v4  ;;  %v440_v62 = vrot.slane %v3552_v11, 2  ;;  %v1113_v9 = vadd.f32 %v3511_v29, %v1099_v47  ;;  %v359_v32 = vpop.permute.xlu2 %358 }
 0x18f   :  { %v1131_v14 = vrot.slane %v3566_v2, 1  ;;  %v1062_v4 = vadd.f32 %v1057_v34, %v1048_v8  ;;  %v1869_v25 = vstv %s3571_s10  ;;  %s2270_s10 = sld [smem:[#allocation7 + $0x8]] }
 0x190   :  { %1403 = vst.msk [vmem:[#allocation2 + $0x1] sm:$0xff] %vm1166_vm3, %v1397_v37  ;;  %v441_v27 = vsel %vm210_vm1, %v439_v39, %v440_v62  ;;  %v1943_v39 = vstv %s3594_s13  ;;  %s3703_s13 = sld [smem:[#allocation7 + $0x22]] }
 0x191   :  { %v1132_v57 = vsel %vm200_vm0, %v1130_v13, %v1131_v14 }
 0x193   :  { %v1371_v44 = vpop.f32.mrf.mxu0 }
 0x194   :  { %v1372_v33 = vadd.f32 %v1371_v44, %v1335_v40  ;;  %v706_v58 = vpop.permute.xlu1 %705  ;;  %v357_v6 = vpop.permute.xlu0 %356 }
 0x195   :  { %v711_v49 = vadd.f32 %v706_v58, %v697_v55  ;;  %v362_v22 = vadd.f32 %v357_v6, %v348_v53  ;;  %v1135_v53 = vadd.f32 %v1132_v57, %v1062_v4  ;;  %v335_v55 = vmul.f32 %v3186_v15, %v333_v48 }
 0x196   :  { %v1401_v56 = vadd.f32 %v1400_v46, %v1372_v33  ;;  %v2017_v46 = vstv %s2288_s14  ;;  %v684_v6 = vmul.f32 %v3214_v43, %v682_v5  ;;  %v1035_v48 = vmul.f32 %v3252_v51, %v1033_v45  ;;  %s2282_s14 = sld [smem:[#allocation7 + $0x14]] }
 0x197   :  { %v784_v16 = vadd.f32 %v781_v31, %v711_v49  ;;  %v435_v19 = vadd.f32 %v3474_v18, %v362_v22 }
 0x198   :  { %1405 = vst.msk [vmem:[#allocation2 + $0x9] sm:$0x3f] %vm1404_vm4, %v1401_v56 }
 0x199   :  { %v793_v61 = vadd.f32 %v790_v26, %v784_v16  ;;  %v444_v63 = vadd.f32 %v441_v27, %v435_v19  ;;  %v1059_v26 = vpop.permute.xlu2 %1058  ;;  %v2028_v19 = vstv %s2290_s12  ;;  %s3705_s12 = sld [smem:[#allocation7 + $0x20]] }
 0x19b   :  { %v795_v20 = vadd.f32 %v793_v61, %v444_v63 }
 0x19c   :  { %v1123_v18 = vpop.permute.xlu1 %1122  ;;  %v1121_v28 = vpop.permute.xlu0 %1120 }
 0x19d   :  { %v3590_v37 = vadd.f32 %v1123_v18, %v1113_v9  ;;  %v1126_v29 = vadd.f32 %v1121_v28, %v1112_v12 }
 0x19f   :  { %v1140_v3 = vrot.slane %v3590_v37, 2  ;;  %v3601_v1 = vld [vmem:[#allocation2 + $0x1] ss:$4 sm:$0xf]  ;;  %v1139_v41 = vrot.slane %v1126_v29, 2 }
 0x1a0   :  { %v1955_v35 = vmul.f32 %v1954_v59, %v3601_v1  ;;  %v1881_v0 = vmul.f32 %v1880_v54, %v3601_v1  ;;  %v3605_v50 = vld [vmem:[#allocation2] ss:$4 sm:$0xf]  ;;  %v2029_v63 = vmul.f32 %v2028_v19, %v3601_v1 }
 0x1a1   :  { %v1870_v40 = vmul.f32 %v1869_v25, %v3605_v50  ;;  %v1141_v52 = vsel %vm210_vm1, %v1139_v41, %v1140_v3  ;;  %v1944_v56 = vmul.f32 %v1943_v39, %v3605_v50  ;;  %v2018_v15 = vmul.f32 %v2017_v46, %v3605_v50 }
 0x1a2   :  { %1957 = vrot.lane.b32.xlu2 %v1955_v35, %s2435_s15  ;;  %1883 = vrot.lane.b32.xlu1 %v1881_v0, %s2435_s15  ;;  %v1144_v44 = vadd.f32 %v1141_v52, %v1135_v53  ;;  %v1977_v46 = vstv %s2281_s17  ;;  %s3709_s17 = sld [smem:[#allocation8]] }
 0x1a3   :  { %1872 = vrot.lane.b32.xlu0 %v1870_v40, %s2435_s15 }
 0x1a4   :  { %v694_v23 = vpop.permute.xlu1 %693  ;;  %v1146_v33 = vadd.f32 %v1144_v44, %v795_v20  ;;  %v345_v58 = vpop.permute.xlu0 %344 }
 0x1a5   :  { %v349_v7 = vadd.f32 %v345_v58, %v335_v55  ;;  %v698_v16 = vadd.f32 %v694_v23, %v684_v6 }
 0x1a6   :  { %v1162_v49 = vadd.f32 %v1161_v36, %v1146_v33 }
 0x1a7   :  { %v363_v22 = vadd.f32 %v359_v32, %v349_v7  ;;  %v1892_v7 = vstv %s2267_s16  ;;  %s3707_s16 = sld [smem:[#allocation8 + $0x1]] }
 0x1a8   :  { %v1164_v31 = vmax.f32 %v1162_v49, 0.0  ;;  %v1903_v49 = vstv %s2269_s3  ;;  %s3711_s3 = sld [smem:[#allocation10 + $0x3]] }
 0x1a9   :  { %v436_v8 = vadd.f32 %v431_v38, %v363_v22  ;;  %v2040_v22 = vstv %s2292_s18  ;;  %s3713_s18 = sld [smem:[#allocation10 + $0x4]] }
 0x1aa   :  { %1946 = vrot.lane.b32.xlu1 %v1944_v56, %s2435_s15  ;;  %v1631_v47 = vsel %vm1177_vm2, %v1164_v31, 0 }
 0x1ab   :  { %2020 = vrot.lane.b32.xlu0 %v2018_v15, %s2435_s15  ;;  %v1656_v24 = vand.u32 4294901760, %v1631_v47  ;;  %v445_v13 = vadd.f32 %v440_v62, %v436_v8 }
 0x1ac   :  { %v1045_v10 = vpop.permute.xlu1 %1044  ;;  %v708_v5 = vpop.permute.xlu0 %707 }
 0x1ad   :  { %v1049_v43 = vadd.f32 %v1045_v10, %v1035_v48  ;;  %v712_v61 = vadd.f32 %v708_v5, %v698_v16  ;;  %1710 = vmatmul.f32.vlgmr.msrb.gmra.mxu1 %v1656_v24  ;;  %v1657_v51 = vsub.f32 %v1631_v47, %v1656_v24  ;;  %v1966_v47 = vstv %s2279_s19  ;;  %s3715_s19 = sld [smem:[#allocation10]] }
 0x1af   :  { %v1063_v45 = vadd.f32 %v1059_v26, %v1049_v43  ;;  %v785_v27 = vadd.f32 %v780_v30, %v712_v61  ;;  %1744 = vmatmul.f32.vlgmr.msra.gmra.mxu2 %v1657_v51  ;;  %v1658_v34 = vand.u32 4294901760, %v1657_v51  ;;  %v1866_v26 = vstv %s1865_s20  ;;  %s2307_s20 = sld [smem:[#allocation11 + $0x1]] }
 0x1b0   :  { %v1867_v19 = vmul.f32 %v1866_v26, %v3605_v50  ;;  %v2075_v26 = vstv %s2298_s6 }
 0x1b1   :  { %v1136_v9 = vadd.f32 %v1131_v14, %v1063_v45  ;;  %v794_v17 = vadd.f32 %v789_v60, %v785_v27  ;;  %1776 = vmatmul.f32.vlgmr.msra.gmra.mxu3 %v1658_v34  ;;  %v1659_v38 = vsub.f32 %v1657_v51, %v1658_v34  ;;  %v1951_v45 = vstv %s2276_s21  ;;  %s2098_s21 = sld [smem:[#allocation11]] }
 0x1b2   :  { %2031 = vrot.lane.b32.xlu1 %v2029_v63, %s2435_s15  ;;  %v1940_v34 = vstv %s2274_s23  ;;  %s3719_s23 = sld [smem:[#allocation10 + $0x6]] }
 0x1b3   :  { %v1145_v12 = vadd.f32 %v1140_v3, %v1136_v9  ;;  %v796_v21 = vadd.f32 %v794_v17, %v445_v13  ;;  %v1660_v30 = vand.u32 4294901760, %v1659_v38  ;;  %v1952_v9 = vmul.f32 %v1951_v45, %v3601_v1 }
 0x1b4   :  { %v1941_v13 = vmul.f32 %v1940_v34, %v3605_v50 }
 0x1b5   :  { %v1147_v20 = vadd.f32 %v1145_v12, %v796_v21  ;;  %1661 = vmatmul.f32.vlgmr.msrb.gmra.mxu0 %v1660_v30  ;;  %v2014_v30 = vstv %s2287_s2  ;;  %s3721_s2 = sld [smem:[#allocation10 + $0x7]] }
 0x1b7   :  { %v1163_v18 = vadd.f32 %v1161_v36, %v1147_v20  ;;  %v2025_v20 = vstv %s2289_s0  ;;  %s3725_s0 = sld [smem:[#allocation11 + $0x2]] }
 0x1b9   :  { %v1165_v4 = vmax.f32 %v1163_v18, 0.0 }
 0x1bb   :  { %v1634_v2 = vsel %vm1177_vm2, %v1165_v4, 0  ;;  %v2015_v4 = vmul.f32 %v2014_v30, %v3605_v50 }
 0x1bc   :  { %v1664_v14 = vand.u32 4294901760, %v1634_v2 }
 0x1be   :  { %1714 = vmatmul.f32.gmra.mxu1 %v1664_v14  ;;  %v1665_v11 = vsub.f32 %v1634_v2, %v1664_v14  ;;  %v2026_v2 = vmul.f32 %v2025_v20, %v3601_v1 }
 0x1c0   :  { %1749 = vmatmul.f32.gmra.mxu2 %v1665_v11  ;;  %v1666_v62 = vand.u32 4294901760, %v1665_v11 }
 0x1c2   :  { %1782 = vmatmul.f32.gmra.mxu3 %v1666_v62  ;;  %v1667_v42 = vsub.f32 %v1665_v11, %v1666_v62 }
 0x1c4   :  { %v1668_v60 = vand.u32 4294901760, %v1667_v42 }
 0x1c6   :  { %1669 = vmatmul.f32.gmra.mxu0 %v1668_v60  ;;  %1844 = vmatmul.f32.vlgmr.msra.gmra.mxu1 %v1656_v24 }
 0x1cc   :  { %v1521_v29 = vpop.f32.mrf.mxu0 }
 0x1ce   :  { %1815 = vmatmul.f32.vlgmr.msra.gmra.mxu0 %v1656_v24  ;;  %1848 = vmatmul.f32.gmra.mxu1 %v1664_v14  ;;  %v1553_v3 = vpop.f32.mrf.mxu1  ;;  %v1877_v24 = vstv %s2264_s5  ;;  %s3717_s5 = sld [smem:[#allocation10 + $0x1]] }
 0x1cf   :  { %v1878_v43 = vmul.f32 %v1877_v24, %v3601_v1 }
 0x1d0   :  { %v1487_v37 = vpop.f32.mrf.mxu3 }
 0x1d6   :  { %1819 = vmatmul.f32.gmra.mxu0 %v1664_v14 }
 0x1d8   :  { %v1438_v28 = vpop.f32.mrf.mxu2 }
 0x1d9   :  { %v1488_v54 = vadd.f32 %v1487_v37, %v1438_v28 }
 0x1db   :  { %v1522_v25 = vadd.f32 %v1521_v29, %v1488_v54 }
 0x1dd   :  { %v1554_v35 = vadd.f32 %v1553_v3, %v1522_v25  ;;  %v1526_v52 = vpop.f32.mrf.mxu0 }
 0x1df   :  { %v1559_v44 = vpop.f32.mrf.mxu1 }
 0x1e1   :  { %v1491_v59 = vpop.f32.mrf.mxu3 }
 0x1e9   :  { %v1446_v57 = vpop.f32.mrf.mxu2  ;;  %v1621_v0 = vpop.f32.mrf.mxu3 }
 0x1ea   :  { %v1492_v41 = vadd.f32 %v1491_v59, %v1446_v57 }
 0x1ec   :  { %v1527_v55 = vadd.f32 %v1526_v52, %v1492_v41 }
 0x1ee   :  { %v1560_v36 = vadd.f32 %v1559_v44, %v1527_v55 }
 0x1f1   :  { %v1592_v53 = vpop.f32.mrf.mxu2  ;;  %v1625_v58 = vpop.f32.mrf.mxu3 }
 0x1f2   :  { %v1593_v40 = vadd.f32 %v1592_v53, %v1554_v35 }
 0x1f4   :  { %v1622_v32 = vadd.f32 %v1621_v0, %v1593_v40 }
 0x1f6   :  { %1628 = vst.msk [vmem:[#allocation2 + $0x11] sm:$0xff] %vm1166_vm3, %v1622_v32 }
 0x1f9   :  { %v1596_v23 = vpop.f32.mrf.mxu2 }
 0x1fa   :  { %v1597_v33 = vadd.f32 %v1596_v23, %v1560_v36 }
 0x1fc   :  { %v1626_v39 = vadd.f32 %v1625_v58, %v1597_v33  ;;  %v1958_v63 = vpop.permute.xlu2 %1957  ;;  %v1916_v33 = vstv %s2271_s25  ;;  %v1990_v58 = vstv %s2283_s22 }
 0x1fd   :  { %v1960_v38 = vadd.f32 %v1958_v63, %v1952_v9 }
 0x1fe   :  { %1629 = vst.msk [vmem:[#allocation2 + $0x19] sm:$0x3f] %vm1404_vm4, %v1626_v39  ;;  %v1927_v39 = vstv %s2273_s7 }
 0x205   :  { %v3643_v6 = vld [vmem:[#allocation2 + $0x10] ss:$4 sm:$0xf]  ;;  %v3645_v56 = vld [vmem:[#allocation2 + $0x11] ss:$4 sm:$0xf] }
 0x206   :  { %v1893_v15 = vmul.f32 %v1892_v7, %v3643_v6  ;;  %v1978_v48 = vmul.f32 %v1977_v46, %v3645_v56  ;;  %v1904_v31 = vmul.f32 %v1903_v49, %v3645_v56  ;;  %v2041_v16 = vmul.f32 %v2040_v22, %v3643_v6 }
 0x207   :  { %v1967_v10 = vmul.f32 %v1966_v47, %v3643_v6  ;;  %v2064_v22 = vstv %s2296_s24  ;;  %v2051_v47 = vstv %s2294_s4  ;;  %s3748_s24 = sld [smem:[#allocation8 + $0x2]] }
 0x208   :  { %1895 = vrot.lane.b32.xlu2 %v1893_v15, %s2435_s15  ;;  %1980 = vrot.lane.b32.xlu1 %v1978_v48, %s2435_s15  ;;  %v2052_v24 = vmul.f32 %v2051_v47, %v3645_v56  ;;  %v2091_v47 = vstv %s3717_s5 }
 0x209   :  { %1906 = vrot.lane.b32.xlu0 %v1904_v31, %s2435_s15  ;;  %v2001_v31 = vstv %s2285_s9 }
 0x210   :  { %2043 = vrot.lane.b32.xlu2 %v2041_v16, %s2435_s15 }
 0x211   :  { %1969 = vrot.lane.b32.xlu0 %v1967_v10, %s2435_s15 }
 0x214   :  { %v1884_v5 = vpop.permute.xlu1 %1883 }
 0x215   :  { %v1886_v8 = vadd.f32 %v1884_v5, %v1878_v43  ;;  %v1873_v61 = vpop.permute.xlu0 %1872  ;;  %v1889_v5 = vstv %s2266_s26  ;;  %s3757_s26 = sld [smem:[#allocation10 + $0x5]] }
 0x216   :  { %v1875_v51 = vadd.f32 %v1873_v61, %v1867_v19  ;;  %v1900_v19 = vstv %s2268_s27  ;;  %v1890_v61 = vmul.f32 %v1889_v5, %v3643_v6 }
 0x218   :  { %v3659_v27 = vadd.f32 %v1886_v8, %v1875_v51  ;;  %v1901_v51 = vmul.f32 %v1900_v19, %v3645_v56 }
 0x21c   :  { %v1947_v17 = vpop.permute.xlu1 %1946 }
 0x21d   :  { %v1949_v12 = vadd.f32 %v1947_v17, %v1941_v13  ;;  %v2021_v18 = vpop.permute.xlu0 %2020  ;;  %v1974_v13 = vstv %s2280_s28  ;;  %v1963_v17 = vstv %s2278_s29  ;;  %s2301_s29 = sld [smem:[#allocation10 + $0x2]] }
 0x21e   :  { %v2023_v11 = vadd.f32 %v2021_v18, %v2015_v4  ;;  %v1975_v30 = vmul.f32 %v1974_v13, %v3645_v56  ;;  %v1964_v20 = vmul.f32 %v1963_v17, %v3643_v6 }
 0x21f   :  { %v3663_v21 = vadd.f32 %v1960_v38, %v1949_v12 }
 0x224   :  { %v2032_v14 = vpop.permute.xlu1 %2031 }
 0x225   :  { %v2034_v62 = vadd.f32 %v2032_v14, %v2026_v2 }
 0x227   :  { %v3667_v42 = vadd.f32 %v2034_v62, %v2023_v11 }
 0x22a   :  { %v1711_v60 = vpop.f32.mrf.mxu1 }
 0x232   :  { %v1662_v37 = vpop.f32.mrf.mxu0  ;;  %v1745_v57 = vpop.f32.mrf.mxu2 }
 0x233   :  { %v1712_v59 = vadd.f32 %v1711_v60, %v1662_v37  ;;  %v1998_v60 = vstv %s2284_s11  ;;  %v1987_v37 = vstv %s2282_s14  ;;  %s2436_s14 = smov 2  }
 0x234   :  { %v1777_v25 = vpop.f32.mrf.mxu3 }
 0x235   :  { %v1746_v29 = vadd.f32 %v1745_v57, %v1712_v59 }
 0x237   :  { %v1778_v3 = vadd.f32 %v1777_v25, %v1746_v29  ;;  %v2037_v29 = vstv %s3699_s1 }
 0x23b   :  { %v1715_v28 = vpop.f32.mrf.mxu1 }
 0x243   :  { %v1670_v54 = vpop.f32.mrf.mxu0  ;;  %v1845_v35 = vpop.f32.mrf.mxu1 }
 0x244   :  { %v1716_v41 = vadd.f32 %v1715_v28, %v1670_v54  ;;  %v1750_v53 = vpop.f32.mrf.mxu2  ;;  %v1913_v28 = vstv %s2270_s10  ;;  %s2314_s10 = sld [smem:[#allocation10 + $0x8]] }
 0x245   :  { %v1783_v52 = vpop.f32.mrf.mxu3 }
 0x246   :  { %v1751_v1 = vadd.f32 %v1750_v53, %v1716_v41 }
 0x248   :  { %v1784_v55 = vadd.f32 %v1783_v52, %v1751_v1  ;;  %v2061_v52 = vstv %s3705_s12 }
 0x24b   :  { %v1816_v0 = vpop.f32.mrf.mxu0  ;;  %v1849_v36 = vpop.f32.mrf.mxu1 }
 0x24c   :  { %v1817_v50 = vadd.f32 %v1816_v0, %v1778_v3  ;;  %v2072_v0 = vstv %s3703_s13 }
 0x24e   :  { %v1846_v40 = vadd.f32 %v1845_v35, %v1817_v50 }
 0x250   :  { %1852 = vst.msk [vmem:[#allocation2 + $0x21] sm:$0xff] %vm1166_vm3, %v1846_v40 }
 0x253   :  { %v1820_v32 = vpop.f32.mrf.mxu0 }
 0x254   :  { %v1821_v44 = vadd.f32 %v1820_v32, %v1784_v55  ;;  %v2048_v55 = vstv %s3701_s30  ;;  %v2038_v32 = vmul.f32 %v2037_v29, %v3643_v6 }
 0x256   :  { %v1850_v23 = vadd.f32 %v1849_v36, %v1821_v44  ;;  %v2127_v36 = vstv %s2307_s20 }
 0x257   :  { %2308 = vst.msk [vmem:[%s3805_s8 + $0x8] sm:$0x3f] %vm2101_vm5, %v2127_v36 }
 0x258   :  { %1853 = vst.msk [vmem:[#allocation2 + $0x29] sm:$0x3f] %vm1404_vm4, %v1850_v23 }
 0x259   :  { %2310 = vst.msk [vmem:[%s3805_s8 + $0x20] sm:$0x3f] %vm2101_vm5, %v2127_v36 }
 0x25f   :  { %v3671_v7 = vld [vmem:[#allocation2 + $0x20] ss:$4 sm:$0xf]  ;;  %v3673_v46 = vld [vmem:[#allocation2 + $0x21] ss:$4 sm:$0xf] }
 0x260   :  { %v1917_v49 = vmul.f32 %v1916_v33, %v3671_v7  ;;  %v1991_v15 = vmul.f32 %v1990_v58, %v3671_v7  ;;  %v1928_v48 = vmul.f32 %v1927_v39, %v3673_v46  ;;  %v2002_v16 = vmul.f32 %v2001_v31, %v3673_v46 }
 0x261   :  { %v2065_v10 = vmul.f32 %v2064_v22, %v3671_v7  ;;  %v2076_v43 = vmul.f32 %v2075_v26, %v3673_v46  ;;  %v1999_v54 = vmul.f32 %v1998_v60, %v3673_v46  ;;  %v1988_v57 = vmul.f32 %v1987_v37, %v3671_v7 }
 0x262   :  { %1919 = vrot.lane.b32.xlu2 %v1917_v49, %s2435_s15  ;;  %1993 = vrot.lane.b32.xlu1 %v1991_v15, %s2435_s15  ;;  %v1896_v8 = vpop.permute.xlu2 %1895  ;;  %v1914_v25 = vmul.f32 %v1913_v28, %v3671_v7  ;;  %v2073_v23 = vmul.f32 %v2072_v0, %v3673_v46  ;;  %v2011_v33 = vstv %s3707_s16  ;;  %v2099_v39 = vstv %s2098_s21 }
 0x263   :  { %1930 = vrot.lane.b32.xlu0 %v1928_v48, %s2435_s15  ;;  %v1898_v34 = vadd.f32 %v1896_v8, %v1890_v61  ;;  %v1937_v15 = vstv %s3709_s17  ;;  %v2062_v48 = vmul.f32 %v2061_v52, %v3671_v7  ;;  %v2116_v31 = vstv %s3711_s3  ;;  %2102 = vst.msk [vmem:[%s3805_s8] sm:$0x3f] %vm2101_vm5, %v2099_v39 }
 0x264   :  { %v2119_v22 = vstv %s3713_s18  ;;  %2302 = vst.msk [vmem:[%s3805_s8 + $0x18] sm:$0x3f] %vm2101_vm5, %v2099_v39  ;;  %v2088_v7 = vstv %s3715_s19  ;;  %v2154_v26 = vstv %s3725_s0  ;;  %v2049_v61 = vmul.f32 %v2048_v55, %v3645_v56 }
 0x265   :  { %2316 = vst.msk [vmem:[%s3805_s8 + $0x10] sm:$0x3f] %vm2101_vm5, %v2154_v26 }
 0x266   :  { %2318 = vst.msk [vmem:[%s3805_s8 + $0x28] sm:$0x3f] %vm2101_vm5, %v2154_v26 }
 0x26a   :  { %2004 = vrot.lane.b32.xlu2 %v2002_v16, %s2435_s15  ;;  %2067 = vrot.lane.b32.xlu1 %v2065_v10, %s2435_s15  ;;  %v3697_v62 = vpop.permute.xlu2 %2043  ;;  %v2146_v16 = vstv %s3721_s2 }
 0x26b   :  { %2054 = vrot.lane.b32.xlu0 %v2052_v24, %s2435_s15  ;;  %v2143_v24 = vstv %s3719_s23 }
 0x272   :  { %2078 = vrot.lane.b32.xlu2 %v2076_v43, %s2435_s15  ;;  %s2272_s15 = sld [smem:[#allocation7 + $0xa]]  ;;  %v2046_v43 = vadd.f32 %v3697_v62, %v2038_v32  ;;  %v2123_v62 = vstv %s3757_s26 }
 0x278   :  { %v1924_v59 = vstv %s2272_s15  ;;  %s2437_s15 = smov 122  }
 0x279   :  { %v1925_v41 = vmul.f32 %v1924_v59, %v3673_v46 }
 0x27a   :  { %v1981_v12 = vpop.permute.xlu1 %1980 }
 0x27b   :  { %v1907_v45 = vpop.permute.xlu0 %1906  ;;  %v1983_v4 = vadd.f32 %v1981_v12, %v1975_v30 }
 0x27c   :  { %v1909_v63 = vadd.f32 %v1907_v45, %v1901_v51 }
 0x27e   :  { %v1910_v9 = vadd.f32 %v1909_v63, %v1898_v34 }
 0x280   :  { %v3692_v38 = vadd.f32 %v1910_v9, %v3659_v27 }
 0x283   :  { %v1970_v18 = vpop.permute.xlu0 %1969 }
 0x284   :  { %v1972_v2 = vadd.f32 %v1970_v18, %v1964_v20 }
 0x286   :  { %v1984_v14 = vadd.f32 %v1983_v4, %v1972_v2 }
 0x288   :  { %v1985_v11 = vadd.f32 %v1984_v14, %v3663_v21  ;;  %v2085_v14 = vstv %s3748_s24 }
 0x2bc   :  { %v1920_v27 = vpop.permute.xlu2 %1919 }
 0x2bd   :  { %v1922_v1 = vadd.f32 %v1920_v27, %v1914_v25  ;;  %v2095_v27 = vstv %s2301_s29 }
 0x2c4   :  { %v2005_v21 = vpop.permute.xlu2 %2004 }
 0x2c5   :  { %v2007_v35 = vadd.f32 %v2005_v21, %v1999_v54  ;;  %v2150_v21 = vstv %s2314_s10 }
 0x2cc   :  { %v2079_v49 = vpop.permute.xlu2 %2078 }
 0x2cd   :  { %v2081_v5 = vadd.f32 %v2079_v49, %v2073_v23 }
 0x2d4   :  { %v1994_v3 = vpop.permute.xlu1 %1993 }
 0x2d5   :  { %v1996_v50 = vadd.f32 %v1994_v3, %v1988_v57  ;;  %v1931_v53 = vpop.permute.xlu0 %1930 }
 0x2d6   :  { %v1933_v40 = vadd.f32 %v1931_v53, %v1925_v41 }
 0x2d7   :  { %v2008_v44 = vadd.f32 %v2007_v35, %v1996_v50 }
 0x2d8   :  { %v1934_v58 = vadd.f32 %v1933_v40, %v1922_v1 }
 0x2d9   :  { %v2009_v6 = vadd.f32 %v2008_v44, %v1985_v11 }
 0x2da   :  { %v1935_v46 = vadd.f32 %v1934_v58, %v3692_v38 }
 0x2db   :  { %v2012_v10 = vadd.f32 %v2011_v33, %v2009_v6 }
 0x2dc   :  { %v1938_v19 = vadd.f32 %v1937_v15, %v1935_v46  ;;  %v2068_v8 = vpop.permute.xlu1 %2067 }
 0x2dd   :  { %v2070_v51 = vadd.f32 %v2068_v8, %v2062_v48  ;;  %v2055_v45 = vpop.permute.xlu0 %2054  ;;  %v2120_v34 = vmul.f32 %v2119_v22, %v2012_v10  ;;  %v2092_v63 = vmul.f32 %v2091_v47, %v2012_v10  ;;  %v2147_v9 = vmul.f32 %v2146_v16, %v2012_v10 }
 0x2de   :  { %v2057_v56 = vadd.f32 %v2055_v45, %v2049_v61  ;;  %v2117_v13 = vmul.f32 %v2116_v31, %v1938_v19  ;;  %v2089_v17 = vmul.f32 %v2088_v7, %v1938_v19  ;;  %v2144_v38 = vmul.f32 %v2143_v24, %v1938_v19 }
 0x2df   :  { %v2082_v12 = vadd.f32 %v2081_v5, %v2070_v51 }
 0x2e0   :  { %v2058_v30 = vadd.f32 %v2057_v56, %v2046_v43  ;;  %v2121_v20 = vadd.f32 %v2120_v34, %v2117_v13  ;;  %v2093_v18 = vadd.f32 %v2092_v63, %v2089_v17  ;;  %v2148_v4 = vadd.f32 %v2147_v9, %v2144_v38 }
 0x2e2   :  { %v2059_v2 = vadd.f32 %v2058_v30, %v3667_v42 }
 0x2e4   :  { %v2083_v11 = vadd.f32 %v2082_v12, %v2059_v2 }
 0x2e6   :  { %v2086_v60 = vadd.f32 %v2085_v14, %v2083_v11 }
 0x2e8   :  { %v2124_v37 = vmul.f32 %v2123_v62, %v2086_v60  ;;  %v2096_v28 = vmul.f32 %v2095_v27, %v2086_v60  ;;  %v2151_v59 = vmul.f32 %v2150_v21, %v2086_v60 }
 0x2ea   :  { %v2125_v54 = vadd.f32 %v2124_v37, %v2121_v20  ;;  %v2097_v57 = vadd.f32 %v2096_v28, %v2093_v18  ;;  %v2152_v29 = vadd.f32 %v2151_v59, %v2148_v4 }
 0x2ec   :  { %v2128_v25 = vadd.f32 %v2127_v36, %v2125_v54  ;;  %v2100_v3 = vadd.f32 %v2099_v39, %v2097_v57  ;;  %v2155_v42 = vadd.f32 %v2154_v26, %v2152_v29 }
 0x2ee   :  { %2132 = vrot.lane.b32.xlu2 %v2128_v25, %s2436_s14  ;;  %2111 = vrot.lane.b32.xlu1 %v2100_v3, %s2437_s15 }
 0x2ef   :  { %2104 = vrot.lane.b32.xlu0 %v2100_v3, %s2436_s14 }
 0x2f6   :  { %2165 = vrot.lane.b32.xlu2 %v2155_v42, %s2437_s15  ;;  %2159 = vrot.lane.b32.xlu1 %v2155_v42, %s2436_s14 }
 0x2f7   :  { %2138 = vrot.lane.b32.xlu0 %v2128_v25, %s2437_s15 }
 0x348   :  { %v2133_v41 = vpop.permute.xlu2 %2132 }
 0x349   :  { %2309 = vst.msk [vmem:[%s3805_s8 + $0x9] sm:$0xf] %vm2107_vm6, %v2133_v41 }
 0x350   :  { %v2166_v35 = vpop.permute.xlu2 %2165 }
 0x351   :  { %2319 = vst.msk [vmem:[%s3805_s8 + $0x29] sm:$0xf] %vm2107_vm6, %v2166_v35 }
 0x360   :  { %v2112_v0 = vpop.permute.xlu1 %2111 }
 0x361   :  { %2303 = vst.msk [vmem:[%s3805_s8 + $0x19] sm:$0xf] %vm2107_vm6, %v2112_v0  ;;  %v2105_v50 = vpop.permute.xlu0 %2104 }
 0x362   :  { %2108 = vst.msk [vmem:[%s3805_s8 + $0x1] sm:$0xf] %vm2107_vm6, %v2105_v50 }
 0x368   :  { %v2160_v53 = vpop.permute.xlu1 %2159 }
 0x369   :  { %2317 = vst.msk [vmem:[%s3805_s8 + $0x11] sm:$0xf] %vm2107_vm6, %v2160_v53  ;;  %v2139_v1 = vpop.permute.xlu0 %2138 }
 0x36a   :  { %2311 = vst.msk [vmem:[%s3805_s8 + $0x21] sm:$0xf] %vm2107_vm6, %v2139_v1 }
 0x36b   :  { %2173 = vsyncpa [#allocation4], 1 }
 0x36c   :  { %2174 = vsyncpa [#allocation6], 1 }
 0x36d   :  { %2175 = vsyncpa [#allocation9], 1 }
 0x36e   :  { %2176 = vsyncpa [#allocation12], 1 }

</bundles_post_ra>
